<compile_context>
chip_gen: v6e
topology: v6e:2x2x1
jax: 0.10.0
libtpu: 0.0.40
codegen_flags: <defaults>
</compile_context>

<pallas_src>
import jax
import jax.numpy as jnp
from jax.experimental import pallas as pl
from jax.experimental.pallas import tpu as pltpu

_EPS = 1e-5


# --------------------------------------------------------------------------
# in-kernel helpers
# --------------------------------------------------------------------------
def _write_stats(stats_ref, y):
    """stats_ref: (1, 8, C) block. Row 0 = per-tile sum, row 1 = per-tile
    sum-of-squares, rows 2..7 zero padding (keeps the block (8,128)-friendly)."""
    c = y.shape[-1]
    s = jnp.sum(y, axis=0, keepdims=True)
    q = jnp.sum(y * y, axis=0, keepdims=True)
    stats_ref[...] = jnp.concatenate(
        [s, q, jnp.zeros((6, c), jnp.float32)], axis=0)[None]


def _conv1_kernel(x_ref, w_ref, h_ref, stats_ref):
    # conv1: 1x1 conv == channel matmul (bf16 operands, f32 accumulation)
    y = jnp.dot(x_ref[...].astype(jnp.bfloat16), w_ref[...],
                preferred_element_type=jnp.float32)
    h_ref[...] = y
    _write_stats(stats_ref, y)


def _conv2_kernel(h_ref, scale_ref, bias_ref, w_ref, o_ref, stats_ref):
    # fused BN1 (folded scale/bias) + ReLU, then 3x3 conv as ONE im2col matmul
    bt, hh, ww, c = h_ref.shape
    a = jnp.maximum(h_ref[...] * scale_ref[...] + bias_ref[...], 0.0)
    a = a.astype(jnp.bfloat16)
    padded = jnp.pad(a, ((0, 0), (1, 1), (1, 1), (0, 0)))
    cols = [padded[:, kh:kh + hh, kw:kw + ww, :]
            for kh in range(3) for kw in range(3)]
    im2col = jnp.concatenate(cols, axis=-1).reshape(bt * hh * ww, 9 * c)
    y = jnp.dot(im2col, w_ref[...], preferred_element_type=jnp.float32)
    o_ref[...] = y.reshape(bt, hh, ww, c)
    _write_stats(stats_ref, y)


def _conv3_kernel(h_ref, scale_ref, bias_ref, w_ref, o_ref, stats_ref):
    # fused BN2 + ReLU, then 1x1 conv to 4*Cmid channels
    a = jnp.maximum(h_ref[...] * scale_ref[...] + bias_ref[...], 0.0)
    y = jnp.dot(a.astype(jnp.bfloat16), w_ref[...],
                preferred_element_type=jnp.float32)
    o_ref[...] = y
    _write_stats(stats_ref, y)


def _bn_add_relu_kernel(h_ref, x_ref, scale_ref, bias_ref, o_ref):
    # BN3 (folded) + identity residual + final ReLU
    y = h_ref[...] * scale_ref[...] + bias_ref[...] + x_ref[...].astype(jnp.float32)
    o_ref[...] = jnp.maximum(y, 0.0).astype(o_ref.dtype)


# --------------------------------------------------------------------------
# wrapper-side helpers
# --------------------------------------------------------------------------
def _pick_row_tile(m, target=256):
    """Largest divisor of m that is <= target and a multiple of 8 (or m)."""
    for t in range(min(m, target), 0, -1):
        if m % t == 0 and (t % 8 == 0 or t == m):
            return t
    return m


def _finalize_bn(stats, count, gamma, beta):
    """Reduce per-tile partial stats and fold BN into one scale/bias."""
    s = jnp.sum(stats[:, 0, :], axis=0, keepdims=True)
    q = jnp.sum(stats[:, 1, :], axis=0, keepdims=True)
    mean = s / count
    var = jnp.maximum(q / count - mean * mean, 0.0)
    scale = gamma * jax.lax.rsqrt(var + _EPS)
    bias = beta - mean * scale
    return scale.astype(jnp.float32), bias.astype(jnp.float32)


def bottleneck_forward_nhwc(x, params):
    B, H, W, Cin = x.shape
    Cmid = params["w1"].shape[-1]
    Cout = params["w3"].shape[-1]
    if Cin != Cout:
        raise ValueError(
            "identity residual (downsample=None) requires in_size == 4*out_size")

    M = B * H * W
    TM = _pick_row_tile(M, 256)
    nt = M // TM
    count = jnp.float32(M)

    # bf16 weights for the MXU; conv2 weight pre-reshaped to (9*Cmid, Cmid)
    w1 = params["w1"].astype(jnp.bfloat16)
    w2 = params["w2"].astype(jnp.bfloat16).reshape(9 * Cmid, Cmid)
    w3 = params["w3"].astype(jnp.bfloat16)

    # 32 MiB scoped VMEM is safe on v5e/v6e/v7x; blocks here are far smaller.
    cparams = pltpu.CompilerParams(
        dimension_semantics=("parallel",),
        vmem_limit_bytes=32 * 1024 * 1024,
    )

    xf = x.reshape(M, Cin)

    # ---- pass 1: conv1 (1x1) + BN1 partial stats ----------------------------
    h1, st1 = pl.pallas_call(
        _conv1_kernel,
        grid=(nt,),
        in_specs=[pl.BlockSpec((TM, Cin), lambda i: (i, 0)),
                  pl.BlockSpec((Cin, Cmid), lambda i: (0, 0))],
        out_specs=[pl.BlockSpec((TM, Cmid), lambda i: (i, 0)),
                   pl.BlockSpec((1, 8, Cmid), lambda i: (i, 0, 0))],
        out_shape=[jax.ShapeDtypeStruct((M, Cmid), jnp.float32),
                   jax.ShapeDtypeStruct((nt, 8, Cmid), jnp.float32)],
        compiler_params=cparams,
        cost_estimate=pl.CostEstimate(
            flops=2 * M * Cin * Cmid, transcendentals=0,
            bytes_accessed=4 * M * (Cin + Cmid) + 2 * Cin * Cmid),
    )(xf, w1)
    scale1, bias1 = _finalize_bn(st1, count, params["g1"], params["b1"])

    # ---- pass 2: BN1+ReLU -> conv2 (3x3, im2col) + BN2 partial stats --------
    h1_4d = h1.reshape(B, H, W, Cmid)
    h2_4d, st2 = pl.pallas_call(
        _conv2_kernel,
        grid=(B,),
        in_specs=[pl.BlockSpec((1, H, W, Cmid), lambda b: (b, 0, 0, 0)),
                  pl.BlockSpec((1, Cmid), lambda b: (0, 0)),
                  pl.BlockSpec((1, Cmid), lambda b: (0, 0)),
                  pl.BlockSpec((9 * Cmid, Cmid), lambda b: (0, 0))],
        out_specs=[pl.BlockSpec((1, H, W, Cmid), lambda b: (b, 0, 0, 0)),
                   pl.BlockSpec((1, 8, Cmid), lambda b: (b, 0, 0))],
        out_shape=[jax.ShapeDtypeStruct((B, H, W, Cmid), jnp.float32),
                   jax.ShapeDtypeStruct((B, 8, Cmid), jnp.float32)],
        compiler_params=cparams,
        cost_estimate=pl.CostEstimate(
            flops=2 * M * 9 * Cmid * Cmid, transcendentals=0,
            bytes_accessed=8 * M * Cmid + 2 * 9 * Cmid * Cmid),
    )(h1_4d, scale1, bias1, w2)
    scale2, bias2 = _finalize_bn(st2, count, params["g2"], params["b2"])

    # ---- pass 3: BN2+ReLU -> conv3 (1x1) + BN3 partial stats ----------------
    h2 = h2_4d.reshape(M, Cmid)
    h3, st3 = pl.pallas_call(
        _conv3_kernel,
        grid=(nt,),
        in_specs=[pl.BlockSpec((TM, Cmid), lambda i: (i, 0)),
                  pl.BlockSpec((1, Cmid), lambda i: (0, 0)),
                  pl.BlockSpec((1, Cmid), lambda i: (0, 0)),
                  pl.BlockSpec((Cmid, Cout), lambda i: (0, 0))],
        out_specs=[pl.BlockSpec((TM, Cout), lambda i: (i, 0)),
                   pl.BlockSpec((1, 8, Cout), lambda i: (i, 0, 0))],
        out_shape=[jax.ShapeDtypeStruct((M, Cout), jnp.float32),
                   jax.ShapeDtypeStruct((nt, 8, Cout), jnp.float32)],
        compiler_params=cparams,
        cost_estimate=pl.CostEstimate(
            flops=2 * M * Cmid * Cout, transcendentals=0,
            bytes_accessed=4 * M * (Cmid + Cout) + 2 * Cmid * Cout),
    )(h2, scale2, bias2, w3)
    scale3, bias3 = _finalize_bn(st3, count, params["g3"], params["b3"])

    # ---- pass 4: BN3 -> residual add -> ReLU (x re-read here, not kept live) -
    out = pl.pallas_call(
        _bn_add_relu_kernel,
        grid=(nt,),
        in_specs=[pl.BlockSpec((TM, Cout), lambda i: (i, 0)),
                  pl.BlockSpec((TM, Cin), lambda i: (i, 0)),
                  pl.BlockSpec((1, Cout), lambda i: (0, 0)),
                  pl.BlockSpec((1, Cout), lambda i: (0, 0))],
        out_specs=pl.BlockSpec((TM, Cout), lambda i: (i, 0)),
        out_shape=jax.ShapeDtypeStruct((M, Cout), x.dtype),
        compiler_params=cparams,
        cost_estimate=pl.CostEstimate(
            flops=3 * M * Cout, transcendentals=0,
            bytes_accessed=12 * M * Cout),
    )(h3, xf, scale3, bias3)

    return out.reshape(B, H, W, Cout)


@jax.jit
def bottleneck_forward(x_nchw, params):
    # TODO(synk): keep the surrounding model NHWC to avoid these two full HBM
    # transposes; they are kept only to match the PyTorch NCHW interface.
    x = jnp.transpose(x_nchw, (0, 2, 3, 1))          # NCHW -> NHWC
    out = bottleneck_forward_nhwc(x, params)
    return jnp.transpose(out, (0, 3, 1, 2))          # NHWC -> NCHW


# --------------------------------------------------------------------------
# pure-JAX reference (f32 convs) for correctness checking
# --------------------------------------------------------------------------
def bottleneck_reference(x_nchw, p):
    x = jnp.transpose(x_nchw, (0, 2, 3, 1))
    dn = ("NHWC", "HWIO", "NHWC")

    def bn(y, g, b):
        mean = jnp.mean(y, axis=(0, 1, 2), keepdims=True)
        var = jnp.mean((y - mean) ** 2, axis=(0, 1, 2), keepdims=True)
        return (y - mean) / jnp.sqrt(var + _EPS) * g.reshape(1, 1, 1, -1) \
            + b.reshape(1, 1, 1, -1)

    w1 = p["w1"].reshape(1, 1, *p["w1"].shape)
    w3 = p["w3"].reshape(1, 1, *p["w3"].shape)
    h = jax.lax.conv_general_dilated(x, w1, (1, 1), "VALID",
                                     dimension_numbers=dn)
    h = jax.nn.relu(bn(h, p["g1"], p["b1"]))
    h = jax.lax.conv_general_dilated(h, p["w2"], (1, 1), ((1, 1), (1, 1)),
                                     dimension_numbers=dn)
    h = jax.nn.relu(bn(h, p["g2"], p["b2"]))
    h = jax.lax.conv_general_dilated(h, w3, (1, 1), "VALID",
                                     dimension_numbers=dn)
    h = bn(h, p["g3"], p["b3"])
    out = jax.nn.relu(h + x)
    return jnp.transpose(out, (0, 3, 1, 2))


if __name__ == "__main__":
    key = jax.random.PRNGKey(0)
    # Bottleneck(in_size=128, out_size=32): identity residual valid, 4*32 == 128.
    # Channels chosen lane-dense (128 = full lane width) per perf review.
    B, Cin, H, W = 2, 128, 16, 16
    Cmid = 32
    Cout = 4 * Cmid

    ks = jax.random.split(key, 10)
    x = jax.random.normal(ks[0], (B, Cin, H, W), jnp.float32)
    params = {
        "w1": 0.1 * jax.random.normal(ks[1], (Cin, Cmid), jnp.float32),
        "w2": 0.1 * jax.random.normal(ks[2], (3, 3, Cmid, Cmid), jnp.float32),
        "w3": 0.1 * jax.random.normal(ks[3], (Cmid, Cout), jnp.float32),
        "g1": 1.0 + 0.1 * jax.random.normal(ks[4], (1, Cmid), jnp.float32),
        "b1": 0.1 * jax.random.normal(ks[5], (1, Cmid), jnp.float32),
        "g2": 1.0 + 0.1 * jax.random.normal(ks[6], (1, Cmid), jnp.float32),
        "b2": 0.1 * jax.random.normal(ks[7], (1, Cmid), jnp.float32),
        "g3": 1.0 + 0.1 * jax.random.normal(ks[8], (1, Cout), jnp.float32),
        "b3": 0.1 * jax.random.normal(ks[9], (1, Cout), jnp.float32),
    }

    out = jax.block_until_ready(bottleneck_forward(x, params))
    ref = bottleneck_reference(x, params)
    assert out.shape == (B, Cout, H, W)
    # bf16 MXU operands vs f32 reference -> loose-ish tolerance
    assert jnp.allclose(out, ref, atol=5e-2, rtol=5e-2), "mismatch vs reference"
    print("KERNEL_OK")
</pallas_src>

<mosaic_0001>
module attributes {stable_mosaic.version = 11 : i64} {
  func.func @_conv1_kernel(%arg0: i32, %arg1: memref<256x128xf32, #tpu.memory_space<vmem>>, %arg2: memref<128x32xbf16, #tpu.memory_space<vmem>>, %arg3: memref<256x32xf32, #tpu.memory_space<vmem>>, %arg4: memref<1x8x32xf32, #tpu.memory_space<vmem>>) attributes {dimension_semantics = [#tpu.dimension_semantics<parallel>], iteration_bounds = array<i64: 2>, scalar_prefetch = 0 : i64, scratch_operands = 0 : i64, tpu.core_type = #tpu.core_type<tc>, window_params = [{transform_indices = @transform_0, window_bounds = array<i64: 256, 128>}, {pipeline_mode = #tpu.pipeline_mode<synchronous>, transform_indices = @transform_1, window_bounds = array<i64: 128, 32>}, {transform_indices = @transform_2, window_bounds = array<i64: 256, 32>}, {transform_indices = @transform_3, window_bounds = array<i64: 1, 8, 32>}]} {
    %c0 = arith.constant 0 : index
    %c0_0 = arith.constant 0 : index
    %0 = vector.load %arg1[%c0, %c0_0] : memref<256x128xf32, #tpu.memory_space<vmem>>, vector<256x128xf32>
    %1 = arith.truncf %0 : vector<256x128xf32> to vector<256x128xbf16>
    %c0_1 = arith.constant 0 : index
    %c0_2 = arith.constant 0 : index
    %2 = vector.load %arg2[%c0_1, %c0_2] : memref<128x32xbf16, #tpu.memory_space<vmem>>, vector<128x32xbf16>
    %cst = arith.constant dense<0.000000e+00> : vector<256x32xf32>
    %3 = tpu.matmul %1, %2, %cst {dimension_numbers = #tpu.dot_dimension_numbers<[1], [0], [0], [1], [0, 0, 1, 1], [], []>} : vector<256x128xbf16>, vector<128x32xbf16>, vector<256x32xf32> -> vector<256x32xf32>
    %c0_3 = arith.constant 0 : index
    %c0_4 = arith.constant 0 : index
    %4 = vector.load %arg3[%c0_3, %c0_4] : memref<256x32xf32, #tpu.memory_space<vmem>>, vector<256x32xf32>
    tpu.vector_store %arg3[%c0_3, %c0_4], %3 {strides = array<i32>} : memref<256x32xf32, #tpu.memory_space<vmem>>, vector<256x32xf32>,
    %cst_5 = arith.constant dense<0.000000e+00> : vector<32xf32>
    %5 = vector.multi_reduction <add>, %3, %cst_5 [0] : vector<256x32xf32> to vector<32xf32>
    %6 = vector.shape_cast %5 : vector<32xf32> to vector<1x32xf32>
    %7 = arith.mulf %3, %3 : vector<256x32xf32>
    %cst_6 = arith.constant dense<0.000000e+00> : vector<32xf32>
    %8 = vector.multi_reduction <add>, %7, %cst_6 [0] : vector<256x32xf32> to vector<32xf32>
    %9 = vector.shape_cast %8 : vector<32xf32> to vector<1x32xf32>
    %cst_7 = arith.constant 0.000000e+00 : f32
    %10 = vector.broadcast %cst_7 : f32 to vector<6x32xf32>
    %11 = tpu.concatenate %6, %9, %10 in 0 : vector<1x32xf32>, vector<1x32xf32>, vector<6x32xf32> -> vector<8x32xf32>
    %12 = vector.shape_cast %11 : vector<8x32xf32> to vector<1x8x32xf32>
    %c0_8 = arith.constant 0 : index
    %c0_9 = arith.constant 0 : index
    %c0_10 = arith.constant 0 : index
    %13 = vector.load %arg4[%c0_8, %c0_9, %c0_10] : memref<1x8x32xf32, #tpu.memory_space<vmem>>, vector<1x8x32xf32>
    tpu.vector_store %arg4[%c0_8, %c0_9, %c0_10], %12 {strides = array<i32>} : memref<1x8x32xf32, #tpu.memory_space<vmem>>, vector<1x8x32xf32>,
    return
  }
  func.func @transform_0(%arg0: i32) -> (i32, i32) {
    %c0_i32 = arith.constant 0 : i32
    %c0_i32_0 = arith.constant 0 : i32
    return %arg0, %c0_i32 : i32, i32
  }
  func.func @transform_1(%arg0: i32) -> (i32, i32) {
    %c0_i32 = arith.constant 0 : i32
    %c0_i32_0 = arith.constant 0 : i32
    %c0_i32_1 = arith.constant 0 : i32
    return %c0_i32, %c0_i32_0 : i32, i32
  }
  func.func @transform_2(%arg0: i32) -> (i32, i32) {
    %c0_i32 = arith.constant 0 : i32
    %c0_i32_0 = arith.constant 0 : i32
    return %arg0, %c0_i32 : i32, i32
  }
  func.func @transform_3(%arg0: i32) -> (i32, i32, i32) {
    %c0_i32 = arith.constant 0 : i32
    %c0_i32_0 = arith.constant 0 : i32
    %c0_i32_1 = arith.constant 0 : i32
    return %arg0, %c0_i32, %c0_i32_0 : i32, i32, i32
  }
}

module attributes {stable_mosaic.version = 11 : i64} {
  func.func @_conv2_kernel(%arg0: i32, %arg1: memref<1x16x16x32xf32, #tpu.memory_space<vmem>>, %arg2: memref<1x32xf32, #tpu.memory_space<vmem>>, %arg3: memref<1x32xf32, #tpu.memory_space<vmem>>, %arg4: memref<288x32xbf16, #tpu.memory_space<vmem>>, %arg5: memref<1x16x16x32xf32, #tpu.memory_space<vmem>>, %arg6: memref<1x8x32xf32, #tpu.memory_space<vmem>>) attributes {dimension_semantics = [#tpu.dimension_semantics<parallel>], iteration_bounds = array<i64: 2>, scalar_prefetch = 0 : i64, scratch_operands = 0 : i64, tpu.core_type = #tpu.core_type<tc>, window_params = [{transform_indices = @transform_0, window_bounds = array<i64: 1, 16, 16, 32>}, {pipeline_mode = #tpu.pipeline_mode<synchronous>, transform_indices = @transform_1, window_bounds = array<i64: 1, 32>}, {pipeline_mode = #tpu.pipeline_mode<synchronous>, transform_indices = @transform_2, window_bounds = array<i64: 1, 32>}, {pipeline_mode = #tpu.pipeline_mode<synchronous>, transform_indices = @transform_3, window_bounds = array<i64: 288, 32>}, {transform_indices = @transform_4, window_bounds = array<i64: 1, 16, 16, 32>}, {transform_indices = @transform_5, window_bounds = array<i64: 1, 8, 32>}]} {
    %c0 = arith.constant 0 : index
    %c0_0 = arith.constant 0 : index
    %c0_1 = arith.constant 0 : index
    %c0_2 = arith.constant 0 : index
    %0 = vector.load %arg1[%c0, %c0_0, %c0_1, %c0_2] : memref<1x16x16x32xf32, #tpu.memory_space<vmem>>, vector<1x16x16x32xf32>
    %c0_3 = arith.constant 0 : index
    %c0_4 = arith.constant 0 : index
    %1 = vector.load %arg2[%c0_3, %c0_4] : memref<1x32xf32, #tpu.memory_space<vmem>>, vector<1x32xf32>
    %2 = vector.shape_cast %1 : vector<1x32xf32> to vector<1x1x1x32xf32>
    %3 = vector.broadcast %2 : vector<1x1x1x32xf32> to vector<1x16x16x32xf32>
    %4 = arith.mulf %0, %3 : vector<1x16x16x32xf32>
    %c0_5 = arith.constant 0 : index
    %c0_6 = arith.constant 0 : index
    %5 = vector.load %arg3[%c0_5, %c0_6] : memref<1x32xf32, #tpu.memory_space<vmem>>, vector<1x32xf32>
    %6 = vector.shape_cast %5 : vector<1x32xf32> to vector<1x1x1x32xf32>
    %7 = vector.broadcast %6 : vector<1x1x1x32xf32> to vector<1x16x16x32xf32>
    %8 = arith.addf %4, %7 : vector<1x16x16x32xf32>
    %cst = arith.constant 0.000000e+00 : f32
    %9 = vector.broadcast %cst : f32 to vector<1x16x16x32xf32>
    %10 = arith.maximumf %8, %9 : vector<1x16x16x32xf32>
    %11 = arith.truncf %10 : vector<1x16x16x32xf32> to vector<1x16x16x32xbf16>
    %c0_i32 = arith.constant 0 : i32
    %12 = arith.sitofp %c0_i32 : i32 to bf16
    %13 = vector.broadcast %12 : bf16 to vector<1x1x16x32xbf16>
    %14 = tpu.concatenate %13, %11 in 1 : vector<1x1x16x32xbf16>, vector<1x16x16x32xbf16> -> vector<1x17x16x32xbf16>
    %15 = vector.broadcast %12 : bf16 to vector<1x1x16x32xbf16>
    %16 = tpu.concatenate %14, %15 in 1 : vector<1x17x16x32xbf16>, vector<1x1x16x32xbf16> -> vector<1x18x16x32xbf16>
    %17 = vector.broadcast %12 : bf16 to vector<1x18x1x32xbf16>
    %18 = tpu.concatenate %17, %16 in 2 : vector<1x18x1x32xbf16>, vector<1x18x16x32xbf16> -> vector<1x18x17x32xbf16>
    %19 = vector.broadcast %12 : bf16 to vector<1x18x1x32xbf16>
    %20 = tpu.concatenate %18, %19 in 2 : vector<1x18x17x32xbf16>, vector<1x18x1x32xbf16> -> vector<1x18x18x32xbf16>
    %21 = vector.extract_strided_slice %20 {offsets = [0, 0, 0, 0], sizes = [1, 16, 16, 32], strides = [1, 1, 1, 1]} : vector<1x18x18x32xbf16> to vector<1x16x16x32xbf16>
    %22 = vector.extract_strided_slice %20 {offsets = [0, 0, 1, 0], sizes = [1, 16, 16, 32], strides = [1, 1, 1, 1]} : vector<1x18x18x32xbf16> to vector<1x16x16x32xbf16>
    %23 = vector.extract_strided_slice %20 {offsets = [0, 0, 2, 0], sizes = [1, 16, 16, 32], strides = [1, 1, 1, 1]} : vector<1x18x18x32xbf16> to vector<1x16x16x32xbf16>
    %24 = vector.extract_strided_slice %20 {offsets = [0, 1, 0, 0], sizes = [1, 16, 16, 32], strides = [1, 1, 1, 1]} : vector<1x18x18x32xbf16> to vector<1x16x16x32xbf16>
    %25 = vector.extract_strided_slice %20 {offsets = [0, 1, 1, 0], sizes = [1, 16, 16, 32], strides = [1, 1, 1, 1]} : vector<1x18x18x32xbf16> to vector<1x16x16x32xbf16>
    %26 = vector.extract_strided_slice %20 {offsets = [0, 1, 2, 0], sizes = [1, 16, 16, 32], strides = [1, 1, 1, 1]} : vector<1x18x18x32xbf16> to vector<1x16x16x32xbf16>
    %27 = vector.extract_strided_slice %20 {offsets = [0, 2, 0, 0], sizes = [1, 16, 16, 32], strides = [1, 1, 1, 1]} : vector<1x18x18x32xbf16> to vector<1x16x16x32xbf16>
    %28 = vector.extract_strided_slice %20 {offsets = [0, 2, 1, 0], sizes = [1, 16, 16, 32], strides = [1, 1, 1, 1]} : vector<1x18x18x32xbf16> to vector<1x16x16x32xbf16>
    %29 = vector.extract_strided_slice %20 {offsets = [0, 2, 2, 0], sizes = [1, 16, 16, 32], strides = [1, 1, 1, 1]} : vector<1x18x18x32xbf16> to vector<1x16x16x32xbf16>
    %30 = tpu.concatenate %21, %22, %23, %24, %25, %26, %27, %28, %29 in 3 : vector<1x16x16x32xbf16>, vector<1x16x16x32xbf16>, vector<1x16x16x32xbf16>, vector<1x16x16x32xbf16>, vector<1x16x16x32xbf16>, vector<1x16x16x32xbf16>, vector<1x16x16x32xbf16>, vector<1x16x16x32xbf16>, vector<1x16x16x32xbf16> -> vector<1x16x16x288xbf16>
    %31 = vector.shape_cast %30 : vector<1x16x16x288xbf16> to vector<256x288xbf16>
    %c0_7 = arith.constant 0 : index
    %c0_8 = arith.constant 0 : index
    %32 = vector.load %arg4[%c0_7, %c0_8] : memref<288x32xbf16, #tpu.memory_space<vmem>>, vector<288x32xbf16>
    %cst_9 = arith.constant dense<0.000000e+00> : vector<256x32xf32>
    %33 = tpu.matmul %31, %32, %cst_9 {dimension_numbers = #tpu.dot_dimension_numbers<[1], [0], [0], [1], [0, 0, 1, 1], [], []>} : vector<256x288xbf16>, vector<288x32xbf16>, vector<256x32xf32> -> vector<256x32xf32>
    %34 = vector.shape_cast %33 : vector<256x32xf32> to vector<1x16x16x32xf32>
    %c0_10 = arith.constant 0 : index
    %c0_11 = arith.constant 0 : index
    %c0_12 = arith.constant 0 : index
    %c0_13 = arith.constant 0 : index
    %35 = vector.load %arg5[%c0_10, %c0_11, %c0_12, %c0_13] : memref<1x16x16x32xf32, #tpu.memory_space<vmem>>, vector<1x16x16x32xf32>
    tpu.vector_store %arg5[%c0_10, %c0_11, %c0_12, %c0_13], %34 {strides = array<i32>} : memref<1x16x16x32xf32, #tpu.memory_space<vmem>>, vector<1x16x16x32xf32>,
    %cst_14 = arith.constant dense<0.000000e+00> : vector<32xf32>
    %36 = vector.multi_reduction <add>, %33, %cst_14 [0] : vector<256x32xf32> to vector<32xf32>
    %37 = vector.shape_cast %36 : vector<32xf32> to vector<1x32xf32>
    %38 = arith.mulf %33, %33 : vector<256x32xf32>
    %cst_15 = arith.constant dense<0.000000e+00> : vector<32xf32>
    %39 = vector.multi_reduction <add>, %38, %cst_15 [0] : vector<256x32xf32> to vector<32xf32>
    %40 = vector.shape_cast %39 : vector<32xf32> to vector<1x32xf32>
    %cst_16 = arith.constant 0.000000e+00 : f32
    %41 = vector.broadcast %cst_16 : f32 to vector<6x32xf32>
    %42 = tpu.concatenate %37, %40, %41 in 0 : vector<1x32xf32>, vector<1x32xf32>, vector<6x32xf32> -> vector<8x32xf32>
    %43 = vector.shape_cast %42 : vector<8x32xf32> to vector<1x8x32xf32>
    %c0_17 = arith.constant 0 : index
    %c0_18 = arith.constant 0 : index
    %c0_19 = arith.constant 0 : index
    %44 = vector.load %arg6[%c0_17, %c0_18, %c0_19] : memref<1x8x32xf32, #tpu.memory_space<vmem>>, vector<1x8x32xf32>
    tpu.vector_store %arg6[%c0_17, %c0_18, %c0_19], %43 {strides = array<i32>} : memref<1x8x32xf32, #tpu.memory_space<vmem>>, vector<1x8x32xf32>,
    return
  }
  func.func @transform_0(%arg0: i32) -> (i32, i32, i32, i32) {
    %c0_i32 = arith.constant 0 : i32
    %c0_i32_0 = arith.constant 0 : i32
    %c0_i32_1 = arith.constant 0 : i32
    %c0_i32_2 = arith.constant 0 : i32
    return %arg0, %c0_i32, %c0_i32_0, %c0_i32_1 : i32, i32, i32, i32
  }
  func.func @transform_1(%arg0: i32) -> (i32, i32) {
    %c0_i32 = arith.constant 0 : i32
    %c0_i32_0 = arith.constant 0 : i32
    %c0_i32_1 = arith.constant 0 : i32
    return %c0_i32, %c0_i32_0 : i32, i32
  }
  func.func @transform_2(%arg0: i32) -> (i32, i32) {
    %c0_i32 = arith.constant 0 : i32
    %c0_i32_0 = arith.constant 0 : i32
    %c0_i32_1 = arith.constant 0 : i32
    return %c0_i32, %c0_i32_0 : i32, i32
  }
  func.func @transform_3(%arg0: i32) -> (i32, i32) {
    %c0_i32 = arith.constant 0 : i32
    %c0_i32_0 = arith.constant 0 : i32
    %c0_i32_1 = arith.constant 0 : i32
    return %c0_i32, %c0_i32_0 : i32, i32
  }
  func.func @transform_4(%arg0: i32) -> (i32, i32, i32, i32) {
    %c0_i32 = arith.constant 0 : i32
    %c0_i32_0 = arith.constant 0 : i32
    %c0_i32_1 = arith.constant 0 : i32
    %c0_i32_2 = arith.constant 0 : i32
    return %arg0, %c0_i32, %c0_i32_0, %c0_i32_1 : i32, i32, i32, i32
  }
  func.func @transform_5(%arg0: i32) -> (i32, i32, i32) {
    %c0_i32 = arith.constant 0 : i32
    %c0_i32_0 = arith.constant 0 : i32
    %c0_i32_1 = arith.constant 0 : i32
    return %arg0, %c0_i32, %c0_i32_0 : i32, i32, i32
  }
}

module attributes {stable_mosaic.version = 11 : i64} {
  func.func @_bn_add_relu_kernel(%arg0: i32, %arg1: memref<256x128xf32, #tpu.memory_space<vmem>>, %arg2: memref<256x128xf32, #tpu.memory_space<vmem>>, %arg3: memref<1x128xf32, #tpu.memory_space<vmem>>, %arg4: memref<1x128xf32, #tpu.memory_space<vmem>>, %arg5: memref<256x128xf32, #tpu.memory_space<vmem>>) attributes {dimension_semantics = [#tpu.dimension_semantics<parallel>], iteration_bounds = array<i64: 2>, scalar_prefetch = 0 : i64, scratch_operands = 0 : i64, tpu.core_type = #tpu.core_type<tc>, window_params = [{transform_indices = @transform_0, window_bounds = array<i64: 256, 128>}, {transform_indices = @transform_1, window_bounds = array<i64: 256, 128>}, {pipeline_mode = #tpu.pipeline_mode<synchronous>, transform_indices = @transform_2, window_bounds = array<i64: 1, 128>}, {pipeline_mode = #tpu.pipeline_mode<synchronous>, transform_indices = @transform_3, window_bounds = array<i64: 1, 128>}, {transform_indices = @transform_4, window_bounds = array<i64: 256, 128>}]} {
    %c0 = arith.constant 0 : index
    %c0_0 = arith.constant 0 : index
    %0 = vector.load %arg1[%c0, %c0_0] : memref<256x128xf32, #tpu.memory_space<vmem>>, vector<256x128xf32>
    %c0_1 = arith.constant 0 : index
    %c0_2 = arith.constant 0 : index
    %1 = vector.load %arg3[%c0_1, %c0_2] : memref<1x128xf32, #tpu.memory_space<vmem>>, vector<1x128xf32>
    %2 = vector.broadcast %1 : vector<1x128xf32> to vector<256x128xf32>
    %3 = arith.mulf %0, %2 : vector<256x128xf32>
    %c0_3 = arith.constant 0 : index
    %c0_4 = arith.constant 0 : index
    %4 = vector.load %arg4[%c0_3, %c0_4] : memref<1x128xf32, #tpu.memory_space<vmem>>, vector<1x128xf32>
    %5 = vector.broadcast %4 : vector<1x128xf32> to vector<256x128xf32>
    %6 = arith.addf %3, %5 : vector<256x128xf32>
    %c0_5 = arith.constant 0 : index
    %c0_6 = arith.constant 0 : index
    %7 = vector.load %arg2[%c0_5, %c0_6] : memref<256x128xf32, #tpu.memory_space<vmem>>, vector<256x128xf32>
    %8 = arith.addf %6, %7 : vector<256x128xf32>
    %cst = arith.constant 0.000000e+00 : f32
    %9 = vector.broadcast %cst : f32 to vector<256x128xf32>
    %10 = arith.maximumf %8, %9 : vector<256x128xf32>
    %c0_7 = arith.constant 0 : index
    %c0_8 = arith.constant 0 : index
    %11 = vector.load %arg5[%c0_7, %c0_8] : memref<256x128xf32, #tpu.memory_space<vmem>>, vector<256x128xf32>
    tpu.vector_store %arg5[%c0_7, %c0_8], %10 {strides = array<i32>} : memref<256x128xf32, #tpu.memory_space<vmem>>, vector<256x128xf32>,
    return
  }
  func.func @transform_0(%arg0: i32) -> (i32, i32) {
    %c0_i32 = arith.constant 0 : i32
    %c0_i32_0 = arith.constant 0 : i32
    return %arg0, %c0_i32 : i32, i32
  }
  func.func @transform_1(%arg0: i32) -> (i32, i32) {
    %c0_i32 = arith.constant 0 : i32
    %c0_i32_0 = arith.constant 0 : i32
    return %arg0, %c0_i32 : i32, i32
  }
  func.func @transform_2(%arg0: i32) -> (i32, i32) {
    %c0_i32 = arith.constant 0 : i32
    %c0_i32_0 = arith.constant 0 : i32
    %c0_i32_1 = arith.constant 0 : i32
    return %c0_i32, %c0_i32_0 : i32, i32
  }
  func.func @transform_3(%arg0: i32) -> (i32, i32) {
    %c0_i32 = arith.constant 0 : i32
    %c0_i32_0 = arith.constant 0 : i32
    %c0_i32_1 = arith.constant 0 : i32
    return %c0_i32, %c0_i32_0 : i32, i32
  }
  func.func @transform_4(%arg0: i32) -> (i32, i32) {
    %c0_i32 = arith.constant 0 : i32
    %c0_i32_0 = arith.constant 0 : i32
    return %arg0, %c0_i32 : i32, i32
  }
}

module attributes {stable_mosaic.version = 11 : i64} {
  func.func @_conv3_kernel(%arg0: i32, %arg1: memref<256x32xf32, #tpu.memory_space<vmem>>, %arg2: memref<1x32xf32, #tpu.memory_space<vmem>>, %arg3: memref<1x32xf32, #tpu.memory_space<vmem>>, %arg4: memref<32x128xbf16, #tpu.memory_space<vmem>>, %arg5: memref<256x128xf32, #tpu.memory_space<vmem>>, %arg6: memref<1x8x128xf32, #tpu.memory_space<vmem>>) attributes {dimension_semantics = [#tpu.dimension_semantics<parallel>], iteration_bounds = array<i64: 2>, scalar_prefetch = 0 : i64, scratch_operands = 0 : i64, tpu.core_type = #tpu.core_type<tc>, window_params = [{transform_indices = @transform_0, window_bounds = array<i64: 256, 32>}, {pipeline_mode = #tpu.pipeline_mode<synchronous>, transform_indices = @transform_1, window_bounds = array<i64: 1, 32>}, {pipeline_mode = #tpu.pipeline_mode<synchronous>, transform_indices = @transform_2, window_bounds = array<i64: 1, 32>}, {pipeline_mode = #tpu.pipeline_mode<synchronous>, transform_indices = @transform_3, window_bounds = array<i64: 32, 128>}, {transform_indices = @transform_4, window_bounds = array<i64: 256, 128>}, {transform_indices = @transform_5, window_bounds = array<i64: 1, 8, 128>}]} {
    %c0 = arith.constant 0 : index
    %c0_0 = arith.constant 0 : index
    %0 = vector.load %arg1[%c0, %c0_0] : memref<256x32xf32, #tpu.memory_space<vmem>>, vector<256x32xf32>
    %c0_1 = arith.constant 0 : index
    %c0_2 = arith.constant 0 : index
    %1 = vector.load %arg2[%c0_1, %c0_2] : memref<1x32xf32, #tpu.memory_space<vmem>>, vector<1x32xf32>
    %2 = vector.broadcast %1 : vector<1x32xf32> to vector<256x32xf32>
    %3 = arith.mulf %0, %2 : vector<256x32xf32>
    %c0_3 = arith.constant 0 : index
    %c0_4 = arith.constant 0 : index
    %4 = vector.load %arg3[%c0_3, %c0_4] : memref<1x32xf32, #tpu.memory_space<vmem>>, vector<1x32xf32>
    %5 = vector.broadcast %4 : vector<1x32xf32> to vector<256x32xf32>
    %6 = arith.addf %3, %5 : vector<256x32xf32>
    %cst = arith.constant 0.000000e+00 : f32
    %7 = vector.broadcast %cst : f32 to vector<256x32xf32>
    %8 = arith.maximumf %6, %7 : vector<256x32xf32>
    %9 = arith.truncf %8 : vector<256x32xf32> to vector<256x32xbf16>
    %c0_5 = arith.constant 0 : index
    %c0_6 = arith.constant 0 : index
    %10 = vector.load %arg4[%c0_5, %c0_6] : memref<32x128xbf16, #tpu.memory_space<vmem>>, vector<32x128xbf16>
    %cst_7 = arith.constant dense<0.000000e+00> : vector<256x128xf32>
    %11 = tpu.matmul %9, %10, %cst_7 {dimension_numbers = #tpu.dot_dimension_numbers<[1], [0], [0], [1], [0, 0, 1, 1], [], []>} : vector<256x32xbf16>, vector<32x128xbf16>, vector<256x128xf32> -> vector<256x128xf32>
    %c0_8 = arith.constant 0 : index
    %c0_9 = arith.constant 0 : index
    %12 = vector.load %arg5[%c0_8, %c0_9] : memref<256x128xf32, #tpu.memory_space<vmem>>, vector<256x128xf32>
    tpu.vector_store %arg5[%c0_8, %c0_9], %11 {strides = array<i32>} : memref<256x128xf32, #tpu.memory_space<vmem>>, vector<256x128xf32>,
    %cst_10 = arith.constant dense<0.000000e+00> : vector<128xf32>
    %13 = vector.multi_reduction <add>, %11, %cst_10 [0] : vector<256x128xf32> to vector<128xf32>
    %14 = vector.shape_cast %13 : vector<128xf32> to vector<1x128xf32>
    %15 = arith.mulf %11, %11 : vector<256x128xf32>
    %cst_11 = arith.constant dense<0.000000e+00> : vector<128xf32>
    %16 = vector.multi_reduction <add>, %15, %cst_11 [0] : vector<256x128xf32> to vector<128xf32>
    %17 = vector.shape_cast %16 : vector<128xf32> to vector<1x128xf32>
    %cst_12 = arith.constant 0.000000e+00 : f32
    %18 = vector.broadcast %cst_12 : f32 to vector<6x128xf32>
    %19 = tpu.concatenate %14, %17, %18 in 0 : vector<1x128xf32>, vector<1x128xf32>, vector<6x128xf32> -> vector<8x128xf32>
    %20 = vector.shape_cast %19 : vector<8x128xf32> to vector<1x8x128xf32>
    %c0_13 = arith.constant 0 : index
    %c0_14 = arith.constant 0 : index
    %c0_15 = arith.constant 0 : index
    %21 = vector.load %arg6[%c0_13, %c0_14, %c0_15] : memref<1x8x128xf32, #tpu.memory_space<vmem>>, vector<1x8x128xf32>
    tpu.vector_store %arg6[%c0_13, %c0_14, %c0_15], %20 {strides = array<i32>} : memref<1x8x128xf32, #tpu.memory_space<vmem>>, vector<1x8x128xf32>,
    return
  }
  func.func @transform_0(%arg0: i32) -> (i32, i32) {
    %c0_i32 = arith.constant 0 : i32
    %c0_i32_0 = arith.constant 0 : i32
    return %arg0, %c0_i32 : i32, i32
  }
  func.func @transform_1(%arg0: i32) -> (i32, i32) {
    %c0_i32 = arith.constant 0 : i32
    %c0_i32_0 = arith.constant 0 : i32
    %c0_i32_1 = arith.constant 0 : i32
    return %c0_i32, %c0_i32_0 : i32, i32
  }
  func.func @transform_2(%arg0: i32) -> (i32, i32) {
    %c0_i32 = arith.constant 0 : i32
    %c0_i32_0 = arith.constant 0 : i32
    %c0_i32_1 = arith.constant 0 : i32
    return %c0_i32, %c0_i32_0 : i32, i32
  }
  func.func @transform_3(%arg0: i32) -> (i32, i32) {
    %c0_i32 = arith.constant 0 : i32
    %c0_i32_0 = arith.constant 0 : i32
    %c0_i32_1 = arith.constant 0 : i32
    return %c0_i32, %c0_i32_0 : i32, i32
  }
  func.func @transform_4(%arg0: i32) -> (i32, i32) {
    %c0_i32 = arith.constant 0 : i32
    %c0_i32_0 = arith.constant 0 : i32
    return %arg0, %c0_i32 : i32, i32
  }
  func.func @transform_5(%arg0: i32) -> (i32, i32, i32) {
    %c0_i32 = arith.constant 0 : i32
    %c0_i32_0 = arith.constant 0 : i32
    %c0_i32_1 = arith.constant 0 : i32
    return %arg0, %c0_i32, %c0_i32_0 : i32, i32, i32
  }
}

</mosaic_0001>

<bundles_post_ra>
// kernel: bottleneck_forward.4
= control target key start
LH: loop header
LB: loop body
LE: loop exit
PB: predicated region body
PF: predicated region fallthrough
CT: control target
= control target key end

     0   :  { %9 = vsyncpa [#allocation3], 0  ;;  %s1421_s0 = inlined_call_operand.hbm [shape: f32[512,128], index: 0, kind: input, shape index: {}]   ;;  %s1422_s1 = inlined_call_operand.vmem [shape: bf16[128,32], index: 1, kind: input, shape index: {}]   ;;  %s1423_s2 = inlined_call_operand.vmem [shape: f32[512,32], index: 2, kind: output, shape index: {0}]   ;;  %s1424_s3 = inlined_call_operand.vmem [shape: f32[2,8,32], index: 3, kind: output, shape index: {1}]  }
   0x1   :  { %11 = vsyncpa [#allocation3 + $0x1], 0  ;;  %s1031_s12 = smov 0   ;;  %s1033_s13 = smov 0  }
   0x2   :  { %s1035_s14 = smov 0   ;;  %s1037_s15 = smov 0  }
   0x3 LB: > { %s1050_s16 = sadd.s32 4294967295, %s1006_s15   ;;  %s1053_s17 = sadd.s32 1, %s1006_s15   ;;  %s1006_s15 = sphi %s1037_s15, %s1433_s15   ;;  %s1002_s14 = sphi %s1035_s14, %s1432_s14   ;;  %s998_s13 = sphi %s1033_s13, %s1431_s13   ;;  %s994_s12 = sphi %s1031_s12, %s1430_s12  }
   0x4   : > { %s21_s18 = ssub.s32 %s1006_s15, %s1053_s17  ;;  %s24_s19 = sadd.s32 1, %s1002_s14 }
   0x5   : > { %p22_p0 = scmp.eq.s32.totalorder %s21_s18, 0  ;;  %p31_p1 = scmp.ne.s32.totalorder %s1002_s14, %s998_s13 }
   0x6   : > { %p32_p2 = scmp.eq.s32.totalorder %s1006_s15, 0  ;;  %p37_p3 = scmp.ne.s32.totalorder %s998_s13, %s994_s12 }
   0x7   : > { %s1063_s20 = scalar_select %p22_p0, %s1002_s14, %s24_s19  }
   0x8   : > { %p33_p4 = por %p32_p2, %p31_p1  ;;  %p38_p5 = scmp.eq.s32.totalorder %s1050_s16, 0 }
   0x9   : > { %p901_p6 = scmp.lt.s32.totalorder %s1006_s15, 2  ;;  %s137_s22 = sand.u32 1, %s1002_s14  }
   0xa   : > { %p1067_p7 = por %p38_p5, %p37_p3  ;;  %s788_s23 = sshll.u32 %s137_s22, 8 }
   0xb   : > { %s806_s24 = sshll.u32 %s1006_s15, 12  ;;  %s141_s28 = scalar_lea.vmem [#allocation2], %s788_s23 }
   0xc   : > { %s1426_s21 = scalar_select %p1067_p7, 1, 0 }
   0xd   : > { %s1076_s27 = scalar_lea.hbm %s1421_s0, %s806_s24  ;;  %s148_s29 = sshll.u32 %s141_s28, 4  ;;  %s1078_s29 = int_to_ptr.vmem [resolvable:$true] %s148_s29 }
   0xe   : > { %p1080_p8 = pnand %p901_p6, %p33_p4  ;;  %s1085_s4 = scalar_lea.sflag [#allocation3], %s137_s22 }
   0xf   : > { %s944_s5 = scalar_lea.hbm %s1076_s27, 4096  ;;  %s949_s8 = scalar_lea.hbm %s1421_s0, 8192 }
  0x10   : > { %p945_p10 = scmp.ne.s32.totalorder %s1076_s27, %s944_s5  ;;  %p946_p11 = pneg %p1080_p8 }
  0x11   : > { %p950_p0 = scmp.lt.s32.totalorder %s1076_s27, %s1421_s0  ;;  %p951_p1 = scmp.lt.s32.totalorder %s949_s8, %s944_s5 }
  0x12   : > { %p947_p12 = pnand %p946_p11, %p945_p10 }
  0x13   : > { %p952_p2 = por %p951_p1, %p950_p0 }
  0x14   : > { %p948_p13 = pneg %p947_p12 }
  0x16   : > { %p953_p3 = pnand %p952_p2, %p948_p13 }
  0x18   : > { %956 = shalt.err (!%p953_p3)
}
  0x19   : > { %s957_s11 = scalar_lea.vmem %s1078_s29, 4096  ;;  %s1008_s12 = smov [#allocation2]  }
  0x1a   : > { %p958_p4 = scmp.ne.s32.totalorder %s1078_s29, %s957_s11  ;;  %s962_s18 = sshll.u32 %s1008_s12, 4  ;;  %s963_s18 = int_to_ptr.vmem [resolvable:$false] %s962_s18 }
  0x1b   : > { %s964_s19 = scalar_lea.vmem %s963_s18, 8192  ;;  %p965_p10 = scmp.lt.s32.totalorder %s1078_s29, %s963_s18 }
  0x1c   : > { %p960_p5 = pnand %p958_p4, %p946_p11  ;;  %p966_p12 = scmp.lt.s32.totalorder %s964_s19, %s957_s11 }
  0x1e   : > { %p961_p6 = pneg %p960_p5  ;;  %p967_p9 = por %p966_p12, %p965_p10 }
  0x20   : > { %p968_p7 = pnand %p967_p9, %p961_p6 }
  0x22   : > { %971 = shalt.err (!%p968_p7)
}
  0x23   : > { %s1009_s22 = smov 128   ;;  %s1010_s23 = smov 8  }
  0x24   : > { %900 = dma.hbm_to_vmem [thread:$0]  (!%p1080_p8), %s1076_s27, 4096, %s1078_s29, %s1085_s4, %s1009_s22, %s1009_s22, %s1010_s23  }
  0x25   : > { %p156_p11 = scmp.lt.s32.totalorder %s1006_s15, 3  ;;  %p1428_p13 = scmp.ge.s32.totalorder %s1006_s15, 1 }
  0x27   : > { %p157_p0 = pnand %p1428_p13, %p156_p11 }
  0x28   : > { %s162_s24 = sand.u32 (!%p157_p0), 1, %s998_s13   ;;  %p1429_p7 = scmp.ne.s32.totalorder (!%p157_p0), %s1426_s21, 0 }
  0x29   : > { %160 = sbr.rel (%p157_p0) target bundleno = 359 (0x167), region = 28  ;;  %s792_s25 = sshll.u32 (!%p157_p0), %s162_s24, 8 }
  0x2a   : > { %s163_s26 = scalar_lea.sflag (!%p157_p0), [#allocation3], %s162_s24  ;;  %s1110_s28 = scalar_lea.vmem (!%p157_p0), [#allocation2], %s792_s25 }
  0x2e   : > { %989 = dma.done.wait (%p1429_p7), %s163_s26, 4096  }
  0x2f   : > { %991 = vsyncadd (%p1429_p7), %s163_s26, 4294963200  ;;  %v936_v0 = vld [vmem:[%s1422_s1 + $0x38] sm:$0xff]   ;;  %v937_v1 = vld [vmem:[%s1422_s1 + $0x30] sm:$0xff]   ;;  %s793_s22 = sshll.u32 %s1050_s16, 5  ;;  %vm478_vm0 = vcmask 261120   ;;  %p200_p9 = scmp.lt.s32.totalorder %s1050_s16, 1 }
  0x30   : > { %831 = vmatprep.subr.bf16.mxu0 %v936_v0  ;;  %879 = vmatprep.subr.bf16.mxu1 %v936_v0  ;;  %v938_v2 = vld [vmem:[%s1422_s1 + $0x28] sm:$0xff]   ;;  %v939_v3 = vld [vmem:[%s1422_s1 + $0x20] sm:$0xff]   ;;  %v940_v7 = vld [vmem:[%s1422_s1 + $0x18] sm:$0xff]   ;;  %p195_p8 = scmp.lt.s32.totalorder %s793_s22, 63  ;;  %vm681_vm1 = vcmask 1040384   ;;  %vm683_vm2 = vcmask 1041408  }
  0x31   : > { %832 = vmatpush3.bf16.msra.mxu0 %v936_v0  ;;  %887 = vmatpush3.bf16.msra.mxu1 %v936_v0  ;;  %v205_v4 = vld [vmem:[%s1110_s28] sm:$0xff]  ;;  %v206_v5 = vld [vmem:[%s1110_s28 + $0x8] sm:$0xff]  ;;  %v941_v11 = vld [vmem:[%s1422_s1 + $0x10] sm:$0xff]   ;;  %s1437_s16 = smov (!%p200_p9, %s1050_s16), 1 }
  0x32   : > { %833 = vmatprep.subr.bf16.mxu0 %v937_v1  ;;  %880 = vmatprep.subr.bf16.mxu1 %v937_v1  ;;  %v237_v6 = vpack.c.bf16 %v206_v5, %v205_v4  ;;  %v221_v8 = vld [vmem:[%s1110_s28 + $0x80] sm:$0xff]  ;;  %v222_v9 = vld [vmem:[%s1110_s28 + $0x88] sm:$0xff]  ;;  %v207_v14 = vld [vmem:[%s1110_s28 + $0x10] sm:$0xff]  ;;  %s1435_s22 = smov (!%p195_p8, %s793_s22), 63 }
  0x33   : > { %v245_v10 = vpack.c.bf16 %v222_v9, %v221_v8  ;;  %v942_v12 = vld [vmem:[%s1422_s1 + $0x8] sm:$0xff]   ;;  %v943_v13 = vld [vmem:[%s1422_s1] sm:$0xff]   ;;  %v208_v15 = vld [vmem:[%s1110_s28 + $0x18] sm:$0xff]  ;;  %s794_s23 = sshll.u32 %s1435_s22, 3 }
  0x34   : > { %847 = vmatprep.mubr.bf16.mxu0 %v237_v6  ;;  %v209_v16 = vld [vmem:[%s1110_s28 + $0x20] sm:$0xff]  ;;  %v210_v17 = vld [vmem:[%s1110_s28 + $0x28] sm:$0xff]  ;;  %v223_v18 = vld [vmem:[%s1110_s28 + $0x90] sm:$0xff]  ;;  %v238_v22 = vpack.c.bf16 %v208_v15, %v207_v14  ;;  %s1176_s26 = scalar_lea.vmem %s1423_s2, %s794_s23 }
  0x35   : > { %834 = vmatpush3.bf16.msra.mxu0 %v937_v1  ;;  %888 = vmatpush3.bf16.msra.mxu1 %v937_v1  ;;  %v224_v19 = vld [vmem:[%s1110_s28 + $0x98] sm:$0xff]  ;;  %v225_v20 = vld [vmem:[%s1110_s28 + $0xa0] sm:$0xff]  ;;  %v226_v21 = vld [vmem:[%s1110_s28 + $0xa8] sm:$0xff]  ;;  %v239_v23 = vpack.c.bf16 %v210_v17, %v209_v16 }
  0x36   : > { %835 = vmatprep.subr.bf16.mxu0 %v938_v2  ;;  %881 = vmatprep.subr.bf16.mxu1 %v938_v2  ;;  %v246_v24 = vpack.c.bf16 %v224_v19, %v223_v18  ;;  %v247_v25 = vpack.c.bf16 %v226_v21, %v225_v20  ;;  %v211_v26 = vld [vmem:[%s1110_s28 + $0x30] sm:$0xff]  ;;  %v212_v27 = vld [vmem:[%s1110_s28 + $0x38] sm:$0xff]  ;;  %v213_v28 = vld [vmem:[%s1110_s28 + $0x40] sm:$0xff] }
  0x37   : > { %863 = vmatprep.mubr.bf16.mxu1 %v245_v10  ;;  %v214_v29 = vld [vmem:[%s1110_s28 + $0x48] sm:$0xff]  ;;  %v227_v30 = vld [vmem:[%s1110_s28 + $0xb0] sm:$0xff]  ;;  %v228_v31 = vld [vmem:[%s1110_s28 + $0xb8] sm:$0xff]  ;;  %v240_v34 = vpack.c.bf16 %v212_v27, %v211_v26 }
  0x38   : > { %v229_v32 = vld [vmem:[%s1110_s28 + $0xc0] sm:$0xff]  ;;  %v230_v33 = vld [vmem:[%s1110_s28 + $0xc8] sm:$0xff]  ;;  %v241_v35 = vpack.c.bf16 %v214_v29, %v213_v28  ;;  %v248_v36 = vpack.c.bf16 %v228_v31, %v227_v30  ;;  %v215_v38 = vld [vmem:[%s1110_s28 + $0x50] sm:$0xff] }
  0x39   : > { %836 = vmatpush3.bf16.msra.mxu0 %v938_v2  ;;  %889 = vmatpush3.bf16.msra.mxu1 %v938_v2  ;;  %v249_v37 = vpack.c.bf16 %v230_v33, %v229_v32  ;;  %v216_v39 = vld [vmem:[%s1110_s28 + $0x58] sm:$0xff]  ;;  %v217_v40 = vld [vmem:[%s1110_s28 + $0x60] sm:$0xff]  ;;  %v218_v41 = vld [vmem:[%s1110_s28 + $0x68] sm:$0xff] }
  0x3a   : > { %837 = vmatprep.subr.bf16.mxu0 %v939_v3  ;;  %882 = vmatprep.subr.bf16.mxu1 %v939_v3  ;;  %v231_v42 = vld [vmem:[%s1110_s28 + $0xd0] sm:$0xff]  ;;  %v232_v43 = vld [vmem:[%s1110_s28 + $0xd8] sm:$0xff]  ;;  %v233_v44 = vld [vmem:[%s1110_s28 + $0xe0] sm:$0xff]  ;;  %v242_v46 = vpack.c.bf16 %v216_v39, %v215_v38  ;;  %v243_v47 = vpack.c.bf16 %v218_v41, %v217_v40 }
  0x3b   : > { %v234_v45 = vld [vmem:[%s1110_s28 + $0xe8] sm:$0xff]  ;;  %v250_v48 = vpack.c.bf16 %v232_v43, %v231_v42  ;;  %v219_v50 = vld [vmem:[%s1110_s28 + $0x70] sm:$0xff]  ;;  %v220_v51 = vld [vmem:[%s1110_s28 + $0x78] sm:$0xff] }
  0x3c   : > { %v251_v49 = vpack.c.bf16 %v234_v45, %v233_v44  ;;  %v235_v52 = vld [vmem:[%s1110_s28 + $0xf0] sm:$0xff]  ;;  %v236_v53 = vld [vmem:[%s1110_s28 + $0xf8] sm:$0xff]  ;;  %v244_v54 = vpack.c.bf16 %v220_v51, %v219_v50  ;;  %s795_s28 = sshll.u32 %s1437_s16, 3 }
  0x3d   : > { %838 = vmatpush3.bf16.msra.mxu0 %v939_v3  ;;  %890 = vmatpush3.bf16.msra.mxu1 %v939_v3  ;;  %v252_v55 = vpack.c.bf16 %v236_v53, %v235_v52  ;;  %s203_s15 = scalar_lea.vmem %s1424_s3, %s795_s28 }
  0x3e   : > { %839 = vmatprep.subr.bf16.mxu0 %v940_v7  ;;  %883 = vmatprep.subr.bf16.mxu1 %v940_v7 }
  0x41   : > { %840 = vmatpush3.bf16.msra.mxu0 %v940_v7  ;;  %891 = vmatpush3.bf16.msra.mxu1 %v940_v7 }
  0x42   : > { %841 = vmatprep.subr.bf16.mxu0 %v941_v11  ;;  %884 = vmatprep.subr.bf16.mxu1 %v941_v11 }
  0x45   : > { %842 = vmatpush3.bf16.msra.mxu0 %v941_v11  ;;  %892 = vmatpush3.bf16.msra.mxu1 %v941_v11 }
  0x46   : > { %843 = vmatprep.subr.bf16.mxu0 %v942_v12  ;;  %885 = vmatprep.subr.bf16.mxu1 %v942_v12 }
  0x49   : > { %844 = vmatpush3.bf16.msra.mxu0 %v942_v12  ;;  %893 = vmatpush3.bf16.msra.mxu1 %v942_v12 }
  0x4a   : > { %845 = vmatprep.subr.bf16.mxu0 %v943_v13  ;;  %886 = vmatprep.subr.bf16.mxu1 %v943_v13 }
  0x4d   : > { %846 = vmatpush3.bf16.msra.mxu0 %v943_v13  ;;  %894 = vmatpush3.bf16.msra.mxu1 %v943_v13 }
  0x50   : > { %848 = vmatmul.mubr.bf16.vlgmr.msra.gmra.mxu0 %v238_v22  ;;  %864 = vmatmul.mubr.bf16.vlgmr.msra.gmra.mxu1 %v246_v24 }
  0x51   : > { %851 = vmatprep.mubr.bf16.mxu0 %v239_v23  ;;  %867 = vmatprep.mubr.bf16.mxu1 %v247_v25 }
  0x58   : > { %852 = vmatmul.mubr.bf16.gmra.mxu0 %v240_v34  ;;  %868 = vmatmul.mubr.bf16.gmra.mxu1 %v248_v36 }
  0x59   : > { %855 = vmatprep.mubr.bf16.mxu0 %v241_v35  ;;  %871 = vmatprep.mubr.bf16.mxu1 %v249_v37 }
  0x60   : > { %856 = vmatmul.mubr.bf16.gmra.mxu0 %v242_v46  ;;  %872 = vmatmul.mubr.bf16.gmra.mxu1 %v250_v48 }
  0x61   : > { %859 = vmatprep.mubr.bf16.mxu0 %v243_v47  ;;  %875 = vmatprep.mubr.bf16.mxu1 %v251_v49 }
  0x68   : > { %860 = vmatmul.mubr.bf16.gmra.mxu0 %v244_v54  ;;  %876 = vmatmul.mubr.bf16.gmra.mxu1 %v252_v55 }
 0x110   : > { %v849_v56 = vpop.f32.mrf.mxu0  ;;  %v1180_v57 = vpop.f32.mrf.mxu1 }
 0x111   : > { %481 = vst.msk [vmem:[%s1176_s26 + $0x10] sm:$0xff] %vm478_vm0, %v849_v56  ;;  %497 = vst.msk [vmem:[%s1176_s26 + $0x90] sm:$0xff] %vm478_vm0, %v1180_v57  ;;  %v582_v0 = vmul.f32 %v849_v56, %v849_v56  ;;  %v514_v7 = vsel %vm478_vm0, %v849_v56, 0.0 }
 0x112   : > { %v351_v58 = vpop.f32.mrf.mxu0  ;;  %v1187_v59 = vpop.f32.mrf.mxu1 }
 0x113   : > { %479 = vst.msk [vmem:[%s1176_s26] sm:$0xff] %vm478_vm0, %v351_v58  ;;  %495 = vst.msk [vmem:[%s1176_s26 + $0x80] sm:$0xff] %vm478_vm0, %v1187_v59  ;;  %v580_v61 = vmul.f32 %v351_v58, %v351_v58  ;;  %v511_v1 = vsel %vm478_vm0, %v351_v58, 0.0  ;;  %v615_v15 = vsel %vm478_vm0, %v582_v0, 0.0 }
 0x114   : > { %v850_v60 = vpop.f32.mrf.mxu0  ;;  %v1194_v62 = vpop.f32.mrf.mxu1 }
 0x115   : > { %482 = vst.msk [vmem:[%s1176_s26 + $0x18] sm:$0xff] %vm478_vm0, %v850_v60  ;;  %498 = vst.msk [vmem:[%s1176_s26 + $0x98] sm:$0xff] %vm478_vm0, %v1194_v62  ;;  %v612_v8 = vsel %vm478_vm0, %v580_v61, 0.0  ;;  %v583_v9 = vmul.f32 %v850_v60, %v850_v60  ;;  %v516_v16 = vsel %vm478_vm0, %v850_v60, 0.0 }
 0x116   : > { %v354_v63 = vpop.f32.mrf.mxu0  ;;  %v1203_v4 = vpop.f32.mrf.mxu1 }
 0x117   : > { %480 = vst.msk [vmem:[%s1176_s26 + $0x8] sm:$0xff] %vm478_vm0, %v354_v63  ;;  %v512_v2 = vsel %vm478_vm0, %v354_v63, 0.0  ;;  %v581_v3 = vmul.f32 %v354_v63, %v354_v63  ;;  %496 = vst.msk [vmem:[%s1176_s26 + $0x88] sm:$0xff] %vm478_vm0, %v1203_v4  ;;  %v617_v22 = vsel %vm478_vm0, %v583_v9, 0.0 }
 0x118   : > { %v513_v5 = vadd.f32 %v512_v2, %v511_v1  ;;  %v853_v6 = vpop.f32.mrf.mxu0  ;;  %v1213_v11 = vpop.f32.mrf.mxu1 }
 0x119   : > { %v613_v10 = vsel %vm478_vm0, %v581_v3, 0.0  ;;  %485 = vst.msk [vmem:[%s1176_s26 + $0x30] sm:$0xff] %vm478_vm0, %v853_v6  ;;  %501 = vst.msk [vmem:[%s1176_s26 + $0xb0] sm:$0xff] %vm478_vm0, %v1213_v11  ;;  %v586_v28 = vmul.f32 %v853_v6, %v853_v6  ;;  %v522_v36 = vsel %vm478_vm0, %v853_v6, 0.0 }
 0x11a   : > { %v515_v12 = vadd.f32 %v514_v7, %v513_v5  ;;  %v614_v13 = vadd.f32 %v613_v10, %v612_v8  ;;  %v367_v14 = vpop.f32.mrf.mxu0  ;;  %v1222_v18 = vpop.f32.mrf.mxu1 }
 0x11b   : > { %483 = vst.msk [vmem:[%s1176_s26 + $0x20] sm:$0xff] %vm478_vm0, %v367_v14  ;;  %v584_v17 = vmul.f32 %v367_v14, %v367_v14  ;;  %499 = vst.msk [vmem:[%s1176_s26 + $0xa0] sm:$0xff] %vm478_vm0, %v1222_v18  ;;  %v518_v23 = vsel %vm478_vm0, %v367_v14, 0.0  ;;  %v623_v43 = vsel %vm478_vm0, %v586_v28, 0.0 }
 0x11c   : > { %v616_v19 = vadd.f32 %v615_v15, %v614_v13  ;;  %v517_v20 = vadd.f32 %v516_v16, %v515_v12  ;;  %v854_v21 = vpop.f32.mrf.mxu0  ;;  %v1231_v24 = vpop.f32.mrf.mxu1 }
 0x11d   : > { %486 = vst.msk [vmem:[%s1176_s26 + $0x38] sm:$0xff] %vm478_vm0, %v854_v21  ;;  %502 = vst.msk [vmem:[%s1176_s26 + $0xb8] sm:$0xff] %vm478_vm0, %v1231_v24  ;;  %v619_v29 = vsel %vm478_vm0, %v584_v17, 0.0  ;;  %v587_v37 = vmul.f32 %v854_v21, %v854_v21  ;;  %v524_v44 = vsel %vm478_vm0, %v854_v21, 0.0 }
 0x11e   : > { %v519_v25 = vadd.f32 %v518_v23, %v517_v20  ;;  %v618_v26 = vadd.f32 %v617_v22, %v616_v19  ;;  %v370_v27 = vpop.f32.mrf.mxu0  ;;  %v1240_v32 = vpop.f32.mrf.mxu1 }
 0x11f   : > { %484 = vst.msk [vmem:[%s1176_s26 + $0x28] sm:$0xff] %vm478_vm0, %v370_v27  ;;  %v520_v30 = vsel %vm478_vm0, %v370_v27, 0.0  ;;  %v585_v31 = vmul.f32 %v370_v27, %v370_v27  ;;  %500 = vst.msk [vmem:[%s1176_s26 + $0xa8] sm:$0xff] %vm478_vm0, %v1240_v32  ;;  %v625_v50 = vsel %vm478_vm0, %v587_v37, 0.0 }
 0x120   : > { %v620_v33 = vadd.f32 %v619_v29, %v618_v26  ;;  %v521_v34 = vadd.f32 %v520_v30, %v519_v25  ;;  %v857_v35 = vpop.f32.mrf.mxu0  ;;  %v1249_v39 = vpop.f32.mrf.mxu1 }
 0x121   : > { %v621_v38 = vsel %vm478_vm0, %v585_v31, 0.0  ;;  %489 = vst.msk [vmem:[%s1176_s26 + $0x50] sm:$0xff] %vm478_vm0, %v857_v35  ;;  %505 = vst.msk [vmem:[%s1176_s26 + $0xd0] sm:$0xff] %vm478_vm0, %v1249_v39  ;;  %v590_v56 = vmul.f32 %v857_v35, %v857_v35  ;;  %v530_v3 = vsel %vm478_vm0, %v857_v35, 0.0 }
 0x122   : > { %v523_v40 = vadd.f32 %v522_v36, %v521_v34  ;;  %v622_v41 = vadd.f32 %v621_v38, %v620_v33  ;;  %v383_v42 = vpop.f32.mrf.mxu0  ;;  %v1258_v46 = vpop.f32.mrf.mxu1 }
 0x123   : > { %487 = vst.msk [vmem:[%s1176_s26 + $0x40] sm:$0xff] %vm478_vm0, %v383_v42  ;;  %v588_v45 = vmul.f32 %v383_v42, %v383_v42  ;;  %503 = vst.msk [vmem:[%s1176_s26 + $0xc0] sm:$0xff] %vm478_vm0, %v1258_v46  ;;  %v526_v51 = vsel %vm478_vm0, %v383_v42, 0.0  ;;  %v631_v12 = vsel %vm478_vm0, %v590_v56, 0.0 }
 0x124   : > { %v624_v47 = vadd.f32 %v623_v43, %v622_v41  ;;  %v525_v48 = vadd.f32 %v524_v44, %v523_v40  ;;  %v858_v49 = vpop.f32.mrf.mxu0  ;;  %v1267_v52 = vpop.f32.mrf.mxu1  ;;  %v596_v43 = vmul.f32 %v1187_v59, %v1187_v59 }
 0x125   : > { %490 = vst.msk [vmem:[%s1176_s26 + $0x58] sm:$0xff] %vm478_vm0, %v858_v49  ;;  %506 = vst.msk [vmem:[%s1176_s26 + $0xd8] sm:$0xff] %vm478_vm0, %v1267_v52  ;;  %v627_v58 = vsel %vm478_vm0, %v588_v45, 0.0  ;;  %v591_v5 = vmul.f32 %v858_v49, %v858_v49  ;;  %v532_v13 = vsel %vm478_vm0, %v858_v49, 0.0  ;;  %v597_v49 = vmul.f32 %v1203_v4, %v1203_v4 }
 0x126   : > { %v527_v53 = vadd.f32 %v526_v51, %v525_v48  ;;  %v626_v54 = vadd.f32 %v625_v50, %v624_v47  ;;  %v386_v55 = vpop.f32.mrf.mxu0  ;;  %v1276_v63 = vpop.f32.mrf.mxu1  ;;  %v542_v48 = vsel %vm478_vm0, %v1187_v59, 0.0  ;;  %v599_v59 = vmul.f32 %v1194_v62, %v1194_v62 }
 0x127   : > { %488 = vst.msk [vmem:[%s1176_s26 + $0x48] sm:$0xff] %vm478_vm0, %v386_v55  ;;  %v528_v60 = vsel %vm478_vm0, %v386_v55, 0.0  ;;  %v589_v61 = vmul.f32 %v386_v55, %v386_v55  ;;  %504 = vst.msk [vmem:[%s1176_s26 + $0xc8] sm:$0xff] %vm478_vm0, %v1276_v63  ;;  %v633_v20 = vsel %vm478_vm0, %v591_v5, 0.0  ;;  %v544_v55 = vsel %vm478_vm0, %v1203_v4, 0.0 }
 0x128   : > { %v628_v0 = vadd.f32 %v627_v58, %v626_v54  ;;  %v529_v1 = vadd.f32 %v528_v60, %v527_v53  ;;  %v861_v2 = vpop.f32.mrf.mxu0  ;;  %v1285_v7 = vpop.f32.mrf.mxu1  ;;  %v598_v53 = vmul.f32 %v1180_v57, %v1180_v57  ;;  %v643_v54 = vsel %vm478_vm0, %v596_v43, 0.0 }
 0x129   : > { %v629_v6 = vsel %vm478_vm0, %v589_v61, 0.0  ;;  %493 = vst.msk [vmem:[%s1176_s26 + $0x70] sm:$0xff] %vm478_vm0, %v861_v2  ;;  %509 = vst.msk [vmem:[%s1176_s26 + $0xf0] sm:$0xff] %vm478_vm0, %v1285_v7  ;;  %v594_v27 = vmul.f32 %v861_v2, %v861_v2  ;;  %v538_v35 = vsel %vm478_vm0, %v861_v2, 0.0  ;;  %v546_v60 = vsel %vm478_vm0, %v1180_v57, 0.0 }
 0x12a   : > { %v531_v8 = vadd.f32 %v530_v3, %v529_v1  ;;  %v630_v9 = vadd.f32 %v629_v6, %v628_v0  ;;  %v399_v10 = vpop.f32.mrf.mxu0  ;;  %v1294_v15 = vpop.f32.mrf.mxu1  ;;  %v645_v61 = vsel %vm478_vm0, %v597_v49, 0.0  ;;  %v647_v2 = vsel %vm478_vm0, %v598_v53, 0.0 }
 0x12b   : > { %491 = vst.msk [vmem:[%s1176_s26 + $0x60] sm:$0xff] %vm478_vm0, %v399_v10  ;;  %v592_v14 = vmul.f32 %v399_v10, %v399_v10  ;;  %507 = vst.msk [vmem:[%s1176_s26 + $0xe0] sm:$0xff] %vm478_vm0, %v1294_v15  ;;  %v534_v21 = vsel %vm478_vm0, %v399_v10, 0.0  ;;  %v639_v41 = vsel %vm478_vm0, %v594_v27, 0.0  ;;  %v548_v3 = vsel %vm478_vm0, %v1194_v62, 0.0 }
 0x12c   : > { %v632_v16 = vadd.f32 %v631_v12, %v630_v9  ;;  %v533_v17 = vadd.f32 %v532_v13, %v531_v8  ;;  %v862_v19 = vpop.f32.mrf.mxu0  ;;  %v1303_v22 = vpop.f32.mrf.mxu1  ;;  %v600_v4 = vmul.f32 %v1222_v18, %v1222_v18  ;;  %v649_v8 = vsel %vm478_vm0, %v599_v59, 0.0 }
 0x12d   : > { %494 = vst.msk [vmem:[%s1176_s26 + $0x78] sm:$0xff] %vm478_vm0, %v862_v19  ;;  %510 = vst.msk [vmem:[%s1176_s26 + $0xf8] sm:$0xff] %vm478_vm0, %v1303_v22  ;;  %v635_v28 = vsel %vm478_vm0, %v592_v14, 0.0  ;;  %v595_v36 = vmul.f32 %v862_v19, %v862_v19  ;;  %v540_v42 = vsel %vm478_vm0, %v862_v19, 0.0  ;;  %v550_v57 = vsel %vm478_vm0, %v1222_v18, 0.0 }
 0x12e   : > { %v535_v23 = vadd.f32 %v534_v21, %v533_v17  ;;  %v634_v25 = vadd.f32 %v633_v20, %v632_v16  ;;  %v402_v26 = vpop.f32.mrf.mxu0  ;;  %v1312_v31 = vpop.f32.mrf.mxu1  ;;  %v601_v9 = vmul.f32 %v1240_v32, %v1240_v32  ;;  %v602_v13 = vmul.f32 %v1213_v11, %v1213_v11 }
 0x12f   : > { %492 = vst.msk [vmem:[%s1176_s26 + $0x68] sm:$0xff] %vm478_vm0, %v402_v26  ;;  %v536_v29 = vsel %vm478_vm0, %v402_v26, 0.0  ;;  %v593_v30 = vmul.f32 %v402_v26, %v402_v26  ;;  %508 = vst.msk [vmem:[%s1176_s26 + $0xe8] sm:$0xff] %vm478_vm0, %v1312_v31  ;;  %v641_v47 = vsel %vm478_vm0, %v595_v36, 0.0  ;;  %v651_v62 = vsel %vm478_vm0, %v600_v4, 0.0 }
 0x130   : > { %v636_v33 = vadd.f32 %v635_v28, %v634_v25  ;;  %v537_v34 = vadd.f32 %v536_v29, %v535_v23  ;;  %v552_v14 = vsel %vm478_vm0, %v1240_v32, 0.0  ;;  %v554_v19 = vsel %vm478_vm0, %v1213_v11, 0.0 }
 0x131   : > { %v637_v37 = vsel %vm478_vm0, %v593_v30, 0.0  ;;  %v603_v18 = vmul.f32 %v1231_v24, %v1231_v24  ;;  %v653_v20 = vsel %vm478_vm0, %v601_v9, 0.0  ;;  %v655_v25 = vsel %vm478_vm0, %v602_v13, 0.0 }
 0x132   : > { %v539_v38 = vadd.f32 %v538_v35, %v537_v34  ;;  %v638_v40 = vadd.f32 %v637_v37, %v636_v33  ;;  %v556_v26 = vsel %vm478_vm0, %v1231_v24, 0.0  ;;  %v604_v32 = vmul.f32 %v1258_v46, %v1258_v46 }
 0x133   : > { %v657_v29 = vsel %vm478_vm0, %v603_v18, 0.0  ;;  %v558_v11 = vsel %vm478_vm0, %v1258_v46, 0.0  ;;  %v605_v30 = vmul.f32 %v1276_v63, %v1276_v63  ;;  %v606_v35 = vmul.f32 %v1249_v39, %v1249_v39 }
 0x134   : > { %v541_v44 = vadd.f32 %v540_v42, %v539_v38  ;;  %v640_v45 = vadd.f32 %v639_v41, %v638_v40  ;;  %v659_v24 = vsel %vm478_vm0, %v604_v32, 0.0  ;;  %v560_v36 = vsel %vm478_vm0, %v1276_v63, 0.0 }
 0x135   : > { %v562_v40 = vsel %vm478_vm0, %v1249_v39, 0.0  ;;  %v607_v46 = vmul.f32 %v1267_v52, %v1267_v52  ;;  %v661_v41 = vsel %vm478_vm0, %v605_v30, 0.0  ;;  %v608_v63 = vmul.f32 %v1294_v15, %v1294_v15 }
 0x136   : > { %v642_v50 = vadd.f32 %v641_v47, %v640_v45  ;;  %v543_v51 = vadd.f32 %v542_v48, %v541_v44  ;;  %v663_v44 = vsel %vm478_vm0, %v606_v35, 0.0  ;;  %v564_v45 = vsel %vm478_vm0, %v1267_v52, 0.0 }
 0x137   : > { %v665_v49 = vsel %vm478_vm0, %v607_v46, 0.0  ;;  %v566_v39 = vsel %vm478_vm0, %v1294_v15, 0.0  ;;  %v667_v52 = vsel %vm478_vm0, %v608_v63, 0.0  ;;  %v611_v15 = vmul.f32 %v1303_v22, %v1303_v22 }
 0x138   : > { %v545_v56 = vadd.f32 %v544_v55, %v543_v51  ;;  %v644_v58 = vadd.f32 %v643_v54, %v642_v50  ;;  %v609_v50 = vmul.f32 %v1312_v31, %v1312_v31  ;;  %v610_v54 = vmul.f32 %v1285_v7, %v1285_v7 }
 0x139   : > { %v568_v55 = vsel %vm478_vm0, %v1312_v31, 0.0  ;;  %v673_v4 = vsel %vm478_vm0, %v611_v15, 0.0 }
 0x13a   : > { %v547_v0 = vadd.f32 %v546_v60, %v545_v56  ;;  %v646_v1 = vadd.f32 %v645_v61, %v644_v58  ;;  %v570_v60 = vsel %vm478_vm0, %v1285_v7, 0.0  ;;  %v669_v59 = vsel %vm478_vm0, %v609_v50, 0.0 }
 0x13c   : > { %v648_v5 = vadd.f32 %v647_v2, %v646_v1  ;;  %v549_v6 = vadd.f32 %v548_v3, %v547_v0  ;;  %v671_v1 = vsel %vm478_vm0, %v610_v54, 0.0  ;;  %v572_v2 = vsel %vm478_vm0, %v1303_v22, 0.0 }
 0x13e   : > { %v551_v10 = vadd.f32 %v550_v57, %v549_v6  ;;  %v650_v12 = vadd.f32 %v649_v8, %v648_v5 }
 0x140   : > { %v652_v16 = vadd.f32 %v651_v62, %v650_v12  ;;  %v553_v17 = vadd.f32 %v552_v14, %v551_v10 }
 0x142   : > { %v555_v21 = vadd.f32 %v554_v19, %v553_v17  ;;  %v654_v23 = vadd.f32 %v653_v20, %v652_v16 }
 0x144   : > { %v656_v27 = vadd.f32 %v655_v25, %v654_v23  ;;  %v557_v28 = vadd.f32 %v556_v26, %v555_v21 }
 0x146   : > { %v559_v33 = vadd.f32 %v558_v11, %v557_v28  ;;  %v658_v34 = vadd.f32 %v657_v29, %v656_v27 }
 0x148   : > { %v660_v37 = vadd.f32 %v659_v24, %v658_v34  ;;  %v561_v38 = vadd.f32 %v560_v36, %v559_v33 }
 0x14a   : > { %v563_v42 = vadd.f32 %v562_v40, %v561_v38  ;;  %v662_v43 = vadd.f32 %v661_v41, %v660_v37 }
 0x14c   : > { %v664_v47 = vadd.f32 %v663_v44, %v662_v43  ;;  %v565_v48 = vadd.f32 %v564_v45, %v563_v42 }
 0x14e   : > { %v567_v51 = vadd.f32 %v566_v39, %v565_v48  ;;  %v666_v53 = vadd.f32 %v665_v49, %v664_v47 }
 0x150   : > { %v668_v56 = vadd.f32 %v667_v52, %v666_v53  ;;  %v569_v58 = vadd.f32 %v568_v55, %v567_v51 }
 0x152   : > { %v571_v61 = vadd.f32 %v570_v60, %v569_v58  ;;  %v670_v0 = vadd.f32 %v669_v59, %v668_v56 }
 0x154   : > { %v573_v3 = vadd.f32 %v572_v2, %v571_v61  ;;  %v672_v31 = vadd.f32 %v671_v1, %v670_v0 }
 0x156   : > { %v574_v5 = vrot.slane %v573_v3, 4  ;;  %v674_v6 = vadd.f32 %v673_v4, %v672_v31 }
 0x158   : > { %v575_v7 = vadd.f32 %v574_v5, %v573_v3  ;;  %v675_v8 = vrot.slane %v674_v6, 4 }
 0x15a   : > { %v576_v57 = vrot.slane %v575_v7, 2  ;;  %v676_v9 = vadd.f32 %v675_v8, %v674_v6 }
 0x15c   : > { %v577_v10 = vadd.f32 %v576_v57, %v575_v7  ;;  %v677_v12 = vrot.slane %v676_v9, 2 }
 0x15e   : > { %v578_v13 = vrot.slane %v577_v10, 1  ;;  %v678_v62 = vadd.f32 %v677_v12, %v676_v9 }
 0x160   : > { %v679_v14 = vrot.slane %v678_v62, 1  ;;  %v579_v22 = vadd.f32 %v578_v13, %v577_v10 }
 0x162   : > { %v680_v16 = vadd.f32 %v679_v14, %v678_v62 }
 0x164   : > { %v682_v17 = vsel %vm681_vm1, %v579_v22, %v680_v16 }
 0x165   : > { %v684_v19 = vsel %vm683_vm2, %v682_v17, 0.0 }
 0x166   : > { %685 = vst.msk [vmem:[%s203_s15] sm:$0xff] %vm478_vm0, %v684_v19 }
 0x167 PF: > { %p14_p1 = scmp.ge.s32.totalorder %s1053_s17, 4   ;;  %s1430_s12 = smov %s998_s13 }
 0x168   : > { %s1431_s13 = smov %s1002_s14  ;;  %s1432_s14 = smov %s1063_s20 }
 0x169   : > { %s1433_s15 = smov %s1053_s17  ;;  %16 = sbr.rel (!%p14_p1) target bundleno = 3 (0x3), region = 80 }
 0x16e   :  { %722 = vsyncpa [#allocation3], 1 }
 0x16f   :  { %724 = vsyncpa [#allocation3 + $0x1], 1 }

// kernel: bottleneck_forward.7
= control target key start
LH: loop header
LB: loop body
LE: loop exit
PB: predicated region body
PF: predicated region fallthrough
CT: control target
= control target key end

     0   :  { %9 = vsyncpa [#allocation3], 0  ;;  %s983_s0 = inlined_call_operand.vmem [shape: f32[512,128], index: 0, kind: input, shape index: {}]   ;;  %s984_s1 = inlined_call_operand.vmem [shape: f32[512,128], index: 1, kind: input, shape index: {}]   ;;  %s985_s2 = inlined_call_operand.vmem [shape: f32[1,128], index: 2, kind: input, shape index: {}]   ;;  %s986_s3 = inlined_call_operand.vmem [shape: f32[1,128], index: 3, kind: input, shape index: {}]   ;;  %s987_s4 = inlined_call_operand.hbm [shape: f32[512,128], index: 4, kind: output, shape index: {}]  }
   0x1   :  { %11 = vsyncpa [#allocation3 + $0x1], 0  ;;  %s695_s15 = smov 0   ;;  %s697_s16 = smov 0  }
   0x2   :  { %s699_s17 = smov 0   ;;  %s701_s18 = smov 0  }
   0x3 LB: > { %s716_s19 = sadd.s32 4294967295, %s665_s18   ;;  %s547_s20 = sadd.s32 4294967294, %s665_s18   ;;  %s665_s18 = sphi %s701_s18, %s993_s18   ;;  %s661_s17 = sphi %s699_s17, %s992_s17   ;;  %s657_s16 = sphi %s697_s16, %s991_s16   ;;  %s653_s15 = sphi %s695_s15, %s990_s15  }
   0x4   : > { %s720_s21 = sadd.s32 1, %s665_s18   ;;  %s118_s22 = sadd.s32 1, %s661_s17 }
   0x5   : > { %s115_s23 = ssub.s32 %s665_s18, %s720_s21  ;;  %p128_p0 = scmp.ne.s32.totalorder %s661_s17, %s657_s16 }
   0x6   : > { %p116_p1 = scmp.eq.s32.totalorder %s115_s23, 0  ;;  %p129_p2 = scmp.eq.s32.totalorder %s716_s19, 1 }
   0x7   : > { %p134_p3 = scmp.ne.s32.totalorder %s657_s16, %s653_s15  ;;  %p135_p4 = scmp.eq.s32.totalorder %s547_s20, 1 }
   0x8   : > { %s731_s24 = scalar_select %p116_p1, %s661_s17, %s118_s22  }
   0x9   : > { %p733_p5 = por %p129_p2, %p128_p0  ;;  %p737_p6 = por %p135_p4, %p134_p3 }
   0xa   : > { %p550_p7 = scmp.ge.s32.totalorder %s665_s18, 1  ;;  %p177_p8 = scmp.lt.s32.totalorder %s665_s18, 3 }
   0xc   : > { %p178_p9 = pnand %p550_p7, %p177_p8 }
   0xd   : > { %s552_s27 = sshll.u32 (!%p178_p9), %s716_s19, 5  ;;  %s205_s11 = sand.u32 (!%p178_p9), 1, %s657_s16  }
   0xe   : > { %181 = sbr.rel (%p178_p9) target bundleno = 74 (0x4a), region = 36  ;;  %p209_p10 = scmp.lt.s32.totalorder (!%p178_p9), %s552_s27, 63 }
   0xf   : > { %s777_s14 = sshll.u32 (!%p178_p9), %s205_s11, 8  ;;  %s563_s22 = sshll.u32 (!%p178_p9), %s716_s19, 12 }
  0x10   : > { %s807_s20 = scalar_lea.vmem (!%p178_p9), [#allocation2], %s777_s14  ;;  %s934_s29 = scalar_lea.hbm (!%p178_p9), %s987_s4, %s563_s22 }
  0x11   : > { %s473_s23 = sshll.u32 (!%p178_p9), %s807_s20, 4  ;;  %s943_s19 = scalar_lea.sflag (!%p178_p9), [#allocation3], %s205_s11  ;;  %s936_s23 = int_to_ptr.vmem [resolvable:$true] %s473_s23 }
  0x12   : > { %s605_s30 = scalar_lea.vmem (!%p178_p9), %s936_s23, 4096  ;;  %s667_s5 = smov (!%p178_p9), [#allocation2]  }
  0x13   : > { %s995_s27 = smov (!%p209_p10, %s552_s27), 63  ;;  %v747_v0 = vld [vmem:[%s985_s2] ss:$0 sm:$0xff]  ;;  %p606_p11 = scmp.ne.s32.totalorder %s936_s23, %s605_s30 }
  0x14   : > { %s553_s28 = sshll.u32 %s995_s27, 3  ;;  %v764_v2 = vld [vmem:[%s986_s3] ss:$0 sm:$0xff]  ;;  %s609_s6 = sshll.u32 %s667_s5, 4  ;;  %s610_s6 = int_to_ptr.vmem [resolvable:$false] %s609_s6 }
  0x15   : > { %s752_s7 = scalar_lea.vmem %s983_s0, %s553_s28  ;;  %s757_s10 = scalar_lea.vmem %s984_s1, %s553_s28 }
  0x16   : > { %v221_v1 = vld [vmem:[%s752_s7] sm:$0xff]  ;;  %v222_v3 = vld [vmem:[%s752_s7 + $0x8] sm:$0xff]  ;;  %v223_v7 = vld [vmem:[%s752_s7 + $0x10] sm:$0xff]  ;;  %p607_p12 = pnand %p606_p11, %p733_p5  ;;  %p612_p0 = scmp.lt.s32.totalorder %s936_s23, %s610_s6 }
  0x17   : > { %v260_v4 = vmul.f32 %v747_v0, %v221_v1  ;;  %v331_v5 = vld [vmem:[%s757_s10] sm:$0xff]  ;;  %v261_v6 = vmul.f32 %v747_v0, %v222_v3  ;;  %v332_v8 = vld [vmem:[%s757_s10 + $0x8] sm:$0xff]  ;;  %v262_v9 = vmul.f32 %v747_v0, %v223_v7  ;;  %v224_v10 = vld [vmem:[%s752_s7 + $0x18] sm:$0xff] }
  0x18   : > { %v225_v11 = vld [vmem:[%s752_s7 + $0x20] sm:$0xff]  ;;  %v333_v14 = vld [vmem:[%s757_s10 + $0x10] sm:$0xff]  ;;  %v263_v15 = vmul.f32 %v747_v0, %v224_v10  ;;  %v334_v16 = vld [vmem:[%s757_s10 + $0x18] sm:$0xff]  ;;  %p608_p13 = pneg %p607_p12 }
  0x19   : > { %v299_v12 = vadd.f32 %v764_v2, %v260_v4  ;;  %v300_v13 = vadd.f32 %v764_v2, %v261_v6  ;;  %v264_v17 = vmul.f32 %v747_v0, %v225_v11  ;;  %v226_v18 = vld [vmem:[%s752_s7 + $0x28] sm:$0xff]  ;;  %v301_v19 = vadd.f32 %v764_v2, %v262_v9  ;;  %v335_v20 = vld [vmem:[%s757_s10 + $0x20] sm:$0xff]  ;;  %v227_v22 = vld [vmem:[%s752_s7 + $0x30] sm:$0xff] }
  0x1a   : > { %v265_v21 = vmul.f32 %v747_v0, %v226_v18  ;;  %v228_v23 = vld [vmem:[%s752_s7 + $0x38] sm:$0xff]  ;;  %v302_v26 = vadd.f32 %v764_v2, %v263_v15  ;;  %v336_v28 = vld [vmem:[%s757_s10 + $0x28] sm:$0xff]  ;;  %v266_v31 = vmul.f32 %v747_v0, %v227_v22  ;;  %v229_v33 = vld [vmem:[%s752_s7 + $0x40] sm:$0xff] }
  0x1b   : > { %v363_v24 = vadd.f32 %v331_v5, %v299_v12  ;;  %v364_v25 = vadd.f32 %v332_v8, %v300_v13  ;;  %v303_v27 = vadd.f32 %v764_v2, %v264_v17  ;;  %v365_v29 = vadd.f32 %v333_v14, %v301_v19  ;;  %v230_v34 = vld [vmem:[%s752_s7 + $0x48] sm:$0xff]  ;;  %v337_v39 = vld [vmem:[%s757_s10 + $0x30] sm:$0xff]  ;;  %v338_v40 = vld [vmem:[%s757_s10 + $0x38] sm:$0xff] }
  0x1c   : > { %v304_v30 = vadd.f32 %v764_v2, %v265_v21  ;;  %v267_v32 = vmul.f32 %v747_v0, %v228_v23  ;;  %v366_v37 = vadd.f32 %v334_v16, %v302_v26  ;;  %v231_v41 = vld [vmem:[%s752_s7 + $0x50] sm:$0xff]  ;;  %v305_v44 = vadd.f32 %v764_v2, %v266_v31  ;;  %v232_v46 = vld [vmem:[%s752_s7 + $0x58] sm:$0xff]  ;;  %v233_v47 = vld [vmem:[%s752_s7 + $0x60] sm:$0xff] }
  0x1d   : > { %v395_v35 = vmax.f32 %v363_v24, 0.0  ;;  %v396_v36 = vmax.f32 %v364_v25, 0.0  ;;  %v367_v38 = vadd.f32 %v335_v20, %v303_v27  ;;  %v397_v42 = vmax.f32 %v365_v29, 0.0  ;;  %v234_v52 = vld [vmem:[%s752_s7 + $0x68] sm:$0xff]  ;;  %v339_v56 = vld [vmem:[%s757_s10 + $0x40] sm:$0xff]  ;;  %v341_v61 = vld [vmem:[%s757_s10 + $0x50] sm:$0xff] }
  0x1e   : > { %v368_v43 = vadd.f32 %v336_v28, %v304_v30  ;;  %v306_v45 = vadd.f32 %v764_v2, %v267_v32  ;;  %v398_v48 = vmax.f32 %v366_v37, 0.0  ;;  %v268_v50 = vmul.f32 %v747_v0, %v229_v33  ;;  %v340_v57 = vld [vmem:[%s757_s10 + $0x48] sm:$0xff]  ;;  %v235_v1 = vld [vmem:[%s752_s7 + $0x70] sm:$0xff]  ;;  %v236_v3 = vld [vmem:[%s752_s7 + $0x78] sm:$0xff] }
  0x1f   : > { %427 = vst [vmem:[%s807_s20] sm:$0xff] %v395_v35  ;;  %428 = vst [vmem:[%s807_s20 + $0x8] sm:$0xff] %v396_v36  ;;  %v399_v49 = vmax.f32 %v367_v38, 0.0  ;;  %v269_v51 = vmul.f32 %v747_v0, %v230_v34  ;;  %v369_v54 = vadd.f32 %v337_v39, %v305_v44  ;;  %v270_v58 = vmul.f32 %v747_v0, %v231_v41  ;;  %v342_v7 = vld [vmem:[%s757_s10 + $0x58] sm:$0xff]  ;;  %v343_v8 = vld [vmem:[%s757_s10 + $0x60] sm:$0xff] }
  0x20   : > { %429 = vst [vmem:[%s807_s20 + $0x10] sm:$0xff] %v397_v42  ;;  %v400_v53 = vmax.f32 %v368_v43, 0.0  ;;  %v370_v55 = vadd.f32 %v338_v40, %v306_v45  ;;  %430 = vst [vmem:[%s807_s20 + $0x18] sm:$0xff] %v398_v48  ;;  %v307_v59 = vadd.f32 %v764_v2, %v268_v50  ;;  %v271_v62 = vmul.f32 %v747_v0, %v232_v46  ;;  %v344_v14 = vld [vmem:[%s757_s10 + $0x68] sm:$0xff]  ;;  %v237_v19 = vld [vmem:[%s752_s7 + $0x80] sm:$0xff] }
  0x21   : > { %431 = vst [vmem:[%s807_s20 + $0x20] sm:$0xff] %v399_v49  ;;  %v308_v60 = vadd.f32 %v764_v2, %v269_v51  ;;  %v272_v63 = vmul.f32 %v747_v0, %v233_v47  ;;  %v401_v4 = vmax.f32 %v369_v54, 0.0  ;;  %v309_v6 = vadd.f32 %v764_v2, %v270_v58  ;;  %v238_v20 = vld [vmem:[%s752_s7 + $0x88] sm:$0xff]  ;;  %v345_v25 = vld [vmem:[%s757_s10 + $0x70] sm:$0xff]  ;;  %v346_v26 = vld [vmem:[%s757_s10 + $0x78] sm:$0xff] }
  0x22   : > { %432 = vst [vmem:[%s807_s20 + $0x28] sm:$0xff] %v400_v53  ;;  %v402_v5 = vmax.f32 %v370_v55, 0.0  ;;  %v273_v9 = vmul.f32 %v747_v0, %v234_v52  ;;  %v371_v10 = vadd.f32 %v339_v56, %v307_v59  ;;  %v310_v12 = vadd.f32 %v764_v2, %v271_v62  ;;  %v239_v27 = vld [vmem:[%s752_s7 + $0x90] sm:$0xff]  ;;  %v240_v32 = vld [vmem:[%s752_s7 + $0x98] sm:$0xff]  ;;  %v241_v33 = vld [vmem:[%s752_s7 + $0xa0] sm:$0xff] }
  0x23   : > { %v372_v11 = vadd.f32 %v340_v57, %v308_v60  ;;  %v311_v13 = vadd.f32 %v764_v2, %v272_v63  ;;  %433 = vst [vmem:[%s807_s20 + $0x30] sm:$0xff] %v401_v4  ;;  %v373_v15 = vadd.f32 %v341_v61, %v309_v6  ;;  %v274_v17 = vmul.f32 %v747_v0, %v235_v1  ;;  %v242_v38 = vld [vmem:[%s752_s7 + $0xa8] sm:$0xff]  ;;  %v347_v42 = vld [vmem:[%s757_s10 + $0x80] sm:$0xff]  ;;  %v349_v47 = vld [vmem:[%s757_s10 + $0x90] sm:$0xff] }
  0x24   : > { %434 = vst [vmem:[%s807_s20 + $0x38] sm:$0xff] %v402_v5  ;;  %v312_v16 = vadd.f32 %v764_v2, %v273_v9  ;;  %v275_v18 = vmul.f32 %v747_v0, %v236_v3  ;;  %v403_v21 = vmax.f32 %v371_v10, 0.0  ;;  %v374_v23 = vadd.f32 %v342_v7, %v310_v12  ;;  %v348_v43 = vld [vmem:[%s757_s10 + $0x88] sm:$0xff]  ;;  %v243_v50 = vld [vmem:[%s752_s7 + $0xb0] sm:$0xff]  ;;  %v244_v51 = vld [vmem:[%s752_s7 + $0xb8] sm:$0xff] }
  0x25   : > { %v404_v22 = vmax.f32 %v372_v11, 0.0  ;;  %v375_v24 = vadd.f32 %v343_v8, %v311_v13  ;;  %v405_v28 = vmax.f32 %v373_v15, 0.0  ;;  %v313_v30 = vadd.f32 %v764_v2, %v274_v17  ;;  %v350_v55 = vld [vmem:[%s757_s10 + $0x98] sm:$0xff]  ;;  %v351_v56 = vld [vmem:[%s757_s10 + $0xa0] sm:$0xff]  ;;  %v352_v62 = vld [vmem:[%s757_s10 + $0xa8] sm:$0xff] }
  0x26   : > { %v376_v29 = vadd.f32 %v344_v14, %v312_v16  ;;  %v314_v31 = vadd.f32 %v764_v2, %v275_v18  ;;  %435 = vst [vmem:[%s807_s20 + $0x40] sm:$0xff] %v403_v21  ;;  %v406_v34 = vmax.f32 %v374_v23, 0.0  ;;  %v276_v36 = vmul.f32 %v747_v0, %v237_v19  ;;  %v245_v5 = vld [vmem:[%s752_s7 + $0xc0] sm:$0xff]  ;;  %v246_v6 = vld [vmem:[%s752_s7 + $0xc8] sm:$0xff]  ;;  %v353_v11 = vld [vmem:[%s757_s10 + $0xb0] sm:$0xff] }
  0x27   : > { %436 = vst [vmem:[%s807_s20 + $0x48] sm:$0xff] %v404_v22  ;;  %v407_v35 = vmax.f32 %v375_v24, 0.0  ;;  %v277_v37 = vmul.f32 %v747_v0, %v238_v20  ;;  %437 = vst [vmem:[%s807_s20 + $0x50] sm:$0xff] %v405_v28  ;;  %v377_v40 = vadd.f32 %v345_v25, %v313_v30  ;;  %v278_v44 = vmul.f32 %v747_v0, %v239_v27  ;;  %v354_v12 = vld [vmem:[%s757_s10 + $0xb8] sm:$0xff]  ;;  %v247_v13 = vld [vmem:[%s752_s7 + $0xd0] sm:$0xff] }
  0x28   : > { %v408_v39 = vmax.f32 %v376_v29, 0.0  ;;  %v378_v41 = vadd.f32 %v346_v26, %v314_v31  ;;  %438 = vst [vmem:[%s807_s20 + $0x58] sm:$0xff] %v406_v34  ;;  %v315_v45 = vadd.f32 %v764_v2, %v276_v36  ;;  %v279_v48 = vmul.f32 %v747_v0, %v240_v32  ;;  %v248_v18 = vld [vmem:[%s752_s7 + $0xd8] sm:$0xff]  ;;  %v249_v19 = vld [vmem:[%s752_s7 + $0xe0] sm:$0xff]  ;;  %v250_v24 = vld [vmem:[%s752_s7 + $0xe8] sm:$0xff] }
  0x29   : > { %439 = vst [vmem:[%s807_s20 + $0x60] sm:$0xff] %v407_v35  ;;  %v316_v46 = vadd.f32 %v764_v2, %v277_v37  ;;  %v280_v49 = vmul.f32 %v747_v0, %v241_v33  ;;  %v409_v52 = vmax.f32 %v377_v40, 0.0  ;;  %v317_v54 = vadd.f32 %v764_v2, %v278_v44  ;;  %v355_v28 = vld [vmem:[%s757_s10 + $0xc0] sm:$0xff]  ;;  %v356_v29 = vld [vmem:[%s757_s10 + $0xc8] sm:$0xff]  ;;  %v357_v33 = vld [vmem:[%s757_s10 + $0xd0] sm:$0xff] }
  0x2a   : > { %440 = vst [vmem:[%s807_s20 + $0x68] sm:$0xff] %v408_v39  ;;  %v410_v53 = vmax.f32 %v378_v41, 0.0  ;;  %v281_v57 = vmul.f32 %v747_v0, %v242_v38  ;;  %v379_v58 = vadd.f32 %v347_v42, %v315_v45  ;;  %v318_v60 = vadd.f32 %v764_v2, %v279_v48  ;;  %v251_v36 = vld [vmem:[%s752_s7 + $0xf0] sm:$0xff]  ;;  %v252_v37 = vld [vmem:[%s752_s7 + $0xf8] sm:$0xff]  ;;  %v359_v42 = vld [vmem:[%s757_s10 + $0xe0] sm:$0xff]  ;;  %s611_s7 = scalar_lea.vmem %s610_s6, 8192 }
  0x2b   : > { %v380_v59 = vadd.f32 %v348_v43, %v316_v46  ;;  %v319_v61 = vadd.f32 %v764_v2, %v280_v49  ;;  %441 = vst [vmem:[%s807_s20 + $0x70] sm:$0xff] %v409_v52  ;;  %v381_v63 = vadd.f32 %v349_v47, %v317_v54  ;;  %v282_v3 = vmul.f32 %v747_v0, %v243_v50  ;;  %v358_v41 = vld [vmem:[%s757_s10 + $0xd8] sm:$0xff]  ;;  %v360_v48 = vld [vmem:[%s757_s10 + $0xe8] sm:$0xff]  ;;  %p613_p1 = scmp.lt.s32.totalorder %s611_s7, %s605_s30 }
  0x2c   : > { %442 = vst [vmem:[%s807_s20 + $0x78] sm:$0xff] %v410_v53  ;;  %v320_v1 = vadd.f32 %v764_v2, %v281_v57  ;;  %v283_v4 = vmul.f32 %v747_v0, %v244_v51  ;;  %v411_v7 = vmax.f32 %v379_v58, 0.0  ;;  %v382_v9 = vadd.f32 %v350_v55, %v318_v60  ;;  %v361_v57 = vld [vmem:[%s757_s10 + $0xf0] sm:$0xff]  ;;  %v362_v58 = vld [vmem:[%s757_s10 + $0xf8] sm:$0xff] }
  0x2d   : > { %v412_v8 = vmax.f32 %v380_v59, 0.0  ;;  %v383_v10 = vadd.f32 %v351_v56, %v319_v61  ;;  %v413_v14 = vmax.f32 %v381_v63, 0.0  ;;  %v321_v16 = vadd.f32 %v764_v2, %v282_v3  ;;  %p614_p2 = por %p613_p1, %p612_p0 }
  0x2e   : > { %v384_v15 = vadd.f32 %v352_v62, %v320_v1  ;;  %v322_v17 = vadd.f32 %v764_v2, %v283_v4  ;;  %443 = vst [vmem:[%s807_s20 + $0x80] sm:$0xff] %v411_v7  ;;  %v414_v20 = vmax.f32 %v382_v9, 0.0  ;;  %v284_v22 = vmul.f32 %v747_v0, %v245_v5 }
  0x2f   : > { %444 = vst [vmem:[%s807_s20 + $0x88] sm:$0xff] %v412_v8  ;;  %v415_v21 = vmax.f32 %v383_v10, 0.0  ;;  %v285_v23 = vmul.f32 %v747_v0, %v246_v6  ;;  %445 = vst [vmem:[%s807_s20 + $0x90] sm:$0xff] %v413_v14  ;;  %v385_v26 = vadd.f32 %v353_v11, %v321_v16  ;;  %v286_v30 = vmul.f32 %v747_v0, %v247_v13  ;;  %p615_p3 = pnand %p614_p2, %p608_p13 }
  0x30   : > { %v416_v25 = vmax.f32 %v384_v15, 0.0  ;;  %v386_v27 = vadd.f32 %v354_v12, %v322_v17  ;;  %446 = vst [vmem:[%s807_s20 + $0x98] sm:$0xff] %v414_v20  ;;  %v323_v31 = vadd.f32 %v764_v2, %v284_v22  ;;  %v287_v34 = vmul.f32 %v747_v0, %v248_v18 }
  0x31   : > { %447 = vst [vmem:[%s807_s20 + $0xa0] sm:$0xff] %v415_v21  ;;  %v324_v32 = vadd.f32 %v764_v2, %v285_v23  ;;  %v288_v35 = vmul.f32 %v747_v0, %v249_v19  ;;  %v417_v38 = vmax.f32 %v385_v26, 0.0  ;;  %v325_v40 = vadd.f32 %v764_v2, %v286_v30 }
  0x32   : > { %448 = vst [vmem:[%s807_s20 + $0xa8] sm:$0xff] %v416_v25  ;;  %v418_v39 = vmax.f32 %v386_v27, 0.0  ;;  %v289_v43 = vmul.f32 %v747_v0, %v250_v24  ;;  %v387_v44 = vadd.f32 %v355_v28, %v323_v31  ;;  %v326_v46 = vadd.f32 %v764_v2, %v287_v34 }
  0x33   : > { %v388_v45 = vadd.f32 %v356_v29, %v324_v32  ;;  %v327_v47 = vadd.f32 %v764_v2, %v288_v35  ;;  %449 = vst [vmem:[%s807_s20 + $0xb0] sm:$0xff] %v417_v38  ;;  %v389_v49 = vadd.f32 %v357_v33, %v325_v40  ;;  %v290_v51 = vmul.f32 %v747_v0, %v251_v36 }
  0x34   : > { %450 = vst [vmem:[%s807_s20 + $0xb8] sm:$0xff] %v418_v39  ;;  %v328_v50 = vadd.f32 %v764_v2, %v289_v43  ;;  %v291_v52 = vmul.f32 %v747_v0, %v252_v37  ;;  %v419_v53 = vmax.f32 %v387_v44, 0.0  ;;  %v390_v55 = vadd.f32 %v358_v41, %v326_v46 }
  0x35   : > { %v420_v54 = vmax.f32 %v388_v45, 0.0  ;;  %v391_v56 = vadd.f32 %v359_v42, %v327_v47  ;;  %v421_v59 = vmax.f32 %v389_v49, 0.0  ;;  %v329_v61 = vadd.f32 %v764_v2, %v290_v51 }
  0x36   : > { %v392_v60 = vadd.f32 %v360_v48, %v328_v50  ;;  %v330_v62 = vadd.f32 %v764_v2, %v291_v52  ;;  %451 = vst [vmem:[%s807_s20 + $0xc0] sm:$0xff] %v419_v53  ;;  %v422_v0 = vmax.f32 %v390_v55, 0.0 }
  0x37   : > { %452 = vst [vmem:[%s807_s20 + $0xc8] sm:$0xff] %v420_v54  ;;  %v423_v63 = vmax.f32 %v391_v56, 0.0  ;;  %453 = vst [vmem:[%s807_s20 + $0xd0] sm:$0xff] %v421_v59  ;;  %v393_v3 = vadd.f32 %v361_v57, %v329_v61 }
  0x38   : > { %v424_v1 = vmax.f32 %v392_v60, 0.0  ;;  %v394_v4 = vadd.f32 %v362_v58, %v330_v62  ;;  %454 = vst [vmem:[%s807_s20 + $0xd8] sm:$0xff] %v422_v0 }
  0x39   : > { %455 = vst [vmem:[%s807_s20 + $0xe0] sm:$0xff] %v423_v63  ;;  %v425_v2 = vmax.f32 %v393_v3, 0.0 }
  0x3a   : > { %456 = vst [vmem:[%s807_s20 + $0xe8] sm:$0xff] %v424_v1  ;;  %v426_v5 = vmax.f32 %v394_v4, 0.0 }
  0x3b   : > { %457 = vst [vmem:[%s807_s20 + $0xf0] sm:$0xff] %v425_v2 }
  0x3c   : > { %458 = vst [vmem:[%s807_s20 + $0xf8] sm:$0xff] %v426_v5 }
  0x3d   : > { %618 = shalt.err (!%p615_p3)
}
  0x3e   : > { %s619_s8 = scalar_lea.hbm %s934_s29, 4096  ;;  %s623_s11 = scalar_lea.hbm %s987_s4, 8192 }
  0x3f   : > { %p620_p4 = scmp.ne.s32.totalorder %s934_s29, %s619_s8  ;;  %p624_p9 = scmp.lt.s32.totalorder %s934_s29, %s987_s4 }
  0x40   : > { %p625_p10 = scmp.lt.s32.totalorder %s623_s11, %s619_s8 }
  0x41   : > { %p621_p7 = pnand %p620_p4, %p733_p5 }
  0x42   : > { %p626_p11 = por %p625_p10, %p624_p9 }
  0x43   : > { %p622_p8 = pneg %p621_p7 }
  0x45   : > { %p627_p12 = pnand %p626_p11, %p622_p8 }
  0x47   : > { %630 = shalt.err (!%p627_p12)
}
  0x48   : > { %s668_s14 = smov 128   ;;  %s669_s20 = smov 8  }
  0x49   : > { %564 = dma.vmem_to_hbm [thread:$0]  (%p733_p5), %s936_s23, 4096, %s934_s29, %s943_s19, %s668_s14, %s668_s14, %s669_s20  }
  0x4a PF: > { %p570_p13 = scmp.ge.s32.totalorder %s665_s18, 2  ;;  %s488_s22 = sand.u32 1, %s653_s15  }
  0x4b   : > { %s489_s27 = scalar_lea.sflag [#allocation3], %s488_s22 }
  0x4c   : > { %p567_p0 = pnand %p570_p13, %p737_p6 }
  0x4e   : > { %p568_p1 = pneg %p567_p0 }
  0x50   : > { %648 = dma.done.wait (%p568_p1), %s489_s27, 4096  }
  0x51   : > { %650 = vsyncadd (%p568_p1), %s489_s27, 4294963200  ;;  %p14_p2 = scmp.ge.s32.totalorder %s720_s21, 4   ;;  %s990_s15 = smov %s657_s16 }
  0x52   : > { %s991_s16 = smov %s661_s17  ;;  %s992_s17 = smov %s731_s24 }
  0x53   : > { %s993_s18 = smov %s720_s21  ;;  %16 = sbr.rel (!%p14_p2) target bundleno = 3 (0x3), region = 74 }
  0x58   :  { %494 = vsyncpa [#allocation3], 1 }
  0x59   :  { %496 = vsyncpa [#allocation3 + $0x1], 1 }

// kernel: bottleneck_forward.6
= control target key start
LH: loop header
LB: loop body
LE: loop exit
PB: predicated region body
PF: predicated region fallthrough
CT: control target
= control target key end

     0   :  { %s992_s18 = smov 0   ;;  %s1221_s0 = inlined_call_operand.vmem [shape: f32[512,32], index: 0, kind: input, shape index: {}]   ;;  %s1222_s1 = inlined_call_operand.vmem [shape: f32[1,32], index: 1, kind: input, shape index: {}]   ;;  %s1223_s2 = inlined_call_operand.vmem [shape: f32[1,32], index: 2, kind: input, shape index: {}]   ;;  %s1224_s3 = inlined_call_operand.vmem [shape: bf16[32,128], index: 3, kind: input, shape index: {}]   ;;  %s1225_s4 = inlined_call_operand.vmem [shape: f32[512,128], index: 4, kind: output, shape index: {0}]   ;;  %s1226_s5 = inlined_call_operand.vmem [shape: f32[2,8,128], index: 5, kind: output, shape index: {1}]  }
   0x1 LB: > { %s998_s19 = sadd.s32 4294967295, %s960_s18   ;;  %p858_p0 = scmp.ge.s32.totalorder %s960_s18, 1  ;;  %s960_s18 = sphi %s992_s18, %s16_s18  }
   0x2   : > { %p191_p1 = scmp.lt.s32.totalorder %s960_s18, 3 }
   0x4   : > { %p192_p2 = pnand %p858_p0, %p191_p1 }
   0x5   : > { %s859_s22 = sshll.u32 (!%p192_p2), %s998_s19, 5  ;;  %p235_p4 = scmp.lt.s32.totalorder (!%p192_p2), %s998_s19, 1 }
   0x6   : > { %195 = sbr.rel (%p192_p2) target bundleno = 302 (0x12e), region = 36  ;;  %p224_p3 = scmp.lt.s32.totalorder (!%p192_p2), %s859_s22, 63 }
   0xb   : > { %v952_v0 = vld [vmem:[%s1224_s3 + $0x8] sm:$0xff]   ;;  %v953_v1 = vld [vmem:[%s1224_s3] sm:$0xff]   ;;  %s1228_s22 = smov (!%p224_p3, %s859_s22), 63  ;;  %vm414_vm0 = vcmask 261120   ;;  %s1230_s19 = smov (!%p235_p4, %s998_s19), 1  ;;  %vm762_vm1 = vcmask 1040384  }
   0xc   : > { %904 = vmatprep.subr.bf16.mxu0 %v952_v0  ;;  %940 = vmatprep.subr.bf16.mxu1 %v952_v0  ;;  %s860_s25 = sshll.u32 %s1228_s22, 3  ;;  %v1015_v2 = vld [vmem:[%s1222_s1] ss:$0 sm:$0xff]  ;;  %s863_s11 = sshll.u32 %s1230_s19, 3  ;;  %vm764_vm2 = vcmask 1041408  }
   0xd   : > { %905 = vmatpush3.bf16.msra.mxu0 %v952_v0  ;;  %942 = vmatpush3.bf16.msra.mxu1 %v952_v0  ;;  %s1022_s30 = scalar_lea.vmem %s1221_s0, %s860_s25  ;;  %v1027_v3 = vld [vmem:[%s1223_s2] ss:$0 sm:$0xff]  ;;  %s1149_s10 = scalar_lea.vmem %s1225_s4, %s860_s25 }
   0xe   : > { %906 = vmatprep.subr.bf16.mxu0 %v953_v1  ;;  %941 = vmatprep.subr.bf16.mxu1 %v953_v1  ;;  %v240_v4 = vld [vmem:[%s1022_s30] sm:$0xff]  ;;  %v241_v5 = vld [vmem:[%s1022_s30 + $0x8] sm:$0xff]  ;;  %v242_v6 = vld [vmem:[%s1022_s30 + $0x10] sm:$0xff]  ;;  %s238_s14 = scalar_lea.vmem %s1226_s5, %s863_s11 }
   0xf   : > { %v279_v7 = vmul.f32 %v1015_v2, %v240_v4  ;;  %v280_v8 = vmul.f32 %v1015_v2, %v241_v5  ;;  %v243_v9 = vld [vmem:[%s1022_s30 + $0x18] sm:$0xff]  ;;  %v281_v10 = vmul.f32 %v1015_v2, %v242_v6  ;;  %v244_v11 = vld [vmem:[%s1022_s30 + $0x20] sm:$0xff]  ;;  %v245_v12 = vld [vmem:[%s1022_s30 + $0x28] sm:$0xff] }
  0x10   : > { %v282_v13 = vmul.f32 %v1015_v2, %v243_v9  ;;  %v283_v14 = vmul.f32 %v1015_v2, %v244_v11  ;;  %v284_v15 = vmul.f32 %v1015_v2, %v245_v12  ;;  %v246_v16 = vld [vmem:[%s1022_s30 + $0x30] sm:$0xff]  ;;  %v247_v17 = vld [vmem:[%s1022_s30 + $0x38] sm:$0xff]  ;;  %v248_v26 = vld [vmem:[%s1022_s30 + $0x40] sm:$0xff] }
  0x11   : > { %907 = vmatpush3.bf16.msra.mxu0 %v953_v1  ;;  %943 = vmatpush3.bf16.msra.mxu1 %v953_v1  ;;  %v318_v18 = vadd.f32 %v1027_v3, %v279_v7  ;;  %v319_v19 = vadd.f32 %v1027_v3, %v280_v8  ;;  %v320_v20 = vadd.f32 %v1027_v3, %v281_v10  ;;  %v249_v27 = vld [vmem:[%s1022_s30 + $0x48] sm:$0xff]  ;;  %v250_v32 = vld [vmem:[%s1022_s30 + $0x50] sm:$0xff]  ;;  %v251_v37 = vld [vmem:[%s1022_s30 + $0x58] sm:$0xff] }
  0x12   : > { %v285_v21 = vmul.f32 %v1015_v2, %v246_v16  ;;  %v321_v22 = vadd.f32 %v1027_v3, %v282_v13  ;;  %v322_v23 = vadd.f32 %v1027_v3, %v283_v14  ;;  %v323_v24 = vadd.f32 %v1027_v3, %v284_v15  ;;  %v252_v38 = vld [vmem:[%s1022_s30 + $0x60] sm:$0xff]  ;;  %v253_v43 = vld [vmem:[%s1022_s30 + $0x68] sm:$0xff]  ;;  %v254_v44 = vld [vmem:[%s1022_s30 + $0x70] sm:$0xff] }
  0x13   : > { %v286_v25 = vmul.f32 %v1015_v2, %v247_v17  ;;  %v350_v28 = vmax.f32 %v318_v18, 0.0  ;;  %v351_v29 = vmax.f32 %v319_v19, 0.0  ;;  %v352_v30 = vmax.f32 %v320_v20, 0.0  ;;  %v255_v53 = vld [vmem:[%s1022_s30 + $0x78] sm:$0xff]  ;;  %v256_v57 = vld [vmem:[%s1022_s30 + $0x80] sm:$0xff]  ;;  %v257_v62 = vld [vmem:[%s1022_s30 + $0x88] sm:$0xff] }
  0x14   : > { %v324_v31 = vadd.f32 %v1027_v3, %v285_v21  ;;  %v353_v33 = vmax.f32 %v321_v22, 0.0  ;;  %v354_v34 = vmax.f32 %v322_v23, 0.0  ;;  %v355_v35 = vmax.f32 %v323_v24, 0.0  ;;  %v258_v1 = vld [vmem:[%s1022_s30 + $0x90] sm:$0xff]  ;;  %v259_v4 = vld [vmem:[%s1022_s30 + $0x98] sm:$0xff]  ;;  %v260_v8 = vld [vmem:[%s1022_s30 + $0xa0] sm:$0xff] }
  0x15   : > { %v325_v36 = vadd.f32 %v1027_v3, %v286_v25  ;;  %v382_v39 = vpack.c.bf16 %v351_v29, %v350_v28  ;;  %v287_v41 = vmul.f32 %v1015_v2, %v248_v26  ;;  %v288_v42 = vmul.f32 %v1015_v2, %v249_v27  ;;  %v261_v13 = vld [vmem:[%s1022_s30 + $0xa8] sm:$0xff]  ;;  %v262_v18 = vld [vmem:[%s1022_s30 + $0xb0] sm:$0xff]  ;;  %v263_v23 = vld [vmem:[%s1022_s30 + $0xb8] sm:$0xff] }
  0x16   : > { %v356_v40 = vmax.f32 %v324_v31, 0.0  ;;  %v383_v45 = vpack.c.bf16 %v353_v33, %v352_v30  ;;  %v384_v46 = vpack.c.bf16 %v355_v35, %v354_v34  ;;  %v289_v48 = vmul.f32 %v1015_v2, %v250_v32  ;;  %v264_v28 = vld [vmem:[%s1022_s30 + $0xc0] sm:$0xff]  ;;  %v265_v33 = vld [vmem:[%s1022_s30 + $0xc8] sm:$0xff] }
  0x17   : > { %v357_v47 = vmax.f32 %v325_v36, 0.0  ;;  %908 = vmatprep.mubr.msk.bf16.mxu0 %vm414_vm0, %v382_v39  ;;  %v326_v49 = vadd.f32 %v1027_v3, %v287_v41  ;;  %v327_v50 = vadd.f32 %v1027_v3, %v288_v42  ;;  %v290_v51 = vmul.f32 %v1015_v2, %v251_v37 }
  0x18   : > { %v291_v52 = vmul.f32 %v1015_v2, %v252_v38  ;;  %909 = vmatmul.mubr.msk.bf16.vlgmr.msra.gmra.mxu0 %vm414_vm0, %v383_v45  ;;  %v328_v54 = vadd.f32 %v1027_v3, %v289_v48  ;;  %v292_v55 = vmul.f32 %v1015_v2, %v253_v43  ;;  %v293_v56 = vmul.f32 %v1015_v2, %v254_v44  ;;  %v266_v38 = vld [vmem:[%s1022_s30 + $0xd0] sm:$0xff]  ;;  %v267_v43 = vld [vmem:[%s1022_s30 + $0xd8] sm:$0xff]  ;;  %v268_v48 = vld [vmem:[%s1022_s30 + $0xe0] sm:$0xff] }
  0x19   : > { %912 = vmatprep.mubr.msk.bf16.mxu0 %vm414_vm0, %v384_v46  ;;  %v358_v58 = vmax.f32 %v326_v49, 0.0  ;;  %v359_v59 = vmax.f32 %v327_v50, 0.0  ;;  %v329_v60 = vadd.f32 %v1027_v3, %v290_v51  ;;  %v294_v0 = vmul.f32 %v1015_v2, %v255_v53  ;;  %v269_v49 = vld [vmem:[%s1022_s30 + $0xe8] sm:$0xff] }
  0x1a   : > { %v330_v61 = vadd.f32 %v1027_v3, %v291_v52  ;;  %v331_v63 = vadd.f32 %v1027_v3, %v292_v55  ;;  %v385_v5 = vpack.c.bf16 %v357_v47, %v356_v40  ;;  %v360_v6 = vmax.f32 %v328_v54, 0.0 }
  0x1b   : > { %v295_v7 = vmul.f32 %v1015_v2, %v256_v57  ;;  %v386_v9 = vpack.c.bf16 %v359_v59, %v358_v58  ;;  %v361_v10 = vmax.f32 %v329_v60, 0.0  ;;  %v1085_v11 = vadd.f32 %v1027_v3, %v293_v56 }
  0x1c   : > { %v296_v12 = vmul.f32 %v1015_v2, %v257_v62  ;;  %v362_v14 = vmax.f32 %v330_v61, 0.0  ;;  %v297_v16 = vmul.f32 %v1015_v2, %v258_v1  ;;  %v298_v17 = vmul.f32 %v1015_v2, %v259_v4 }
  0x1d   : > { %v334_v15 = vadd.f32 %v1027_v3, %v295_v7  ;;  %v363_v19 = vmax.f32 %v331_v63, 0.0  ;;  %v333_v20 = vadd.f32 %v1027_v3, %v294_v0  ;;  %v299_v22 = vmul.f32 %v1015_v2, %v260_v8  ;;  %v270_v8 = vld [vmem:[%s1022_s30 + $0xf0] sm:$0xff] }
  0x1e   : > { %v335_v21 = vadd.f32 %v1027_v3, %v296_v12  ;;  %v336_v25 = vadd.f32 %v1027_v3, %v297_v16  ;;  %v337_v26 = vadd.f32 %v1027_v3, %v298_v17  ;;  %v300_v27 = vmul.f32 %v1015_v2, %v261_v13 }
  0x1f   : > { %v366_v24 = vmax.f32 %v334_v15, 0.0  ;;  %v387_v29 = vpack.c.bf16 %v361_v10, %v360_v6  ;;  %v338_v31 = vadd.f32 %v1027_v3, %v299_v22  ;;  %v301_v32 = vmul.f32 %v1015_v2, %v262_v18 }
  0x20   : > { %913 = vmatmul.mubr.msk.bf16.gmra.mxu0 %vm414_vm0, %v385_v5  ;;  %v367_v30 = vmax.f32 %v335_v21, 0.0  ;;  %v368_v34 = vmax.f32 %v336_v25, 0.0  ;;  %v369_v35 = vmax.f32 %v337_v26, 0.0  ;;  %v339_v36 = vadd.f32 %v1027_v3, %v300_v27 }
  0x21   : > { %916 = vmatprep.mubr.msk.bf16.mxu0 %vm414_vm0, %v386_v9  ;;  %v302_v37 = vmul.f32 %v1015_v2, %v263_v23  ;;  %v370_v40 = vmax.f32 %v338_v31, 0.0  ;;  %v340_v41 = vadd.f32 %v1027_v3, %v301_v32  ;;  %v303_v42 = vmul.f32 %v1015_v2, %v264_v28  ;;  %v271_v9 = vld [vmem:[%s1022_s30 + $0xf8] sm:$0xff] }
  0x22   : > { %v390_v39 = vpack.c.bf16 %v367_v30, %v366_v24  ;;  %v391_v44 = vpack.c.bf16 %v369_v35, %v368_v34  ;;  %v371_v45 = vmax.f32 %v339_v36, 0.0  ;;  %v304_v47 = vmul.f32 %v1015_v2, %v265_v33 }
  0x23   : > { %v341_v46 = vadd.f32 %v1027_v3, %v302_v37  ;;  %v388_v50 = vpack.c.bf16 %v363_v19, %v362_v14  ;;  %v372_v51 = vmax.f32 %v340_v41, 0.0  ;;  %v342_v52 = vadd.f32 %v1027_v3, %v303_v42 }
  0x24   : > { %924 = vmatprep.mubr.msk.bf16.mxu1 %vm414_vm0, %v390_v39  ;;  %v305_v53 = vmul.f32 %v1015_v2, %v266_v38  ;;  %v392_v54 = vpack.c.bf16 %v371_v45, %v370_v40  ;;  %v343_v56 = vadd.f32 %v1027_v3, %v304_v47  ;;  %v306_v57 = vmul.f32 %v1015_v2, %v267_v43 }
  0x25   : > { %925 = vmatmul.mubr.msk.bf16.vlgmr.msra.gmra.mxu1 %vm414_vm0, %v391_v44  ;;  %v373_v55 = vmax.f32 %v341_v46, 0.0  ;;  %v374_v58 = vmax.f32 %v342_v52, 0.0  ;;  %v307_v59 = vmul.f32 %v1015_v2, %v268_v48  ;;  %v308_v60 = vmul.f32 %v1015_v2, %v269_v49 }
  0x26   : > { %928 = vmatprep.mubr.msk.bf16.mxu1 %vm414_vm0, %v392_v54  ;;  %v375_v61 = vmax.f32 %v343_v56, 0.0  ;;  %v364_v62 = vmax.f32 %v1085_v11, 0.0  ;;  %v365_v63 = vmax.f32 %v333_v20, 0.0  ;;  %v344_v1 = vadd.f32 %v1027_v3, %v305_v53 }
  0x27   : > { %v393_v0 = vpack.c.bf16 %v373_v55, %v372_v51  ;;  %v345_v4 = vadd.f32 %v1027_v3, %v306_v57  ;;  %v346_v6 = vadd.f32 %v1027_v3, %v307_v59  ;;  %v347_v7 = vadd.f32 %v1027_v3, %v308_v60 }
  0x28   : > { %917 = vmatmul.mubr.msk.bf16.gmra.mxu0 %vm414_vm0, %v387_v29  ;;  %v394_v5 = vpack.c.bf16 %v375_v61, %v374_v58  ;;  %v389_v10 = vpack.c.bf16 %v365_v63, %v364_v62  ;;  %v376_v12 = vmax.f32 %v344_v1, 0.0  ;;  %v309_v13 = vmul.f32 %v1015_v2, %v270_v8 }
  0x29   : > { %920 = vmatprep.mubr.msk.bf16.mxu0 %vm414_vm0, %v388_v50  ;;  %v377_v11 = vmax.f32 %v345_v4, 0.0  ;;  %v310_v14 = vmul.f32 %v1015_v2, %v271_v9  ;;  %v378_v15 = vmax.f32 %v346_v6, 0.0  ;;  %v379_v16 = vmax.f32 %v347_v7, 0.0 }
  0x2a   : > { %v348_v18 = vadd.f32 %v1027_v3, %v309_v13 }
  0x2b   : > { %v395_v17 = vpack.c.bf16 %v377_v11, %v376_v12  ;;  %v349_v19 = vadd.f32 %v1027_v3, %v310_v14  ;;  %v396_v20 = vpack.c.bf16 %v379_v16, %v378_v15 }
  0x2c   : > { %v380_v21 = vmax.f32 %v348_v18, 0.0 }
  0x2d   : > { %929 = vmatmul.mubr.msk.bf16.gmra.mxu1 %vm414_vm0, %v393_v0  ;;  %v381_v22 = vmax.f32 %v349_v19, 0.0 }
  0x2e   : > { %932 = vmatprep.mubr.msk.bf16.mxu1 %vm414_vm0, %v394_v5 }
  0x2f   : > { %v397_v23 = vpack.c.bf16 %v381_v22, %v380_v21 }
  0x30   : > { %921 = vmatmul.mubr.msk.bf16.gmra.mxu0 %vm414_vm0, %v389_v10 }
  0x35   : > { %933 = vmatmul.mubr.msk.bf16.gmra.mxu1 %vm414_vm0, %v395_v17 }
  0x36   : > { %936 = vmatprep.mubr.msk.bf16.mxu1 %vm414_vm0, %v396_v20 }
  0x3d   : > { %937 = vmatmul.mubr.msk.bf16.gmra.mxu1 %vm414_vm0, %v397_v23 }
  0xd8   : > { %v910_v2 = vpop.f32.mrf.mxu0 }
  0xd9   : > { %626 = vst [vmem:[%s1149_s10 + $0x10] sm:$0xff] %v910_v2  ;;  %v695_v30 = vmul.f32 %v910_v2, %v910_v2 }
  0xda   : > { %v497_v3 = vpop.f32.mrf.mxu0 }
  0xdb   : > { %624 = vst [vmem:[%s1149_s10] sm:$0xff] %v497_v3  ;;  %v693_v26 = vmul.f32 %v497_v3, %v497_v3 }
  0xdc   : > { %v911_v24 = vpop.f32.mrf.mxu0 }
  0xdd   : > { %627 = vst [vmem:[%s1149_s10 + $0x18] sm:$0xff] %v911_v24  ;;  %v696_v34 = vmul.f32 %v911_v24, %v911_v24 }
  0xde   : > { %v500_v25 = vpop.f32.mrf.mxu0 }
  0xdf   : > { %625 = vst [vmem:[%s1149_s10 + $0x8] sm:$0xff] %v500_v25  ;;  %v656_v27 = vadd.f32 %v500_v25, %v497_v3  ;;  %v694_v28 = vmul.f32 %v500_v25, %v500_v25 }
  0xe0   : > { %v914_v29 = vpop.f32.mrf.mxu0 }
  0xe1   : > { %v657_v31 = vadd.f32 %v910_v2, %v656_v27  ;;  %v725_v32 = vadd.f32 %v694_v28, %v693_v26  ;;  %630 = vst [vmem:[%s1149_s10 + $0x30] sm:$0xff] %v914_v29  ;;  %v699_v48 = vmul.f32 %v914_v29, %v914_v29 }
  0xe2   : > { %v513_v33 = vpop.f32.mrf.mxu0 }
  0xe3   : > { %v726_v35 = vadd.f32 %v725_v32, %v695_v30  ;;  %628 = vst [vmem:[%s1149_s10 + $0x20] sm:$0xff] %v513_v33  ;;  %v658_v36 = vadd.f32 %v911_v24, %v657_v31  ;;  %v697_v39 = vmul.f32 %v513_v33, %v513_v33 }
  0xe4   : > { %v915_v37 = vpop.f32.mrf.mxu0 }
  0xe5   : > { %v659_v38 = vadd.f32 %v658_v36, %v513_v33  ;;  %v727_v40 = vadd.f32 %v726_v35, %v696_v34  ;;  %631 = vst [vmem:[%s1149_s10 + $0x38] sm:$0xff] %v915_v37  ;;  %v1158_v41 = vpop.f32.mrf.mxu1  ;;  %v700_v53 = vmul.f32 %v915_v37, %v915_v37 }
  0xe6   : > { %v516_v42 = vpop.f32.mrf.mxu0  ;;  %642 = vst [vmem:[%s1149_s10 + $0x90] sm:$0xff] %v1158_v41 }
  0xe7   : > { %v728_v43 = vadd.f32 %v727_v40, %v697_v39  ;;  %629 = vst [vmem:[%s1149_s10 + $0x28] sm:$0xff] %v516_v42  ;;  %v660_v44 = vadd.f32 %v659_v38, %v516_v42  ;;  %v698_v45 = vmul.f32 %v516_v42, %v516_v42  ;;  %v1163_v46 = vpop.f32.mrf.mxu1  ;;  %v711_v39 = vmul.f32 %v1158_v41, %v1158_v41 }
  0xe8   : > { %v918_v47 = vpop.f32.mrf.mxu0  ;;  %640 = vst [vmem:[%s1149_s10 + $0x80] sm:$0xff] %v1163_v46  ;;  %v709_v31 = vmul.f32 %v1163_v46, %v1163_v46 }
  0xe9   : > { %v661_v49 = vadd.f32 %v914_v29, %v660_v44  ;;  %v729_v50 = vadd.f32 %v728_v43, %v698_v45  ;;  %634 = vst [vmem:[%s1149_s10 + $0x50] sm:$0xff] %v918_v47  ;;  %v1168_v51 = vpop.f32.mrf.mxu1  ;;  %v703_v6 = vmul.f32 %v918_v47, %v918_v47 }
  0xea   : > { %v529_v52 = vpop.f32.mrf.mxu0  ;;  %643 = vst [vmem:[%s1149_s10 + $0x98] sm:$0xff] %v1168_v51  ;;  %v712_v44 = vmul.f32 %v1168_v51, %v1168_v51 }
  0xeb   : > { %v730_v54 = vadd.f32 %v729_v50, %v699_v48  ;;  %632 = vst [vmem:[%s1149_s10 + $0x40] sm:$0xff] %v529_v52  ;;  %v662_v55 = vadd.f32 %v915_v37, %v661_v49  ;;  %v564_v56 = vpop.f32.mrf.mxu1  ;;  %v701_v59 = vmul.f32 %v529_v52, %v529_v52 }
  0xec   : > { %v919_v57 = vpop.f32.mrf.mxu0  ;;  %641 = vst [vmem:[%s1149_s10 + $0x88] sm:$0xff] %v564_v56  ;;  %v710_v36 = vmul.f32 %v564_v56, %v564_v56 }
  0xed   : > { %v663_v58 = vadd.f32 %v662_v55, %v529_v52  ;;  %v731_v60 = vadd.f32 %v730_v54, %v700_v53  ;;  %635 = vst [vmem:[%s1149_s10 + $0x58] sm:$0xff] %v919_v57  ;;  %v1175_v61 = vpop.f32.mrf.mxu1  ;;  %v704_v12 = vmul.f32 %v919_v57, %v919_v57 }
  0xee   : > { %v532_v62 = vpop.f32.mrf.mxu0  ;;  %646 = vst [vmem:[%s1149_s10 + $0xb0] sm:$0xff] %v1175_v61 }
  0xef   : > { %v732_v63 = vadd.f32 %v731_v60, %v701_v59  ;;  %633 = vst [vmem:[%s1149_s10 + $0x48] sm:$0xff] %v532_v62  ;;  %v664_v0 = vadd.f32 %v663_v58, %v532_v62  ;;  %v702_v1 = vmul.f32 %v532_v62, %v532_v62  ;;  %v577_v4 = vpop.f32.mrf.mxu1 }
  0xf0   : > { %v922_v5 = vpop.f32.mrf.mxu0  ;;  %644 = vst [vmem:[%s1149_s10 + $0xa0] sm:$0xff] %v577_v4  ;;  %v713_v49 = vmul.f32 %v577_v4, %v577_v4 }
  0xf1   : > { %v665_v7 = vadd.f32 %v918_v47, %v664_v0  ;;  %v733_v8 = vadd.f32 %v732_v63, %v702_v1  ;;  %638 = vst [vmem:[%s1149_s10 + $0x70] sm:$0xff] %v922_v5  ;;  %v1182_v9 = vpop.f32.mrf.mxu1  ;;  %v707_v3 = vmul.f32 %v922_v5, %v922_v5 }
  0xf2   : > { %v545_v10 = vpop.f32.mrf.mxu0  ;;  %647 = vst [vmem:[%s1149_s10 + $0xb8] sm:$0xff] %v1182_v9 }
  0xf3   : > { %v734_v11 = vadd.f32 %v733_v8, %v703_v6  ;;  %636 = vst [vmem:[%s1149_s10 + $0x60] sm:$0xff] %v545_v10  ;;  %v666_v13 = vadd.f32 %v919_v57, %v665_v7  ;;  %v580_v14 = vpop.f32.mrf.mxu1  ;;  %v705_v17 = vmul.f32 %v545_v10, %v545_v10  ;;  %v716_v57 = vmul.f32 %v1182_v9, %v1182_v9 }
  0xf4   : > { %v923_v15 = vpop.f32.mrf.mxu0  ;;  %645 = vst [vmem:[%s1149_s10 + $0xa8] sm:$0xff] %v580_v14  ;;  %v714_v54 = vmul.f32 %v580_v14, %v580_v14 }
  0xf5   : > { %v667_v16 = vadd.f32 %v666_v13, %v545_v10  ;;  %v735_v18 = vadd.f32 %v734_v11, %v704_v12  ;;  %639 = vst [vmem:[%s1149_s10 + $0x78] sm:$0xff] %v923_v15  ;;  %v934_v19 = vpop.f32.mrf.mxu1  ;;  %v708_v27 = vmul.f32 %v923_v15, %v923_v15 }
  0xf6   : > { %v548_v20 = vpop.f32.mrf.mxu0  ;;  %650 = vst [vmem:[%s1149_s10 + $0xd0] sm:$0xff] %v934_v19 }
  0xf7   : > { %v736_v21 = vadd.f32 %v735_v18, %v705_v17  ;;  %637 = vst [vmem:[%s1149_s10 + $0x68] sm:$0xff] %v548_v20  ;;  %v668_v22 = vadd.f32 %v667_v16, %v548_v20  ;;  %v706_v23 = vmul.f32 %v548_v20, %v548_v20  ;;  %v593_v2 = vpop.f32.mrf.mxu1 }
  0xf8   : > { %648 = vst [vmem:[%s1149_s10 + $0xc0] sm:$0xff] %v593_v2  ;;  %v717_v60 = vmul.f32 %v593_v2, %v593_v2 }
  0xf9   : > { %v669_v24 = vadd.f32 %v922_v5, %v668_v22  ;;  %v737_v25 = vadd.f32 %v736_v21, %v706_v23  ;;  %v935_v26 = vpop.f32.mrf.mxu1 }
  0xfa   : > { %651 = vst [vmem:[%s1149_s10 + $0xd8] sm:$0xff] %v935_v26  ;;  %v720_v7 = vmul.f32 %v935_v26, %v935_v26 }
  0xfb   : > { %v670_v28 = vadd.f32 %v923_v15, %v669_v24  ;;  %v738_v29 = vadd.f32 %v737_v25, %v707_v3  ;;  %v596_v30 = vpop.f32.mrf.mxu1 }
  0xfc   : > { %649 = vst [vmem:[%s1149_s10 + $0xc8] sm:$0xff] %v596_v30  ;;  %v718_v1 = vmul.f32 %v596_v30, %v596_v30 }
  0xfd   : > { %v739_v32 = vadd.f32 %v738_v29, %v708_v27  ;;  %v671_v33 = vadd.f32 %v670_v28, %v1163_v46  ;;  %v938_v34 = vpop.f32.mrf.mxu1 }
  0xfe   : > { %654 = vst [vmem:[%s1149_s10 + $0xf0] sm:$0xff] %v938_v34  ;;  %v723_v15 = vmul.f32 %v938_v34, %v938_v34 }
  0xff   : > { %v672_v35 = vadd.f32 %v671_v33, %v564_v56  ;;  %v740_v37 = vadd.f32 %v739_v32, %v709_v31  ;;  %v609_v38 = vpop.f32.mrf.mxu1 }
 0x100   : > { %652 = vst [vmem:[%s1149_s10 + $0xe0] sm:$0xff] %v609_v38  ;;  %v721_v12 = vmul.f32 %v609_v38, %v609_v38 }
 0x101   : > { %v673_v40 = vadd.f32 %v1158_v41, %v672_v35  ;;  %v741_v42 = vadd.f32 %v740_v37, %v710_v36  ;;  %v939_v43 = vpop.f32.mrf.mxu1  ;;  %v715_v41 = vmul.f32 %v1175_v61, %v1175_v61 }
 0x102   : > { %655 = vst [vmem:[%s1149_s10 + $0xf8] sm:$0xff] %v939_v43  ;;  %v724_v18 = vmul.f32 %v939_v43, %v939_v43 }
 0x103   : > { %v742_v45 = vadd.f32 %v741_v42, %v711_v39  ;;  %v674_v46 = vadd.f32 %v1168_v51, %v673_v40  ;;  %v612_v47 = vpop.f32.mrf.mxu1 }
 0x104   : > { %653 = vst [vmem:[%s1149_s10 + $0xe8] sm:$0xff] %v612_v47 }
 0x105   : > { %v675_v48 = vadd.f32 %v674_v46, %v577_v4  ;;  %v743_v50 = vadd.f32 %v742_v45, %v712_v44  ;;  %v719_v4 = vmul.f32 %v934_v19, %v934_v19 }
 0x107   : > { %v744_v52 = vadd.f32 %v743_v50, %v713_v49  ;;  %v676_v53 = vadd.f32 %v675_v48, %v580_v14 }
 0x109   : > { %v677_v55 = vadd.f32 %v1175_v61, %v676_v53  ;;  %v745_v56 = vadd.f32 %v744_v52, %v714_v54 }
 0x10b   : > { %v746_v58 = vadd.f32 %v745_v56, %v715_v41  ;;  %v678_v51 = vadd.f32 %v1182_v9, %v677_v55  ;;  %v722_v9 = vmul.f32 %v612_v47, %v612_v47 }
 0x10d   : > { %v679_v59 = vadd.f32 %v678_v51, %v593_v2  ;;  %v747_v62 = vadd.f32 %v746_v58, %v716_v57 }
 0x10f   : > { %v748_v63 = vadd.f32 %v747_v62, %v717_v60  ;;  %v680_v0 = vadd.f32 %v679_v59, %v596_v30 }
 0x111   : > { %v681_v5 = vadd.f32 %v934_v19, %v680_v0  ;;  %v749_v6 = vadd.f32 %v748_v63, %v718_v1 }
 0x113   : > { %v750_v8 = vadd.f32 %v749_v6, %v719_v4  ;;  %v682_v61 = vadd.f32 %v935_v26, %v681_v5 }
 0x115   : > { %v683_v10 = vadd.f32 %v682_v61, %v609_v38  ;;  %v751_v11 = vadd.f32 %v750_v8, %v720_v7 }
 0x117   : > { %v752_v13 = vadd.f32 %v751_v11, %v721_v12  ;;  %v684_v14 = vadd.f32 %v683_v10, %v612_v47 }
 0x119   : > { %v685_v16 = vadd.f32 %v938_v34, %v684_v14  ;;  %v753_v17 = vadd.f32 %v752_v13, %v722_v9 }
 0x11b   : > { %v686_v20 = vadd.f32 %v939_v43, %v685_v16  ;;  %v754_v21 = vadd.f32 %v753_v17, %v723_v15 }
 0x11d   : > { %v687_v22 = vrot.slane %v686_v20, 4  ;;  %v755_v19 = vadd.f32 %v754_v21, %v724_v18 }
 0x11f   : > { %v688_v23 = vadd.f32 %v687_v22, %v686_v20  ;;  %v756_v2 = vrot.slane %v755_v19, 4 }
 0x121   : > { %v689_v3 = vrot.slane %v688_v23, 2  ;;  %v757_v24 = vadd.f32 %v756_v2, %v755_v19 }
 0x123   : > { %v690_v25 = vadd.f32 %v689_v3, %v688_v23  ;;  %v758_v26 = vrot.slane %v757_v24, 2 }
 0x125   : > { %v691_v27 = vrot.slane %v690_v25, 1  ;;  %v759_v28 = vadd.f32 %v758_v26, %v757_v24 }
 0x127   : > { %v760_v29 = vrot.slane %v759_v28, 1  ;;  %v692_v30 = vadd.f32 %v691_v27, %v690_v25 }
 0x129   : > { %v761_v31 = vadd.f32 %v760_v29, %v759_v28 }
 0x12b   : > { %v763_v32 = vsel %vm762_vm1, %v692_v30, %v761_v31 }
 0x12c   : > { %v765_v33 = vsel %vm764_vm2, %v763_v32, 0.0 }
 0x12d   : > { %766 = vst [vmem:[%s238_s14] sm:$0xff] %v765_v33 }
 0x12e PF: > { %s16_s18 = sadd.s32 1, %s960_s18  }
 0x12f   : > { %p13_p5 = scmp.ge.s32.totalorder %s16_s18, 4  }
 0x131   :  { %15 = sbr.rel (!%p13_p5) target bundleno = 1 (0x1), region = 78 }

// kernel: bottleneck_forward.5
= control target key start
LH: loop header
LB: loop body
LE: loop exit
PB: predicated region body
PF: predicated region fallthrough
CT: control target
= control target key end

     0   :  { %s2427_s18 = smov 0   ;;  %s3577_s0 = inlined_call_operand.vmem [shape: f32[2,16,16,32], index: 0, kind: input, shape index: {}]   ;;  %s3578_s1 = inlined_call_operand.vmem [shape: f32[1,32], index: 1, kind: input, shape index: {}]   ;;  %s3579_s2 = inlined_call_operand.vmem [shape: f32[1,32], index: 2, kind: input, shape index: {}]   ;;  %s3580_s3 = inlined_call_operand.vmem [shape: bf16[288,32], index: 3, kind: input, shape index: {}]   ;;  %s3581_s4 = inlined_call_operand.vmem [shape: f32[2,16,16,32], index: 4, kind: output, shape index: {0}]   ;;  %s3582_s5 = inlined_call_operand.vmem [shape: f32[2,8,32], index: 5, kind: output, shape index: {1}]  }
   0x1 LB: > { %s2118_s19 = sadd.s32 4294967295, %s2391_s18   ;;  %p2122_p0 = scmp.ge.s32.totalorder %s2391_s18, 1  ;;  %s2391_s18 = sphi %s2427_s18, %s16_s18  }
   0x2   : > { %p190_p1 = scmp.lt.s32.totalorder %s2391_s18, 3 }
   0x4   : > { %p191_p2 = pnand %p2122_p0, %p190_p1 }
   0x6   : > { %194 = sbr.rel (%p191_p2) target bundleno = 572 (0x23c), region = 36 }
   0xb   : > { %vm548_vm0 = vcmask 1040384   ;;  %vm549_vm1 = vsmask.f32 256  ;;  %v2393_v0 = vmov 0   ;;  %p222_p3 = scmp.lt.s32.totalorder %s2118_s19, 1  ;;  %v2367_v3 = vld [vmem:[%s3580_s3 + $0x78] sm:$0xff]  }
   0xc   : > { %v398_v1 = vrot.slane %v2393_v0, 7  ;;  %vm2436_vm2 = vmand %vm548_vm0, %vm549_vm1  ;;  %vm842_vm3 = vcmask 1046528   ;;  %v2368_v4 = vld [vmem:[%s3580_s3 + $0x38] sm:$0xff]   ;;  %v2457_v7 = vld [vmem:[%s3578_s1] ss:$0 sm:$0xff]  ;;  %2168 = vmatprep.subr.bf16.mxu0 %v2367_v3  ;;  %2334 = vmatprep.subr.bf16.mxu1 %v2367_v3  ;;  %s2394_s11 = smov 64  }
   0xd   : > { %s3610_s19 = smov (!%p222_p3, %s2118_s19), 1  ;;  %v2369_v8 = vld [vmem:[%s3580_s3 + $0x70] sm:$0xff]   ;;  %2169 = vmatpush3.bf16.msra.mxu0 %v2368_v4  ;;  %2342 = vmatpush3.bf16.msra.mxu1 %v2368_v4  ;;  %v2469_v14 = vld [vmem:[%s3579_s2] ss:$0 sm:$0xff]  ;;  %vm585_vm4 = vsmask.f32 7424 }
   0xe   : > { %v2448_v5 = vsel %vm2436_vm2, 0, %v398_v1  ;;  %v568_v6 = vsel %vm2436_vm2, %v398_v1, 0  ;;  %s2166_s28 = sshll.u32 %s3610_s19, 8  ;;  %2170 = vmatprep.subr.bf16.mxu0 %v2369_v8  ;;  %2335 = vmatprep.subr.bf16.mxu1 %v2369_v8  ;;  %v2370_v17 = vld [vmem:[%s3580_s3 + $0x30] sm:$0xff]   ;;  %s2395_s12 = smov 32   ;;  %v2371_v63 = vld [vmem:[%s3580_s3 + $0x68] sm:$0xff]  }
   0xf   : > { %v843_v9 = vrot.slane %v2448_v5, 1  ;;  %v844_v10 = vrot.slane %v568_v6, 1  ;;  %v587_v11 = vshrl.u32 %v2448_v5, 16  ;;  %v589_v12 = vshll.u32 %v2448_v5, 16  ;;  %s2479_s8 = scalar_lea.vmem %s3577_s0, %s2166_s28  ;;  %s2396_s7 = smov 96  }
  0x10   : > { %v594_v13 = vshll.u32 %v568_v6, 16  ;;  %v241_v20 = vld [vmem:[%s2479_s8 + $0x20] sm:$0xff]  ;;  %v242_v21 = vld [vmem:[%s2479_s8 + $0x28] sm:$0xff]  ;;  %v239_v22 = vld [vmem:[%s2479_s8 + $0x10] sm:$0xff]  ;;  %vm1068_vm5 = vcmask 261120   ;;  %vm1101_vm6 = vcmask 523264   ;;  %s3297_s24 = scalar_lea.vmem %s3581_s4, %s2166_s28 }
  0x11   : > { %v2472_v15 = vsel %vm842_vm3, %v843_v9, %v844_v10  ;;  %v591_v16 = vrot.slane %v589_v12, 1  ;;  %v280_v24 = vmul.f32 %v2457_v7, %v241_v20  ;;  %v281_v25 = vmul.f32 %v2457_v7, %v242_v21  ;;  %v240_v26 = vld [vmem:[%s2479_s8 + $0x18] sm:$0xff]  ;;  %v263_v28 = vld [vmem:[%s2479_s8 + $0xd0] sm:$0xff]  ;;  %2171 = vmatpush3.bf16.msra.mxu0 %v2370_v17  ;;  %v237_v33 = vld [vmem:[%s2479_s8] sm:$0xff]  ;;  %2343 = vmatpush3.bf16.msra.mxu1 %v2370_v17  ;;  %s2127_s28 = sshll.u32 %s3610_s19, 3 }
  0x12   : > { %3593 = vst [vmem:[#allocation2_spill] sm:$0xff] %v2472_v15  ;;  %v2362_v18 = vpack.i.bf16 %v2448_v5, %v2472_v15  ;;  %v596_v19 = vrot.slane %v594_v13, 1  ;;  %v278_v27 = vmul.f32 %v2457_v7, %v239_v22  ;;  %v264_v29 = vld [vmem:[%s2479_s8 + $0xd8] sm:$0xff]  ;;  %v279_v30 = vmul.f32 %v2457_v7, %v240_v26  ;;  %v238_v34 = vld [vmem:[%s2479_s8 + $0x8] sm:$0xff]  ;;  %v259_v43 = vld [vmem:[%s2479_s8 + $0xb0] sm:$0xff]  ;;  %2172 = vmatprep.subr.bf16.mxu0 %v2371_v63  ;;  %s235_s27 = scalar_lea.vmem %s3582_s5, %s2127_s28 }
  0x13   : > { %v592_v23 = vor.u32 %v591_v16, %v587_v11  ;;  %v302_v31 = vmul.f32 %v2457_v7, %v263_v28  ;;  %v303_v32 = vmul.f32 %v2457_v7, %v264_v29  ;;  %v319_v36 = vadd.f32 %v2469_v14, %v280_v24  ;;  %v260_v44 = vld [vmem:[%s2479_s8 + $0xb8] sm:$0xff]  ;;  %v261_v49 = vld [vmem:[%s2479_s8 + $0xc0] sm:$0xff]  ;;  %v262_v58 = vld [vmem:[%s2479_s8 + $0xc8] sm:$0xff]  ;;  %2336 = vmatprep.subr.bf16.mxu1 %v2371_v63 }
  0x14   : > { %2363 = vrot.lane.b32.xlu1 %v2362_v18, %s2394_s11  ;;  %v320_v37 = vadd.f32 %v2469_v14, %v281_v25  ;;  %v317_v38 = vadd.f32 %v2469_v14, %v278_v27  ;;  %v318_v39 = vadd.f32 %v2469_v14, %v279_v30  ;;  %v276_v42 = vmul.f32 %v2457_v7, %v237_v33  ;;  %v2372_v6 = vld [vmem:[%s3580_s3 + $0x28] sm:$0xff]   ;;  %v2373_v26 = vld [vmem:[%s3580_s3 + $0x60] sm:$0xff]  }
  0x15   : > { %v2502_v35 = vsel %vm585_vm4, %v592_v23, %v596_v19  ;;  %v341_v40 = vadd.f32 %v2469_v14, %v302_v31  ;;  %v342_v41 = vadd.f32 %v2469_v14, %v303_v32  ;;  %v351_v45 = vmax.f32 %v319_v36, 0.0  ;;  %2173 = vmatpush3.bf16.msra.mxu0 %v2372_v6  ;;  %2344 = vmatpush3.bf16.msra.mxu1 %v2372_v6  ;;  %v2374_v30 = vld [vmem:[%s3580_s3 + $0x20] sm:$0xff]   ;;  %v2379_v6 = vld [vmem:[%s3580_s3 + $0x48] sm:$0xff]  }
  0x16   : > { %778 = vrot.lane.b32.xlu0 %v2502_v35, %s2395_s12  ;;  %v352_v46 = vmax.f32 %v320_v37, 0.0  ;;  %v349_v47 = vmax.f32 %v317_v38, 0.0  ;;  %v277_v48 = vmul.f32 %v2457_v7, %v238_v34  ;;  %v350_v50 = vmax.f32 %v318_v39, 0.0  ;;  %2174 = vmatprep.subr.bf16.mxu0 %v2373_v26  ;;  %v2375_v34 = vld [vmem:[%s3580_s3 + $0x58] sm:$0xff]  }
  0x17   : > { %v373_v51 = vmax.f32 %v341_v40, 0.0  ;;  %v374_v52 = vmax.f32 %v342_v41, 0.0  ;;  %v315_v53 = vadd.f32 %v2469_v14, %v276_v42  ;;  %v298_v56 = vmul.f32 %v2457_v7, %v259_v43  ;;  %2337 = vmatprep.subr.bf16.mxu1 %v2373_v26 }
  0x18   : > { %v381_v54 = vpack.c.bf16 %v352_v46, %v351_v45  ;;  %v316_v55 = vadd.f32 %v2469_v14, %v277_v48  ;;  %v299_v57 = vmul.f32 %v2457_v7, %v260_v44  ;;  %v380_v59 = vpack.c.bf16 %v350_v50, %v349_v47  ;;  %v2376_v44 = vld [vmem:[%s3580_s3 + $0x18] sm:$0xff]   ;;  %v2377_v48 = vld [vmem:[%s3580_s3 + $0x50] sm:$0xff]  }
  0x19   : > { %v392_v60 = vpack.c.bf16 %v374_v52, %v373_v51  ;;  %v347_v61 = vmax.f32 %v315_v53, 0.0  ;;  %v300_v62 = vmul.f32 %v2457_v7, %v261_v49  ;;  %v337_v4 = vadd.f32 %v2469_v14, %v298_v56  ;;  %2175 = vmatpush3.bf16.msra.mxu0 %v2374_v30  ;;  %2345 = vmatpush3.bf16.msra.mxu1 %v2374_v30  ;;  %v2378_v56 = vld [vmem:[%s3580_s3 + $0x10] sm:$0xff]   ;;  %v244_v30 = vld [vmem:[%s2479_s8 + $0x38] sm:$0xff] }
  0x1a   : > { %v417_v0 = vshrl.u32 %v381_v54, 16  ;;  %v420_v1 = vshll.u32 %v381_v54, 16  ;;  %v348_v3 = vmax.f32 %v316_v55, 0.0  ;;  %v410_v8 = vshrl.u32 %v380_v59, 16  ;;  %2176 = vmatprep.subr.bf16.mxu0 %v2375_v34  ;;  %2338 = vmatprep.subr.bf16.mxu1 %v2375_v34 }
  0x1b   : > { %v413_v9 = vshll.u32 %v380_v59, 16  ;;  %v494_v10 = vshrl.u32 %v392_v60, 16  ;;  %v497_v11 = vshll.u32 %v392_v60, 16  ;;  %v338_v16 = vadd.f32 %v2469_v14, %v299_v57 }
  0x1c   : > { %v2530_v12 = vrot.slane %v417_v0, 7  ;;  %v379_v13 = vpack.c.bf16 %v348_v3, %v347_v61  ;;  %v369_v17 = vmax.f32 %v337_v4, 0.0  ;;  %v412_v18 = vrot.slane %v410_v8, 7 }
  0x1d   : > { %v2533_v19 = vrot.slane %v494_v10, 7  ;;  %v301_v20 = vmul.f32 %v2457_v7, %v262_v58  ;;  %v339_v21 = vadd.f32 %v2469_v14, %v300_v62  ;;  %v370_v25 = vmax.f32 %v338_v16, 0.0  ;;  %2177 = vmatpush3.bf16.msra.mxu0 %v2376_v44  ;;  %2346 = vmatpush3.bf16.msra.mxu1 %v2376_v44 }
  0x1e   : > { %v422_v22 = vor.u32 %v420_v1, %v2530_v12  ;;  %v403_v23 = vshrl.u32 %v379_v13, 16  ;;  %v406_v24 = vshll.u32 %v379_v13, 16  ;;  %v415_v27 = vor.u32 %v413_v9, %v412_v18  ;;  %2178 = vmatprep.subr.bf16.mxu0 %v2377_v48  ;;  %2339 = vmatprep.subr.bf16.mxu1 %v2377_v48  ;;  %v2380_v13 = vld [vmem:[%s3580_s3 + $0x8] sm:$0xff]  }
  0x1f   : > { %v499_v28 = vor.u32 %v497_v11, %v2533_v19  ;;  %v340_v29 = vadd.f32 %v2469_v14, %v301_v20  ;;  %v390_v33 = vpack.c.bf16 %v370_v25, %v369_v17  ;;  %v570_v37 = vsel %vm2436_vm2, %v412_v18, 0 }
  0x20   : > { %v2548_v31 = vsel %vm2436_vm2, 0, %v422_v22  ;;  %v405_v32 = vrot.slane %v403_v23, 7  ;;  %v2557_v36 = vsel %vm2436_vm2, 0, %v415_v27  ;;  %v371_v38 = vmax.f32 %v339_v21, 0.0 }
  0x21   : > { %1006 = vrot.lane.b32.xlu0 %v2548_v31, %s2394_s11  ;;  %v372_v39 = vmax.f32 %v340_v29, 0.0  ;;  %1004 = vrot.lane.b32.xlu1 %v2557_v36, %s2394_s11  ;;  %v2565_v40 = vsel %vm2436_vm2, 0, %v499_v28  ;;  %v480_v43 = vshrl.u32 %v390_v33, 16  ;;  %v483_v46 = vshll.u32 %v390_v33, 16  ;;  %v243_v29 = vld [vmem:[%s2479_s8 + $0x30] sm:$0xff] }
  0x22   : > { %v408_v41 = vor.u32 %v406_v24, %v405_v32  ;;  %v2569_v42 = vsel %vm2436_vm2, %v405_v32, 0  ;;  %v850_v50 = vrot.slane %v570_v37, 1  ;;  %v613_v52 = vshll.u32 %v2557_v36, 16  ;;  %2179 = vmatpush3.bf16.msra.mxu0 %v2378_v56  ;;  %2347 = vmatpush3.bf16.msra.mxu1 %v2378_v56 }
  0x23   : > { %v847_v45 = vrot.slane %v2569_v42, 1  ;;  %v391_v47 = vpack.c.bf16 %v372_v39, %v371_v38  ;;  %v482_v51 = vrot.slane %v480_v43, 7  ;;  %v849_v57 = vrot.slane %v2557_v36, 1  ;;  %2180 = vmatprep.subr.bf16.mxu0 %v2379_v6  ;;  %2340 = vmatprep.subr.bf16.mxu1 %v2379_v6 }
  0x24   : > { %v2580_v49 = vsel %vm2436_vm2, 0, %v408_v41  ;;  %v611_v59 = vshrl.u32 %v2557_v36, 16  ;;  %v618_v60 = vshll.u32 %v570_v37, 16  ;;  %v615_v0 = vrot.slane %v613_v52, 1  ;;  %v2382_v41 = vld [vmem:[%s3580_s3] sm:$0xff]  }
  0x25   : > { %1028 = vrot.lane.b32.xlu0 %v2565_v40, %s2394_s11  ;;  %v846_v53 = vrot.slane %v2580_v49, 1  ;;  %v487_v54 = vshrl.u32 %v391_v47, 16  ;;  %v490_v55 = vshll.u32 %v391_v47, 16  ;;  %924 = vrot.lane.b32.xlu1 %v2580_v49, %s2396_s7  ;;  %v485_v58 = vor.u32 %v483_v46, %v482_v51 }
  0x26   : > { %v580_v62 = vsel %vm2436_vm2, %v482_v51, 0  ;;  %v599_v3 = vshrl.u32 %v2580_v49, 16  ;;  %v601_v4 = vshll.u32 %v2580_v49, 16  ;;  %v606_v10 = vshll.u32 %v2569_v42, 16  ;;  %2181 = vmatpush3.bf16.msra.mxu0 %v2380_v13  ;;  %2348 = vmatpush3.bf16.msra.mxu1 %v2380_v13 }
  0x27   : > { %v848_v61 = vsel %vm842_vm3, %v846_v53, %v847_v45  ;;  %v489_v63 = vrot.slane %v487_v54, 7  ;;  %v2598_v1 = vsel %vm2436_vm2, 0, %v485_v58  ;;  %v2614_v11 = vsel %vm2436_vm2, %v2530_v12, 0  ;;  %v2381_v12 = vld [vmem:[%s3580_s3 + $0x40] sm:$0xff]   ;;  %v266_v58 = vld [vmem:[%s2479_s8 + $0xe8] sm:$0xff] }
  0x28   : > { %v2622_v16 = vsel %vm842_vm3, %v849_v57, %v850_v50  ;;  %v880_v17 = vrot.slane %v580_v62, 1  ;;  %v620_v20 = vrot.slane %v618_v60, 1  ;;  %v879_v21 = vrot.slane %v2598_v1, 1  ;;  %2182 = vmatprep.subr.bf16.mxu0 %v2381_v12  ;;  %2341 = vmatprep.subr.bf16.mxu1 %v2381_v12  ;;  %v265_v57 = vld [vmem:[%s2479_s8 + $0xe0] sm:$0xff] }
  0x29   : > { %972 = vrot.lane.b32.xlu0 %v848_v61, %s2395_s12  ;;  %v492_v8 = vor.u32 %v490_v55, %v489_v63  ;;  %v2608_v9 = vsel %vm2436_vm2, %v489_v63, 0  ;;  %926 = vrot.lane.b32.xlu1 %v2557_v36, %s2396_s7  ;;  %v603_v23 = vrot.slane %v601_v4, 1  ;;  %v625_v24 = vshll.u32 %v2548_v31, 16  ;;  %v246_v4 = vld [vmem:[%s2479_s8 + $0x48] sm:$0xff] }
  0x2a   : > { %v883_v18 = vrot.slane %v2608_v9, 1  ;;  %v616_v26 = vor.u32 %v615_v0, %v611_v59  ;;  %v623_v27 = vshrl.u32 %v2548_v31, 16  ;;  %v630_v28 = vshll.u32 %v2614_v11, 16  ;;  %2183 = vmatpush3.bf16.msra.mxu0 %v2382_v41  ;;  %2349 = vmatpush3.bf16.msra.mxu1 %v2382_v41 }
  0x2b   : > { %v2631_v22 = vsel %vm2436_vm2, 0, %v492_v8  ;;  %v608_v32 = vrot.slane %v606_v10, 1  ;;  %v627_v33 = vrot.slane %v625_v24, 1  ;;  %v733_v34 = vshll.u32 %v2598_v1, 16 }
  0x2c   : > { %v882_v25 = vrot.slane %v2631_v22, 1  ;;  %v738_v37 = vshll.u32 %v580_v62, 16  ;;  %v731_v39 = vshrl.u32 %v2598_v1, 16  ;;  %v2651_v42 = vsel %vm842_vm3, %v879_v21, %v880_v17  ;;  %v245_v62 = vld [vmem:[%s2479_s8 + $0x40] sm:$0xff] }
  0x2d   : > { %974 = vrot.lane.b32.xlu0 %v2622_v16, %s2395_s12  ;;  %893 = vrot.lane.b32.xlu1 %v848_v61, %s2394_s11  ;;  %v604_v43 = vor.u32 %v603_v23, %v599_v3  ;;  %v735_v44 = vrot.slane %v733_v34, 1  ;;  %v2656_v45 = vsel %vm2436_vm2, %v2533_v19, 0  ;;  %v628_v46 = vor.u32 %v627_v33, %v623_v27 }
  0x2e   : > { %v2644_v38 = vsel %vm842_vm3, %v882_v25, %v883_v18  ;;  %v632_v47 = vrot.slane %v630_v28, 1  ;;  %v740_v48 = vrot.slane %v738_v37, 1  ;;  %v757_v50 = vshll.u32 %v2565_v40, 16 }
  0x2f   : > { %3594 = vst [vmem:[#allocation3_spill] sm:$0xff] %v2644_v38  ;;  %v2662_v51 = vsel %vm585_vm4, %v616_v26, %v620_v20  ;;  %v282_v52 = vmul.f32 %v2457_v7, %v243_v29  ;;  %v283_v19 = vmul.f32 %v2457_v7, %v244_v30  ;;  %v736_v53 = vor.u32 %v735_v44, %v731_v39 }
  0x30   : > { %v755_v54 = vshrl.u32 %v2565_v40, 16  ;;  %v759_v55 = vrot.slane %v757_v50, 1  ;;  %v762_v56 = vshll.u32 %v2656_v45, 16  ;;  %v2673_v59 = vsel %vm585_vm4, %v604_v43, %v608_v32  ;;  %v268_v50 = vld [vmem:[%s2479_s8 + $0xf8] sm:$0xff] }
  0x31   : > { %996 = vrot.lane.b32.xlu0 %v2644_v38, %s2395_s12  ;;  %915 = vrot.lane.b32.xlu1 %v2651_v42, %s2394_s11  ;;  %v321_v60 = vadd.f32 %v2469_v14, %v282_v52  ;;  %v322_v61 = vadd.f32 %v2469_v14, %v283_v19  ;;  %v2679_v63 = vsel %vm585_vm4, %v628_v46, %v632_v47  ;;  %v852_v0 = vrot.slane %v2548_v31, 1 }
  0x32   : > { %v853_v3 = vrot.slane %v2614_v11, 1  ;;  %v304_v10 = vmul.f32 %v2457_v7, %v265_v57  ;;  %v305_v13 = vmul.f32 %v2457_v7, %v266_v58  ;;  %v2691_v17 = vsel %vm585_vm4, %v736_v53, %v740_v48  ;;  %v267_v48 = vld [vmem:[%s2479_s8 + $0xf0] sm:$0xff] }
  0x33   : > { %v353_v6 = vmax.f32 %v321_v60, 0.0  ;;  %v354_v8 = vmax.f32 %v322_v61, 0.0  ;;  %v760_v18 = vor.u32 %v759_v55, %v755_v54  ;;  %v764_v20 = vrot.slane %v762_v56, 1 }
  0x34   : > { %v284_v11 = vmul.f32 %v2457_v7, %v245_v62  ;;  %v343_v21 = vadd.f32 %v2469_v14, %v304_v10  ;;  %v344_v23 = vadd.f32 %v2469_v14, %v305_v13  ;;  %v285_v24 = vmul.f32 %v2457_v7, %v246_v4 }
  0x35   : > { %1036 = vrot.lane.b32.xlu0 %v2662_v51, %s2396_s7  ;;  %780 = vrot.lane.b32.xlu1 %v2673_v59, %s2395_s12  ;;  %v382_v12 = vpack.c.bf16 %v354_v8, %v353_v6  ;;  %v2703_v30 = vsel %vm842_vm3, %v852_v0, %v853_v3  ;;  %v2707_v33 = vsel %vm585_vm4, %v760_v18, %v764_v20  ;;  %v745_v19 = vshll.u32 %v2631_v22, 16 }
  0x36   : > { %v323_v25 = vadd.f32 %v2469_v14, %v284_v11  ;;  %v375_v28 = vmax.f32 %v343_v21, 0.0  ;;  %v376_v29 = vmax.f32 %v344_v23, 0.0  ;;  %v324_v32 = vadd.f32 %v2469_v14, %v285_v24 }
  0x37   : > { %v424_v26 = vshrl.u32 %v382_v12, 16  ;;  %v427_v27 = vshll.u32 %v382_v12, 16  ;;  %v306_v58 = vmul.f32 %v2457_v7, %v267_v48  ;;  %v307_v60 = vmul.f32 %v2457_v7, %v268_v50 }
  0x38   : > { %v393_v37 = vpack.c.bf16 %v376_v29, %v375_v28  ;;  %v355_v39 = vmax.f32 %v323_v25, 0.0  ;;  %v356_v41 = vmax.f32 %v324_v32, 0.0  ;;  %v743_v61 = vshrl.u32 %v2631_v22, 16  ;;  %v248_v28 = vld [vmem:[%s2479_s8 + $0x58] sm:$0xff] }
  0x39   : > { %1038 = vrot.lane.b32.xlu0 %v2679_v63, %s2396_s7  ;;  %802 = vrot.lane.b32.xlu1 %v2691_v17, %s2395_s12  ;;  %v426_v34 = vrot.slane %v424_v26, 7  ;;  %v747_v4 = vrot.slane %v745_v19, 1  ;;  %v750_v6 = vshll.u32 %v2608_v9, 16  ;;  %v345_v18 = vadd.f32 %v2469_v14, %v306_v58 }
  0x3a   : > { %v501_v46 = vshrl.u32 %v393_v37, 16  ;;  %v504_v47 = vshll.u32 %v393_v37, 16  ;;  %v383_v55 = vpack.c.bf16 %v356_v41, %v355_v39  ;;  %v346_v20 = vadd.f32 %v2469_v14, %v307_v60 }
  0x3b   : > { %v429_v43 = vor.u32 %v427_v27, %v426_v34  ;;  %v2713_v44 = vsel %vm2436_vm2, %v426_v34, 0  ;;  %v885_v11 = vrot.slane %v2565_v40, 1  ;;  %v886_v12 = vrot.slane %v2656_v45, 1  ;;  %v247_v27 = vld [vmem:[%s2479_s8 + $0x50] sm:$0xff] }
  0x3c   : > { %v642_v52 = vshll.u32 %v2713_v44, 16  ;;  %v503_v54 = vrot.slane %v501_v46, 7  ;;  %v431_v8 = vshrl.u32 %v383_v55, 16  ;;  %v748_v21 = vor.u32 %v747_v4, %v743_v61 }
  0x3d   : > { %976 = vrot.lane.b32.xlu0 %v2703_v30, %s2395_s12  ;;  %1060 = vrot.lane.b32.xlu1 %v2707_v33, %s2396_s7  ;;  %v2723_v53 = vsel %vm2436_vm2, 0, %v429_v43  ;;  %v752_v23 = vrot.slane %v750_v6, 1  ;;  %v434_v26 = vshll.u32 %v383_v55, 16  ;;  %v377_v32 = vmax.f32 %v345_v18, 0.0 }
  0x3e   : > { %v635_v56 = vshrl.u32 %v2723_v53, 16  ;;  %v637_v57 = vshll.u32 %v2723_v53, 16  ;;  %v506_v62 = vor.u32 %v504_v47, %v503_v54  ;;  %v644_v3 = vrot.slane %v642_v52, 1 }
  0x3f   : > { %v433_v25 = vrot.slane %v431_v8, 7  ;;  %v2755_v29 = vsel %vm2436_vm2, %v503_v54, 0  ;;  %v378_v34 = vmax.f32 %v346_v20, 0.0  ;;  %v2762_v45 = vsel %vm842_vm3, %v885_v11, %v886_v12 }
  0x40   : > { %v639_v0 = vrot.slane %v637_v57, 1  ;;  %v2737_v13 = vsel %vm2436_vm2, 0, %v506_v62  ;;  %3595 = vst [vmem:[#allocation4_spill] sm:$0xff] %v2762_v45  ;;  %v2765_v37 = vsel %vm585_vm4, %v748_v21, %v752_v23  ;;  %v286_v39 = vmul.f32 %v2457_v7, %v247_v27  ;;  %v250_v27 = vld [vmem:[%s2479_s8 + $0x68] sm:$0xff] }
  0x41   : > { %782 = vrot.lane.b32.xlu0 %v2662_v51, %s2395_s12  ;;  %948 = vrot.lane.b32.xlu1 %v2631_v22, %s2396_s7  ;;  %v769_v24 = vshll.u32 %v2737_v13, 16  ;;  %v287_v41 = vmul.f32 %v2457_v7, %v248_v28  ;;  %v767_v43 = vshrl.u32 %v2737_v13, 16  ;;  %v774_v47 = vshll.u32 %v2755_v29, 16 }
  0x42   : > { %v640_v10 = vor.u32 %v639_v0, %v635_v56  ;;  %v436_v48 = vor.u32 %v434_v26, %v433_v25  ;;  %v394_v50 = vpack.c.bf16 %v378_v34, %v377_v32  ;;  %v855_v52 = vrot.slane %v2723_v53, 1  ;;  %v249_v26 = vld [vmem:[%s2479_s8 + $0x60] sm:$0xff] }
  0x43   : > { %v771_v46 = vrot.slane %v769_v24, 1  ;;  %v856_v19 = vrot.slane %v2713_v44, 1  ;;  %v325_v54 = vadd.f32 %v2469_v14, %v286_v39  ;;  %v776_v56 = vrot.slane %v774_v47, 1 }
  0x44   : > { %v2747_v9 = vsel %vm585_vm4, %v640_v10, %v644_v3  ;;  %v2780_v57 = vsel %vm2436_vm2, 0, %v436_v48  ;;  %v326_v58 = vadd.f32 %v2469_v14, %v287_v41  ;;  %v508_v60 = vshrl.u32 %v394_v50, 16 }
  0x45   : > { %1008 = vrot.lane.b32.xlu0 %v2723_v53, %s2394_s11  ;;  %895 = vrot.lane.b32.xlu1 %v2622_v16, %s2394_s11  ;;  %v772_v55 = vor.u32 %v771_v46, %v767_v43  ;;  %v2788_v61 = vsel %vm842_vm3, %v855_v52, %v856_v19  ;;  %v649_v44 = vshll.u32 %v2780_v57, 16  ;;  %v573_v0 = vsel %vm2436_vm2, %v433_v25, 0 }
  0x46   : > { %v357_v3 = vmax.f32 %v325_v54, 0.0  ;;  %v358_v4 = vmax.f32 %v326_v58, 0.0  ;;  %v510_v6 = vrot.slane %v508_v60, 7  ;;  %v511_v8 = vshll.u32 %v394_v50, 16 }
  0x47   : > { %v2792_v62 = vsel %vm585_vm4, %v772_v55, %v776_v56  ;;  %v647_v10 = vshrl.u32 %v2780_v57, 16  ;;  %v651_v18 = vrot.slane %v649_v44, 1  ;;  %v654_v20 = vshll.u32 %v573_v0, 16 }
  0x48   : > { %v384_v11 = vpack.c.bf16 %v358_v4, %v357_v3  ;;  %v513_v12 = vor.u32 %v511_v8, %v510_v6  ;;  %v888_v32 = vrot.slane %v2737_v13, 1  ;;  %v889_v34 = vrot.slane %v2755_v29, 1 }
  0x49   : > { %1040 = vrot.lane.b32.xlu0 %v2747_v9, %s2396_s7  ;;  %928 = vrot.lane.b32.xlu1 %v2548_v31, %s2396_s7  ;;  %v652_v21 = vor.u32 %v651_v18, %v647_v10  ;;  %v656_v23 = vrot.slane %v654_v20, 1  ;;  %v2823_v46 = vsel %vm2436_vm2, %v510_v6, 0  ;;  %v288_v47 = vmul.f32 %v2457_v7, %v249_v26  ;;  %v251_v10 = vld [vmem:[%s2479_s8 + $0x70] sm:$0xff]  ;;  %v252_v18 = vld [vmem:[%s2479_s8 + $0x78] sm:$0xff] }
  0x4a   : > { %v438_v24 = vshrl.u32 %v384_v11, 16  ;;  %v2807_v25 = vsel %vm2436_vm2, 0, %v513_v12  ;;  %v441_v43 = vshll.u32 %v384_v11, 16  ;;  %v289_v48 = vmul.f32 %v2457_v7, %v250_v27 }
  0x4b   : > { %v2816_v28 = vsel %vm585_vm4, %v652_v21, %v656_v23  ;;  %v959_v39 = vshll.u32 %v2807_v25, 16  ;;  %v2832_v29 = vsel %vm842_vm3, %v888_v32, %v889_v34  ;;  %v957_v50 = vshrl.u32 %v2807_v25, 16 }
  0x4c   : > { %v440_v41 = vrot.slane %v438_v24, 7  ;;  %3596 = vst [vmem:[#allocation5_spill] sm:$0xff] %v2832_v29  ;;  %v964_v19 = vshll.u32 %v2823_v46, 16  ;;  %v327_v55 = vadd.f32 %v2469_v14, %v288_v47  ;;  %v328_v56 = vadd.f32 %v2469_v14, %v289_v48 }
  0x4d   : > { %998 = vrot.lane.b32.xlu0 %v2762_v45, %s2395_s12  ;;  %804 = vrot.lane.b32.xlu1 %v2765_v37, %s2395_s12  ;;  %v961_v52 = vrot.slane %v959_v39, 1  ;;  %v858_v58 = vrot.slane %v2780_v57, 1  ;;  %v859_v60 = vrot.slane %v573_v0, 1  ;;  %v290_v23 = vmul.f32 %v2457_v7, %v251_v10 }
  0x4e   : > { %v443_v54 = vor.u32 %v441_v43, %v440_v41  ;;  %v966_v3 = vrot.slane %v964_v19, 1  ;;  %v359_v6 = vmax.f32 %v327_v55, 0.0  ;;  %v360_v8 = vmax.f32 %v328_v56, 0.0  ;;  %v254_v55 = vld [vmem:[%s2479_s8 + $0x88] sm:$0xff] }
  0x4f   : > { %v962_v44 = vor.u32 %v961_v52, %v957_v50  ;;  %v2854_v20 = vsel %vm842_vm3, %v858_v58, %v859_v60  ;;  %v574_v12 = vsel %vm2436_vm2, %v440_v41, 0  ;;  %v291_v24 = vmul.f32 %v2457_v7, %v252_v18 }
  0x50   : > { %v2845_v4 = vsel %vm2436_vm2, 0, %v443_v54  ;;  %v385_v21 = vpack.c.bf16 %v360_v8, %v359_v6  ;;  %v666_v32 = vshll.u32 %v574_v12, 16  ;;  %v329_v39 = vadd.f32 %v2469_v14, %v290_v23  ;;  %v253_v54 = vld [vmem:[%s2479_s8 + $0x80] sm:$0xff] }
  0x51   : > { %1030 = vrot.lane.b32.xlu0 %v2737_v13, %s2394_s11  ;;  %917 = vrot.lane.b32.xlu1 %v2644_v38, %s2394_s11  ;;  %v661_v0 = vshll.u32 %v2845_v4, 16  ;;  %v2858_v11 = vsel %vm585_vm4, %v962_v44, %v966_v3  ;;  %v659_v26 = vshrl.u32 %v2845_v4, 16  ;;  %v330_v41 = vadd.f32 %v2469_v14, %v291_v24 }
  0x52   : > { %v445_v34 = vshrl.u32 %v385_v21, 16  ;;  %v668_v47 = vrot.slane %v666_v32, 1  ;;  %v448_v50 = vshll.u32 %v385_v21, 16  ;;  %v361_v52 = vmax.f32 %v329_v39, 0.0 }
  0x53   : > { %v663_v27 = vrot.slane %v661_v0, 1  ;;  %v362_v19 = vmax.f32 %v330_v41, 0.0  ;;  %v969_v58 = vrot.slane %v2807_v25, 1  ;;  %v970_v60 = vrot.slane %v2823_v46, 1 }
  0x54   : > { %v447_v48 = vrot.slane %v445_v34, 7  ;;  %v292_v44 = vmul.f32 %v2457_v7, %v253_v54  ;;  %v293_v8 = vmul.f32 %v2457_v7, %v254_v55  ;;  %v861_v18 = vrot.slane %v2845_v4, 1 }
  0x55   : > { %978 = vrot.lane.b32.xlu0 %v2788_v61, %s2395_s12  ;;  %1062 = vrot.lane.b32.xlu1 %v2792_v62, %s2396_s7  ;;  %v664_v43 = vor.u32 %v663_v27, %v659_v26  ;;  %v386_v6 = vpack.c.bf16 %v362_v19, %v361_v52  ;;  %v2893_v10 = vsel %vm842_vm3, %v969_v58, %v970_v60  ;;  %v862_v0 = vrot.slane %v574_v12, 1  ;;  %v2905_v26 = vld [vmem:[%s3580_s3 + $0x88] sm:$0xff]  }
  0x56   : > { %v450_v3 = vor.u32 %v448_v50, %v447_v48  ;;  %3597 = vst [vmem:[#allocation6_spill] sm:$0xff] %v2893_v10  ;;  %v331_v46 = vadd.f32 %v2469_v14, %v292_v44  ;;  %v332_v24 = vadd.f32 %v2469_v14, %v293_v8  ;;  %2298 = vmatprep.subr.bf16.mxu1 %v2905_v26  ;;  %v575_v34 = vsel %vm2436_vm2, %v447_v48, 0  ;;  %v256_v50 = vld [vmem:[%s2479_s8 + $0x98] sm:$0xff] }
  0x57   : > { %v2882_v56 = vsel %vm585_vm4, %v664_v43, %v668_v47  ;;  %v452_v23 = vshrl.u32 %v386_v6, 16  ;;  %v2913_v12 = vsel %vm842_vm3, %v861_v18, %v862_v0  ;;  %v455_v41 = vshll.u32 %v386_v6, 16  ;;  %v255_v47 = vld [vmem:[%s2479_s8 + $0x90] sm:$0xff] }
  0x58   : > { %v2899_v21 = vsel %vm2436_vm2, 0, %v450_v3  ;;  %3599 = vst [vmem:[#allocation8_spill] sm:$0xff] %v2913_v12  ;;  %v363_v32 = vmax.f32 %v331_v46, 0.0  ;;  %v364_v43 = vmax.f32 %v332_v24, 0.0  ;;  %v678_v54 = vshll.u32 %v575_v34, 16 }
  0x59   : > { %784 = vrot.lane.b32.xlu0 %v2679_v63, %s2395_s12  ;;  %950 = vrot.lane.b32.xlu1 %v2565_v40, %s2396_s7  ;;  %3598 = vst [vmem:[#allocation7_spill] sm:$0xff] %v2899_v21  ;;  %v673_v27 = vshll.u32 %v2899_v21, 16  ;;  %v454_v39 = vrot.slane %v452_v23, 7  ;;  %v671_v52 = vshrl.u32 %v2899_v21, 16  ;;  %v294_v60 = vmul.f32 %v2457_v7, %v255_v47 }
  0x5a   : > { %v387_v58 = vpack.c.bf16 %v364_v43, %v363_v32  ;;  %v295_v48 = vmul.f32 %v2457_v7, %v256_v50  ;;  %v680_v3 = vrot.slane %v678_v54, 1  ;;  %v864_v23 = vrot.slane %v2899_v21, 1  ;;  %v258_v50 = vld [vmem:[%s2479_s8 + $0xa8] sm:$0xff] }
  0x5b   : > { %v675_v19 = vrot.slane %v673_v27, 1  ;;  %v457_v55 = vor.u32 %v455_v41, %v454_v39  ;;  %v333_v18 = vadd.f32 %v2469_v14, %v294_v60  ;;  %v576_v24 = vsel %vm2436_vm2, %v454_v39, 0 }
  0x5c   : > { %v459_v8 = vshrl.u32 %v387_v58, 16  ;;  %v334_v0 = vadd.f32 %v2469_v14, %v295_v48  ;;  %v462_v41 = vshll.u32 %v387_v58, 16  ;;  %vm1134_vm7 = vcmask 785408  }
  0x5d   : > { %1010 = vrot.lane.b32.xlu0 %v2780_v57, %s2394_s11  ;;  %897 = vrot.lane.b32.xlu1 %v2703_v30, %s2394_s11  ;;  %v676_v44 = vor.u32 %v675_v19, %v671_v52  ;;  %v2933_v6 = vsel %vm2436_vm2, 0, %v457_v55  ;;  %v365_v43 = vmax.f32 %v333_v18, 0.0  ;;  %v690_v55 = vshll.u32 %v576_v24, 16 }
  0x5e   : > { %v685_v27 = vshll.u32 %v2933_v6, 16  ;;  %v461_v32 = vrot.slane %v459_v8, 7  ;;  %v366_v47 = vmax.f32 %v334_v0, 0.0  ;;  %v683_v19 = vshrl.u32 %v2933_v6, 16 }
  0x5f   : > { %v2942_v46 = vsel %vm585_vm4, %v676_v44, %v680_v3  ;;  %v297_v44 = vmul.f32 %v2457_v7, %v258_v50  ;;  %v692_v18 = vrot.slane %v690_v55, 1  ;;  %vm2029_vm8 = vcmask 1041408  }
  0x60   : > { %v687_v54 = vrot.slane %v685_v27, 1  ;;  %v464_v58 = vor.u32 %v462_v41, %v461_v32  ;;  %v388_v60 = vpack.c.bf16 %v366_v47, %v365_v43  ;;  %v868_v41 = vrot.slane %v576_v24, 1 }
  0x61   : > { %1042 = vrot.lane.b32.xlu0 %v2816_v28, %s2396_s7  ;;  %930 = vrot.lane.b32.xlu1 %v2723_v53, %s2396_s7  ;;  %v577_v50 = vsel %vm2436_vm2, %v461_v32, 0 }
  0x62   : > { %v688_v8 = vor.u32 %v687_v54, %v683_v19  ;;  %v469_v55 = vshll.u32 %v388_v60, 16 }
  0x64   : > { %v2983_v47 = vsel %vm585_vm4, %v688_v8, %v692_v18  ;;  %v702_v18 = vshll.u32 %v577_v50, 16 }
  0x65   : > { %1000 = vrot.lane.b32.xlu0 %v2832_v29, %s2395_s12  ;;  %806 = vrot.lane.b32.xlu1 %v2707_v33, %s2395_s12 }
  0x69   : > { %1032 = vrot.lane.b32.xlu0 %v2807_v25, %s2394_s11  ;;  %919 = vrot.lane.b32.xlu1 %v2762_v45, %s2394_s11 }
  0x6d   : > { %980 = vrot.lane.b32.xlu0 %v2854_v20, %s2395_s12  ;;  %1064 = vrot.lane.b32.xlu1 %v2858_v11, %s2396_s7 }
  0x71   : > { %786 = vrot.lane.b32.xlu0 %v2747_v9, %s2395_s12  ;;  %952 = vrot.lane.b32.xlu1 %v2737_v13, %s2396_s7 }
  0x75   : > { %1012 = vrot.lane.b32.xlu0 %v2845_v4, %s2394_s11  ;;  %899 = vrot.lane.b32.xlu1 %v2788_v61, %s2394_s11 }
  0x79   : > { %1044 = vrot.lane.b32.xlu0 %v2882_v56, %s2396_s7  ;;  %932 = vrot.lane.b32.xlu1 %v2780_v57, %s2396_s7 }
  0x7d   : > { %1002 = vrot.lane.b32.xlu0 %v2893_v10, %s2395_s12  ;;  %808 = vrot.lane.b32.xlu1 %v2792_v62, %s2395_s12  ;;  %v704_v10 = vrot.slane %v702_v18, 1 }
  0x81   : > { %921 = vrot.lane.b32.xlu0 %v2832_v29, %s2394_s11  ;;  %982 = vrot.lane.b32.xlu1 %v2913_v12, %s2395_s12 }
  0x85   : > { %1066 = vrot.lane.b32.xlu0 %v2502_v35, %s2396_s7  ;;  %788 = vrot.lane.b32.xlu1 %v2816_v28, %s2395_s12  ;;  %v865_v35 = vrot.slane %v575_v34, 1  ;;  %v257_v34 = vld [vmem:[%s2479_s8 + $0xa0] sm:$0xff] }
  0x86   : > { %v2956_v52 = vpop.permute.xlu1 %2363  ;;  %v296_v48 = vmul.f32 %v2457_v7, %v257_v34  ;;  %v336_v7 = vadd.f32 %v2469_v14, %v297_v44  ;;  %v867_v34 = vrot.slane %v2933_v6, 1 }
  0x87   : > { %v2959_v39 = vsel %vm842_vm3, %v864_v23, %v865_v35  ;;  %v2972_v35 = vsel %vm2436_vm2, 0, %v464_v58  ;;  %v466_v23 = vshrl.u32 %v388_v60, 16  ;;  %v2365_v18 = vunpack.i.l.bf16 %v2956_v52 }
  0x88   : > { %3600 = vst [vmem:[#allocation9_spill] sm:$0xff] %v2959_v39  ;;  %v335_v27 = vadd.f32 %v2469_v14, %v296_v48  ;;  %v697_v19 = vshll.u32 %v2972_v35, 16  ;;  %v368_v48 = vmax.f32 %v336_v7, 0.0  ;;  %v2994_v44 = vsel %vm842_vm3, %v867_v34, %v868_v41 }
  0x89   : > { %954 = vrot.lane.b32.xlu0 %v2807_v25, %s2396_s7  ;;  %1014 = vrot.lane.b32.xlu1 %v2899_v21, %s2394_s11  ;;  %v2950_v25 = vpop.permute.xlu0 %778  ;;  %v468_v54 = vrot.slane %v466_v23, 7  ;;  %v695_v8 = vshrl.u32 %v2972_v35, 16 }
  0x8a   : > { %v367_v58 = vmax.f32 %v335_v27, 0.0  ;;  %v699_v32 = vrot.slane %v697_v19, 1  ;;  %v870_v19 = vrot.slane %v2972_v35, 1 }
  0x8b   : > { %v471_v23 = vor.u32 %v469_v55, %v468_v54  ;;  %v871_v55 = vrot.slane %v577_v50, 1  ;;  %v1070_v50 = vsel %vm1068_vm5, %v2448_v5, %v2950_v25 }
  0x8c   : > { %v389_v60 = vpack.c.bf16 %v368_v48, %v367_v58  ;;  %v700_v7 = vor.u32 %v699_v32, %v695_v8  ;;  %v578_v8 = vsel %vm2436_vm2, %v468_v54, 0 }
  0x8d   : > { %901 = vrot.lane.b32.xlu0 %v2854_v20, %s2394_s11  ;;  %1046 = vrot.lane.b32.xlu1 %v2942_v46, %s2396_s7  ;;  %v3005_v41 = vsel %vm2436_vm2, 0, %v471_v23 }
  0x8e   : > { %v473_v34 = vshrl.u32 %v389_v60, 16  ;;  %v3013_v48 = vsel %vm585_vm4, %v700_v7, %v704_v10  ;;  %v709_v32 = vshll.u32 %v3005_v41, 16  ;;  %v3029_v10 = vsel %vm842_vm3, %v870_v19, %v871_v55 }
  0x8f   : > { %v714_v7 = vshll.u32 %v578_v8, 16 }
  0x90   : > { %v475_v38 = vrot.slane %v473_v34, 7 }
  0x91   : > { %934 = vrot.lane.b32.xlu0 %v2845_v4, %s2396_s7  ;;  %984 = vrot.lane.b32.xlu1 %v2959_v39, %s2395_s12  ;;  %v716_v55 = vrot.slane %v714_v7, 1 }
  0x93   : > { %v2968_v3 = vpop.permute.xlu0 %1006  ;;  %v1005_v0 = vpop.permute.xlu1 %1004 }
  0x95   : > { %790 = vrot.lane.b32.xlu0 %v2882_v56, %s2395_s12  ;;  %1016 = vrot.lane.b32.xlu1 %v2933_v6, %s2394_s11 }
  0x97   : > { %v2980_v43 = vpop.permute.xlu0 %1028  ;;  %v925_v14 = vpop.permute.xlu1 %924 }
  0x99   : > { %903 = vrot.lane.b32.xlu0 %v2913_v12, %s2394_s11  ;;  %1048 = vrot.lane.b32.xlu1 %v2983_v47, %s2396_s7 }
  0x9b   : > { %v973_v24 = vpop.permute.xlu0 %972  ;;  %v2997_v15 = vpop.permute.xlu1 %926 }
  0x9c   : > { %v1185_v23 = vsel %vm1068_vm5, %v2673_v59, %v973_v24  ;;  %v707_v24 = vshrl.u32 %v3005_v41, 16 }
  0x9d   : > { %936 = vrot.lane.b32.xlu0 %v2899_v21, %s2396_s7  ;;  %986 = vrot.lane.b32.xlu1 %v2994_v44, %s2395_s12  ;;  %v476_v21 = vshll.u32 %v389_v60, 16  ;;  %v1232_v59 = vsel %vm1101_vm6, %v1185_v23, %v1005_v0  ;;  %v711_v60 = vrot.slane %v709_v32, 1 }
  0x9f   : > { %v975_v27 = vpop.permute.xlu0 %974  ;;  %v894_v29 = vpop.permute.xlu1 %893  ;;  %v478_v12 = vor.u32 %v476_v21, %v475_v38 }
  0xa0   : > { %v1188_v5 = vsel %vm1068_vm5, %v2662_v51, %v975_v27  ;;  %v712_v27 = vor.u32 %v711_v60, %v707_v24  ;;  %v579_v24 = vsel %vm2436_vm2, %v475_v38, 0 }
  0xa1   : > { %792 = vrot.lane.b32.xlu0 %v2942_v46, %s2395_s12  ;;  %1018 = vrot.lane.b32.xlu1 %v2972_v35, %s2394_s11  ;;  %v1234_v51 = vsel %vm1101_vm6, %v1188_v5, %v2968_v3  ;;  %v3049_v23 = vsel %vm2436_vm2, 0, %v478_v12  ;;  %v874_v3 = vrot.slane %v578_v8, 1  ;;  %v873_v12 = vrot.slane %v3005_v41, 1 }
  0xa2   : > { %v719_v38 = vshrl.u32 %v3049_v23, 16  ;;  %v726_v5 = vshll.u32 %v579_v24, 16 }
  0xa3   : > { %v997_v58 = vpop.permute.xlu0 %996  ;;  %v916_v45 = vpop.permute.xlu1 %915  ;;  %v3077_v2 = vsel %vm842_vm3, %v873_v12, %v874_v3  ;;  %v876_v3 = vrot.slane %v3049_v23, 1 }
  0xa5   : > { %905 = vrot.lane.b32.xlu0 %v2959_v39, %s2394_s11  ;;  %1050 = vrot.lane.b32.xlu1 %v3013_v48, %s2396_s7  ;;  %v1103_v39 = vsel %vm1101_vm6, %v1070_v50, %v2365_v18 }
  0xa6   : > { %v1136_v19 = vsel %vm1134_vm7, %v1103_v39, %v925_v14  ;;  %v1221_v39 = vsel %vm1068_vm5, %v2765_v37, %v997_v58 }
  0xa7   : > { %v1037_v54 = vpop.permute.xlu0 %1036  ;;  %v781_v25 = vpop.permute.xlu1 %780  ;;  %v1256_v58 = vsel %vm1101_vm6, %v1221_v39, %v2980_v43 }
  0xa8   : > { %v1264_v34 = vsel %vm1134_vm7, %v1232_v59, %v1037_v54  ;;  %v1072_v32 = vsel %vm1068_vm5, %v2580_v49, %v781_v25  ;;  %v3058_v49 = vsel %vm585_vm4, %v712_v27, %v716_v55  ;;  %v721_v54 = vshll.u32 %v3049_v23, 16 }
  0xa9   : > { %938 = vrot.lane.b32.xlu0 %v2933_v6, %s2396_s7  ;;  %1535 = vmatprep.mubr.bf16.mxu0 %v1264_v34  ;;  %v1105_v50 = vsel %vm1101_vm6, %v1072_v32, %v894_v29  ;;  %v728_v27 = vrot.slane %v726_v5, 1  ;;  %v877_v32 = vrot.slane %v579_v24, 1 }
  0xaa   : > { %988 = vrot.lane.b32.xlu1 %v3029_v10, %s2395_s12  ;;  %1536 = vmatmul.mubr.bf16.vlgmr.msra.gmra.mxu0 %v1136_v19  ;;  %v1139_v29 = vsel %vm1134_vm7, %v1105_v50, %v2997_v15  ;;  %v723_v7 = vrot.slane %v721_v54, 1  ;;  %v2384_v19 = vld [vmem:[%s3580_s3 + $0x80] sm:$0xff]  }
  0xab   : > { %v1039_v0 = vpop.permute.xlu0 %1038  ;;  %v803_v21 = vpop.permute.xlu1 %802  ;;  %v3111_v54 = vsel %vm842_vm3, %v876_v3, %v877_v32 }
  0xac   : > { %v1267_v18 = vsel %vm1134_vm7, %v1234_v51, %v1039_v0  ;;  %v1094_v8 = vsel %vm1068_vm5, %v2598_v1, %v803_v21  ;;  %v724_v51 = vor.u32 %v723_v7, %v719_v38 }
  0xad   : > { %794 = vrot.lane.b32.xlu0 %v2983_v47, %s2395_s12  ;;  %1543 = vmatprep.mubr.bf16.mxu0 %v1267_v18  ;;  %v1127_v34 = vsel %vm1101_vm6, %v1094_v8, %v916_v45 }
  0xae   : > { %1020 = vrot.lane.b32.xlu1 %v3005_v41, %s2394_s11 }
  0xaf   : > { %v977_v14 = vpop.permute.xlu0 %976  ;;  %v1061_v59 = vpop.permute.xlu1 %1060 }
  0xb0   : > { %v1300_v60 = vsel %vm1134_vm7, %v1256_v58, %v1061_v59  ;;  %v1191_v45 = vsel %vm1068_vm5, %v2679_v63, %v977_v14 }
  0xb1   : > { %907 = vrot.lane.b32.xlu0 %v2994_v44, %s2394_s11  ;;  %1631 = vmatprep.mubr.bf16.mxu1 %v1300_v60 }
  0xb2   : > { %1052 = vrot.lane.b32.xlu1 %v3058_v49, %s2396_s7  ;;  %1544 = vmatmul.mubr.bf16.gmra.mxu0 %v1139_v29 }
  0xb3   : > { %v783_v43 = vpop.permute.xlu0 %782  ;;  %v949_v25 = vpop.permute.xlu1 %948 }
  0xb4   : > { %v1172_v15 = vsel %vm1134_vm7, %v1127_v34, %v949_v25  ;;  %v1074_v21 = vsel %vm1068_vm5, %v2557_v36, %v783_v43 }
  0xb5   : > { %940 = vrot.lane.b32.xlu0 %v2972_v35, %s2396_s7  ;;  %1632 = vmatmul.mubr.bf16.vlgmr.msra.gmra.mxu1 %v1172_v15 }
  0xb6   : > { %990 = vrot.lane.b32.xlu1 %v3077_v2, %s2395_s12  ;;  %2299 = vmatpush3.bf16.msra.mxu1 %v2905_v26  ;;  %v3100_v26 = vsel %vm585_vm4, %v724_v51, %v728_v27 }
  0xb7   : > { %v1009_v0 = vpop.permute.xlu0 %1008  ;;  %v896_v55 = vpop.permute.xlu1 %895  ;;  %2300 = vmatprep.subr.bf16.mxu1 %v2384_v19 }
  0xb8   : > { %v1236_v18 = vsel %vm1101_vm6, %v1191_v45, %v1009_v0  ;;  %v1107_v50 = vsel %vm1101_vm6, %v1074_v21, %v896_v55 }
  0xb9   : > { %796 = vrot.lane.b32.xlu0 %v3013_v48, %s2395_s12 }
  0xba   : > { %1022 = vrot.lane.b32.xlu1 %v3049_v23, %s2394_s11  ;;  %2301 = vmatpush3.bf16.msra.mxu1 %v2384_v19 }
  0xbb   : > { %v1041_v39 = vpop.permute.xlu0 %1040  ;;  %v929_v12 = vpop.permute.xlu1 %928 }
  0xbc   : > { %v1270_v63 = vsel %vm1134_vm7, %v1236_v18, %v1041_v39  ;;  %v1142_v36 = vsel %vm1134_vm7, %v1107_v50, %v929_v12 }
  0xbd   : > { %909 = vrot.lane.b32.xlu0 %v3029_v10, %s2394_s11  ;;  %1551 = vmatprep.mubr.bf16.mxu0 %v1270_v63 }
  0xbe   : > { %1054 = vrot.lane.b32.xlu1 %v3100_v26, %s2396_s7  ;;  %1552 = vmatmul.mubr.bf16.gmra.mxu0 %v1142_v36 }
  0xbf   : > { %v999_v14 = vpop.permute.xlu0 %998  ;;  %v805_v59 = vpop.permute.xlu1 %804 }
  0xc0   : > { %v1224_v8 = vsel %vm1068_vm5, %v2707_v33, %v999_v14  ;;  %v1096_v38 = vsel %vm1068_vm5, %v2631_v22, %v805_v59 }
  0xc1   : > { %942 = vrot.lane.b32.xlu0 %v3005_v41, %s2396_s7 }
  0xc2   : > { %992 = vrot.lane.b32.xlu1 %v3111_v54, %s2395_s12 }
  0xc3   : > { %v1031_v58 = vpop.permute.xlu0 %1030  ;;  %v918_v24 = vpop.permute.xlu1 %917 }
  0xc4   : > { %v1258_v29 = vsel %vm1101_vm6, %v1224_v8, %v1031_v58  ;;  %v1129_v25 = vsel %vm1101_vm6, %v1096_v38, %v918_v24 }
  0xc5   : > { %798 = vrot.lane.b32.xlu0 %v3058_v49, %s2395_s12 }
  0xc6   : > { %1024 = vrot.lane.b32.xlu1 %v2598_v1, %s2394_s11 }
  0xc7   : > { %v979_v60 = vpop.permute.xlu0 %978  ;;  %v1063_v43 = vpop.permute.xlu1 %1062 }
  0xc8   : > { %v1303_v7 = vsel %vm1134_vm7, %v1258_v29, %v1063_v43  ;;  %v1194_v0 = vsel %vm1068_vm5, %v2747_v9, %v979_v60 }
  0xc9   : > { %911 = vrot.lane.b32.xlu0 %v3077_v2, %s2394_s11  ;;  %1639 = vmatprep.mubr.bf16.mxu1 %v1303_v7 }
  0xca   : > { %1056 = vrot.lane.b32.xlu1 %v2691_v17, %s2396_s7 }
  0xcb   : > { %v785_v5 = vpop.permute.xlu0 %784  ;;  %v951_v33 = vpop.permute.xlu1 %950 }
  0xcc   : > { %v1175_v34 = vsel %vm1134_vm7, %v1129_v25, %v951_v33  ;;  %v1076_v51 = vsel %vm1068_vm5, %v2548_v31, %v785_v5 }
  0xcd   : > { %944 = vrot.lane.b32.xlu0 %v3049_v23, %s2396_s7  ;;  %1640 = vmatmul.mubr.bf16.gmra.mxu1 %v1175_v34 }
  0xce   : > { %994 = vrot.lane.b32.xlu1 %v2651_v42, %s2395_s12 }
  0xcf   : > { %v1011_v19 = vpop.permute.xlu0 %1010  ;;  %v898_v15 = vpop.permute.xlu1 %897 }
  0xd0   : > { %v1238_v27 = vsel %vm1101_vm6, %v1194_v0, %v1011_v19  ;;  %v1109_v45 = vsel %vm1101_vm6, %v1076_v51, %v898_v15 }
  0xd1   : > { %800 = vrot.lane.b32.xlu0 %v3100_v26, %s2395_s12 }
  0xd2   : > { %1026 = vrot.lane.b32.xlu1 %v2631_v22, %s2394_s11 }
  0xd3   : > { %v1043_v55 = vpop.permute.xlu0 %1042  ;;  %v931_v32 = vpop.permute.xlu1 %930 }
  0xd4   : > { %v1273_v21 = vsel %vm1134_vm7, %v1238_v27, %v1043_v55  ;;  %v1145_v9 = vsel %vm1134_vm7, %v1109_v45, %v931_v32 }
  0xd5   : > { %913 = vrot.lane.b32.xlu0 %v3111_v54, %s2394_s11  ;;  %1559 = vmatprep.mubr.bf16.mxu0 %v1273_v21 }
  0xd6   : > { %1058 = vrot.lane.b32.xlu1 %v2765_v37, %s2396_s7  ;;  %1560 = vmatmul.mubr.bf16.gmra.mxu0 %v1145_v9 }
  0xd7   : > { %v1001_v22 = vpop.permute.xlu0 %1000  ;;  %v807_v31 = vpop.permute.xlu1 %806 }
  0xd8   : > { %v1227_v3 = vsel %vm1068_vm5, %v2792_v62, %v1001_v22  ;;  %v1098_v36 = vsel %vm1068_vm5, %v2565_v40, %v807_v31 }
  0xd9   : > { %946 = vrot.lane.b32.xlu0 %v2598_v1, %s2396_s7 }
  0xdb   : > { %v1033_v18 = vpop.permute.xlu0 %1032  ;;  %v920_v39 = vpop.permute.xlu1 %919 }
  0xdc   : > { %v1260_v12 = vsel %vm1101_vm6, %v1227_v3, %v1033_v18  ;;  %v1131_v59 = vsel %vm1101_vm6, %v1098_v36, %v920_v39 }
  0xdf   : > { %v981_v50 = vpop.permute.xlu0 %980  ;;  %v1065_v63 = vpop.permute.xlu1 %1064 }
  0xe0   : > { %v1306_v37 = vsel %vm1134_vm7, %v1260_v12, %v1065_v63  ;;  %v1197_v62 = vsel %vm1068_vm5, %v2816_v28, %v981_v50 }
  0xe1   : > { %1647 = vmatprep.mubr.bf16.mxu1 %v1306_v37 }
  0xe3   : > { %v787_v14 = vpop.permute.xlu0 %786  ;;  %v953_v58 = vpop.permute.xlu1 %952 }
  0xe4   : > { %v1178_v1 = vsel %vm1134_vm7, %v1131_v59, %v953_v58  ;;  %v1078_v60 = vsel %vm1068_vm5, %v2723_v53, %v787_v14  ;;  %v2366_v53 = vunpack.i.h.bf16 %v2956_v52  ;;  %v3601_v59 = vld [vmem:[#allocation8_spill] sm:$0xff] }
  0xe5   : > { %1648 = vmatmul.mubr.bf16.gmra.mxu1 %v1178_v1 }
  0xe7   : > { %v1013_v24 = vpop.permute.xlu0 %1012  ;;  %v900_v8 = vpop.permute.xlu1 %899 }
  0xe8   : > { %v1240_v40 = vsel %vm1101_vm6, %v1197_v62, %v1013_v24  ;;  %v1111_v43 = vsel %vm1101_vm6, %v1078_v60, %v900_v8 }
  0xeb   : > { %v1045_v29 = vpop.permute.xlu0 %1044  ;;  %v933_v38 = vpop.permute.xlu1 %932 }
  0xec   : > { %v1276_v7 = vsel %vm1134_vm7, %v1240_v40, %v1045_v29  ;;  %v1148_v5 = vsel %vm1134_vm7, %v1111_v43, %v933_v38  ;;  %v3603_v43 = vld [vmem:[#allocation7_spill] sm:$0xff] }
  0xed   : > { %1567 = vmatprep.mubr.bf16.mxu0 %v1276_v7 }
  0xee   : > { %1568 = vmatmul.mubr.bf16.gmra.mxu0 %v1148_v5 }
  0xef   : > { %v1003_v25 = vpop.permute.xlu0 %1002  ;;  %v809_v33 = vpop.permute.xlu1 %808 }
  0xf0   : > { %v1230_v28 = vsel %vm1068_vm5, %v2858_v11, %v1003_v25  ;;  %v1100_v51 = vsel %vm1068_vm5, %v2737_v13, %v809_v33 }
  0xf1   : > { %v1262_v0 = vsel %vm1101_vm6, %v1230_v28, %v2366_v53 }
  0xf3   : > { %v922_v34 = vpop.permute.xlu0 %921  ;;  %v983_v19 = vpop.permute.xlu1 %982 }
  0xf4   : > { %v1133_v45 = vsel %vm1101_vm6, %v1100_v51, %v922_v34  ;;  %v1200_v11 = vsel %vm1068_vm5, %v2882_v56, %v983_v19 }
  0xf7   : > { %v1067_v15 = vpop.permute.xlu0 %1066  ;;  %v789_v27 = vpop.permute.xlu1 %788 }
  0xf8   : > { %v1309_v55 = vsel %vm1134_vm7, %v1262_v0, %v1067_v15  ;;  %v1080_v18 = vsel %vm1068_vm5, %v2780_v57, %v789_v27 }
  0xf9   : > { %1655 = vmatprep.mubr.bf16.mxu1 %v1309_v55 }
  0xfb   : > { %v955_v32 = vpop.permute.xlu0 %954  ;;  %v1015_v21 = vpop.permute.xlu1 %1014 }
  0xfc   : > { %v1181_v9 = vsel %vm1134_vm7, %v1133_v45, %v955_v32  ;;  %v1242_v13 = vsel %vm1101_vm6, %v1200_v11, %v1015_v21 }
  0xfd   : > { %1656 = vmatmul.mubr.bf16.gmra.mxu1 %v1181_v9 }
  0xfe   : > { %2302 = vmatprep.mubr.msk.bf16.mxu1 %vm1068_vm5, %v2622_v16 }
  0xff   : > { %v902_v52 = vpop.permute.xlu0 %901  ;;  %v1047_v22 = vpop.permute.xlu1 %1046 }
 0x100   : > { %v1279_v31 = vsel %vm1134_vm7, %v1242_v13, %v1047_v22  ;;  %v1113_v39 = vsel %vm1101_vm6, %v1080_v18, %v902_v52  ;;  %v3607_v18 = vld [vmem:[#allocation6_spill] sm:$0xff] }
 0x101   : > { %1575 = vmatprep.mubr.bf16.mxu0 %v1279_v31  ;;  %v3606_v31 = vld [vmem:[#allocation5_spill] sm:$0xff] }
 0x103   : > { %v935_v3 = vpop.permute.xlu0 %934  ;;  %v985_v50 = vpop.permute.xlu1 %984 }
 0x104   : > { %v1151_v12 = vsel %vm1134_vm7, %v1113_v39, %v935_v3  ;;  %v1203_v63 = vsel %vm1068_vm5, %v2942_v46, %v985_v50 }
 0x105   : > { %1576 = vmatmul.mubr.bf16.gmra.mxu0 %v1151_v12  ;;  %2303 = vmatmul.mubr.msk.bf16.vlgmr.msra.gmra.mxu1 %vm1068_vm5, %v2703_v30 }
 0x106   : > { %2306 = vmatprep.mubr.msk.bf16.mxu1 %vm1068_vm5, %v2788_v61 }
 0x107   : > { %v791_v16 = vpop.permute.xlu0 %790  ;;  %v1017_v56 = vpop.permute.xlu1 %1016 }
 0x108   : > { %v1244_v36 = vsel %vm1101_vm6, %v1203_v63, %v1017_v56  ;;  %v1082_v30 = vsel %vm1068_vm5, %v2845_v4, %v791_v16  ;;  %v3608_v63 = vld [vmem:[#allocation2_spill] sm:$0xff] }
 0x10b   : > { %v904_v57 = vpop.permute.xlu0 %903  ;;  %v1049_v37 = vpop.permute.xlu1 %1048 }
 0x10c   : > { %v1282_v14 = vsel %vm1134_vm7, %v1244_v36, %v1049_v37  ;;  %v1115_v61 = vsel %vm1101_vm6, %v1082_v30, %v904_v57 }
 0x10d   : > { %2307 = vmatmul.mubr.msk.bf16.gmra.mxu1 %vm1068_vm5, %v2854_v20  ;;  %1583 = vmatprep.mubr.bf16.mxu0 %v1282_v14  ;;  %v3602_v20 = vld [vmem:[#allocation9_spill] sm:$0xff] }
 0x10e   : > { %2310 = vmatprep.mubr.msk.bf16.mxu1 %vm1068_vm5, %v3601_v59 }
 0x10f   : > { %v937_v58 = vpop.permute.xlu0 %936  ;;  %v987_v46 = vpop.permute.xlu1 %986 }
 0x110   : > { %v1154_v1 = vsel %vm1134_vm7, %v1115_v61, %v937_v58  ;;  %v1206_v62 = vsel %vm1068_vm5, %v2983_v47, %v987_v46 }
 0x111   : > { %1584 = vmatmul.mubr.bf16.gmra.mxu0 %v1154_v1 }
 0x113   : > { %v793_v24 = vpop.permute.xlu0 %792  ;;  %v1019_v8 = vpop.permute.xlu1 %1018 }
 0x114   : > { %v1246_v60 = vsel %vm1101_vm6, %v1206_v62, %v1019_v8  ;;  %v1084_v38 = vsel %vm1068_vm5, %v3603_v43, %v793_v24 }
 0x115   : > { %2311 = vmatmul.mubr.msk.bf16.gmra.mxu1 %vm1068_vm5, %v3602_v20 }
 0x116   : > { %2314 = vmatprep.mubr.msk.bf16.mxu1 %vm1068_vm5, %v2994_v44 }
 0x117   : > { %v906_v4 = vpop.permute.xlu0 %905  ;;  %v1051_v40 = vpop.permute.xlu1 %1050 }
 0x118   : > { %v1285_v29 = vsel %vm1134_vm7, %v1246_v60, %v1051_v40  ;;  %v1117_v7 = vsel %vm1101_vm6, %v1084_v38, %v906_v4 }
 0x119   : > { %1591 = vmatprep.mubr.bf16.mxu0 %v1285_v29 }
 0x11b   : > { %v939_v5 = vpop.permute.xlu0 %938 }
 0x11c   : > { %v989_v47 = vpop.permute.xlu1 %988  ;;  %v1157_v25 = vsel %vm1134_vm7, %v1117_v7, %v939_v5 }
 0x11d   : > { %1592 = vmatmul.mubr.bf16.gmra.mxu0 %v1157_v25  ;;  %2315 = vmatmul.mubr.msk.bf16.gmra.mxu1 %vm1068_vm5, %v3029_v10  ;;  %v1209_v34 = vsel %vm1068_vm5, %v3013_v48, %v989_v47 }
 0x11e   : > { %2318 = vmatprep.mubr.msk.bf16.mxu1 %vm1068_vm5, %v3077_v2 }
 0x11f   : > { %v795_v44 = vpop.permute.xlu0 %794 }
 0x120   : > { %v1021_v33 = vpop.permute.xlu1 %1020  ;;  %v1086_v10 = vsel %vm1068_vm5, %v2933_v6, %v795_v44  ;;  %v3605_v6 = vld [vmem:[#allocation4_spill] sm:$0xff] }
 0x121   : > { %v1248_v19 = vsel %vm1101_vm6, %v1209_v34, %v1021_v33 }
 0x123   : > { %v908_v28 = vpop.permute.xlu0 %907 }
 0x124   : > { %v1053_v53 = vpop.permute.xlu1 %1052  ;;  %v1119_v2 = vsel %vm1101_vm6, %v1086_v10, %v908_v28 }
 0x125   : > { %v1288_v15 = vsel %vm1134_vm7, %v1248_v19, %v1053_v53  ;;  %2319 = vmatmul.mubr.msk.bf16.gmra.mxu1 %vm1068_vm5, %v3111_v54  ;;  %v3604_v54 = vld [vmem:[#allocation3_spill] sm:$0xff] }
 0x126   : > { %1599 = vmatprep.mubr.bf16.mxu0 %v1288_v15  ;;  %2322 = vmatprep.mubr.msk.bf16.mxu1 %vm1068_vm5, %v2651_v42 }
 0x127   : > { %v941_v0 = vpop.permute.xlu0 %940 }
 0x128   : > { %v991_v48 = vpop.permute.xlu1 %990  ;;  %v1160_v51 = vsel %vm1134_vm7, %v1119_v2, %v941_v0 }
 0x129   : > { %1600 = vmatmul.mubr.bf16.gmra.mxu0 %v1160_v51  ;;  %v1212_v45 = vsel %vm1068_vm5, %v3058_v49, %v991_v48 }
 0x12b   : > { %v797_v27 = vpop.permute.xlu0 %796 }
 0x12c   : > { %v1023_v55 = vpop.permute.xlu1 %1022  ;;  %v1088_v11 = vsel %vm1068_vm5, %v2972_v35, %v797_v27 }
 0x12d   : > { %2323 = vmatmul.mubr.msk.bf16.gmra.mxu1 %vm1068_vm5, %v3604_v54  ;;  %v1250_v42 = vsel %vm1101_vm6, %v1212_v45, %v1023_v55 }
 0x12e   : > { %2326 = vmatprep.mubr.msk.bf16.mxu1 %vm1068_vm5, %v3605_v6 }
 0x12f   : > { %v910_v32 = vpop.permute.xlu0 %909 }
 0x130   : > { %v1055_v21 = vpop.permute.xlu1 %1054  ;;  %v1121_v52 = vsel %vm1101_vm6, %v1088_v11, %v910_v32 }
 0x131   : > { %v1291_v9 = vsel %vm1134_vm7, %v1250_v42, %v1055_v21 }
 0x132   : > { %1607 = vmatprep.mubr.bf16.mxu0 %v1291_v9 }
 0x133   : > { %v943_v13 = vpop.permute.xlu0 %942 }
 0x134   : > { %v993_v49 = vpop.permute.xlu1 %992  ;;  %v1163_v22 = vsel %vm1134_vm7, %v1121_v52, %v943_v13 }
 0x135   : > { %1608 = vmatmul.mubr.bf16.gmra.mxu0 %v1163_v22  ;;  %2327 = vmatmul.mubr.msk.bf16.gmra.mxu1 %vm1068_vm5, %v3606_v31  ;;  %v1215_v50 = vsel %vm1068_vm5, %v3100_v26, %v993_v49 }
 0x136   : > { %2330 = vmatprep.mubr.msk.bf16.mxu1 %vm1068_vm5, %v3607_v18 }
 0x137   : > { %v799_v39 = vpop.permute.xlu0 %798 }
 0x138   : > { %v1025_v3 = vpop.permute.xlu1 %1024  ;;  %v1090_v57 = vsel %vm1068_vm5, %v3005_v41, %v799_v39 }
 0x139   : > { %v1252_v12 = vsel %vm1101_vm6, %v1215_v50, %v1025_v3 }
 0x13b   : > { %v912_v35 = vpop.permute.xlu0 %911 }
 0x13c   : > { %v1057_v16 = vpop.permute.xlu1 %1056  ;;  %v1123_v36 = vsel %vm1101_vm6, %v1090_v57, %v912_v35 }
 0x13d   : > { %v1294_v56 = vsel %vm1134_vm7, %v1252_v12, %v1057_v16  ;;  %2331 = vmatmul.mubr.msk.bf16.gmra.mxu1 %vm1068_vm5, %v3608_v63 }
 0x13e   : > { %1615 = vmatprep.mubr.bf16.mxu0 %v1294_v56 }
 0x13f   : > { %v945_v37 = vpop.permute.xlu0 %944 }
 0x140   : > { %v995_v14 = vpop.permute.xlu1 %994  ;;  %v1166_v30 = vsel %vm1134_vm7, %v1123_v36, %v945_v37 }
 0x141   : > { %1616 = vmatmul.mubr.bf16.gmra.mxu0 %v1166_v30  ;;  %v1218_v61 = vsel %vm1068_vm5, %v2691_v17, %v995_v14 }
 0x143   : > { %v801_v26 = vpop.permute.xlu0 %800 }
 0x144   : > { %v1027_v59 = vpop.permute.xlu1 %1026  ;;  %v1092_v41 = vsel %vm1068_vm5, %v3049_v23, %v801_v26 }
 0x145   : > { %v1254_v46 = vsel %vm1101_vm6, %v1218_v61, %v1027_v59 }
 0x147   : > { %v914_v58 = vpop.permute.xlu0 %913 }
 0x148   : > { %v1059_v1 = vpop.permute.xlu1 %1058  ;;  %v1125_v8 = vsel %vm1101_vm6, %v1092_v41, %v914_v58 }
 0x149   : > { %v1297_v24 = vsel %vm1134_vm7, %v1254_v46, %v1059_v1 }
 0x14a   : > { %1623 = vmatprep.mubr.bf16.mxu0 %v1297_v24 }
 0x14b   : > { %v947_v62 = vpop.permute.xlu0 %946 }
 0x14c   : > { %v1169_v20 = vsel %vm1134_vm7, %v1125_v8, %v947_v62 }
 0x14d   : > { %1624 = vmatmul.mubr.bf16.gmra.mxu0 %v1169_v20 }
 0x16a   : > { %v2184_v43 = vpop.f32.mrf.mxu0 }
 0x16c   : > { %v2185_v7 = vpop.f32.mrf.mxu0 }
 0x16d   : > { %v2186_v16 = vadd.f32 %v2185_v7, %v2184_v43 }
 0x16e   : > { %v2187_v5 = vpop.f32.mrf.mxu0 }
 0x170   : > { %v2188_v47 = vpop.f32.mrf.mxu0 }
 0x171   : > { %v2189_v26 = vadd.f32 %v2188_v47, %v2187_v5 }
 0x172   : > { %v2190_v23 = vpop.f32.mrf.mxu0 }
 0x174   : > { %v2191_v33 = vpop.f32.mrf.mxu0 }
 0x175   : > { %v2256_v4 = vpop.f32.mrf.mxu1  ;;  %v2192_v50 = vadd.f32 %v2191_v33, %v2190_v23 }
 0x176   : > { %v2193_v53 = vpop.f32.mrf.mxu0 }
 0x177   : > { %v2257_v60 = vpop.f32.mrf.mxu1 }
 0x178   : > { %v3268_v40 = vadd.f32 %v2257_v60, %v2256_v4  ;;  %v2194_v10 = vpop.f32.mrf.mxu0 }
 0x179   : > { %v2259_v17 = vpop.f32.mrf.mxu1  ;;  %v2195_v36 = vadd.f32 %v2194_v10, %v2193_v53 }
 0x17b   : > { %v2260_v29 = vpop.f32.mrf.mxu1 }
 0x17c   : > { %v3270_v38 = vadd.f32 %v2260_v29, %v2259_v17 }
 0x17e   : > { %v2196_v2 = vpop.f32.mrf.mxu0 }
 0x180   : > { %v2197_v0 = vpop.f32.mrf.mxu0 }
 0x181   : > { %v2198_v24 = vadd.f32 %v2197_v0, %v2196_v2 }
 0x182   : > { %v2199_v48 = vpop.f32.mrf.mxu0 }
 0x184   : > { %v2200_v27 = vpop.f32.mrf.mxu0 }
 0x18d   : > { %v2262_v25 = vpop.f32.mrf.mxu1 }
 0x18f   : > { %v2263_v44 = vpop.f32.mrf.mxu1 }
 0x190   : > { %v3272_v34 = vadd.f32 %v2263_v44, %v2262_v25  ;;  %v2201_v25 = vadd.f32 %v2200_v27, %v2199_v48 }
 0x191   : > { %v2265_v28 = vpop.f32.mrf.mxu1 }
 0x193   : > { %v2266_v19 = vpop.f32.mrf.mxu1 }
 0x194   : > { %v3274_v15 = vadd.f32 %v2266_v19, %v2265_v28 }
 0x196   : > { %v2202_v45 = vpop.f32.mrf.mxu0 }
 0x198   : > { %v2203_v42 = vpop.f32.mrf.mxu0 }
 0x199   : > { %v2204_v58 = vadd.f32 %v2203_v42, %v2202_v45 }
 0x19a   : > { %v2205_v9 = vpop.f32.mrf.mxu0 }
 0x19c   : > { %v2206_v11 = vpop.f32.mrf.mxu0 }
 0x19d   : > { %v2207_v43 = vadd.f32 %v2206_v11, %v2205_v9 }
 0x1a5   : > { %v2268_v51 = vpop.f32.mrf.mxu1 }
 0x1a7   : > { %v2269_v55 = vpop.f32.mrf.mxu1 }
 0x1a8   : > { %v3276_v54 = vadd.f32 %v2269_v55, %v2268_v51 }
 0x1a9   : > { %v2271_v6 = vpop.f32.mrf.mxu1 }
 0x1ab   : > { %v2272_v32 = vpop.f32.mrf.mxu1 }
 0x1ac   : > { %v3278_v21 = vadd.f32 %v2272_v32, %v2271_v6 }
 0x1ae   : > { %v2208_v52 = vpop.f32.mrf.mxu0 }
 0x1b0   : > { %v2209_v13 = vpop.f32.mrf.mxu0 }
 0x1b1   : > { %v2210_v6 = vadd.f32 %v2209_v13, %v2208_v52 }
 0x1b2   : > { %v3282_v22 = vpop.f32.mrf.mxu0 }
 0x1b4   : > { %v3288_v39 = vpop.f32.mrf.mxu0 }
 0x1b5   : > { %v2213_v13 = vadd.f32 %v3288_v39, %v3282_v22 }
 0x1bd   : > { %v3280_v49 = vpop.f32.mrf.mxu1 }
 0x1bf   : > { %v3284_v31 = vpop.f32.mrf.mxu1 }
 0x1c1   : > { %v3286_v18 = vpop.f32.mrf.mxu1 }
 0x1c3   : > { %v3290_v3 = vpop.f32.mrf.mxu1 }
 0x1c5   : > { %v2214_v35 = vpop.f32.mrf.mxu0  ;;  %v2304_v12 = vpop.f32.mrf.mxu1 }
 0x1c6   : > { %v1707_v56 = vadd.f32 %v2304_v12, %v2192_v50 }
 0x1c7   : > { %v2215_v63 = vpop.f32.mrf.mxu0  ;;  %v1698_v57 = vpop.f32.mrf.mxu1 }
 0x1c8   : > { %1827 = vst.msk [vmem:[%s3297_s24 + $0x10] sm:$0xff] %vm1068_vm5, %v1707_v56  ;;  %v1699_v37 = vadd.f32 %v2186_v16, %v1698_v57  ;;  %v1928_v44 = vmul.f32 %v1707_v56, %v1707_v56  ;;  %v1860_v2 = vsel %vm1068_vm5, %v1707_v56, 0.0  ;;  %v2216_v51 = vadd.f32 %v2215_v63, %v2214_v35 }
 0x1c9   : > { %v2305_v14 = vpop.f32.mrf.mxu1  ;;  %v2217_v59 = vpop.f32.mrf.mxu0 }
 0x1ca   : > { %1825 = vst.msk [vmem:[%s3297_s24] sm:$0xff] %vm1068_vm5, %v1699_v37  ;;  %v1710_v30 = vadd.f32 %v2305_v14, %v2195_v36  ;;  %v1926_v41 = vmul.f32 %v1699_v37, %v1699_v37  ;;  %v1857_v17 = vsel %vm1068_vm5, %v1699_v37, 0.0  ;;  %v1961_v27 = vsel %vm1068_vm5, %v1928_v44, 0.0 }
 0x1cb   : > { %v1701_v61 = vpop.f32.mrf.mxu1  ;;  %v2218_v62 = vpop.f32.mrf.mxu0 }
 0x1cc   : > { %1828 = vst.msk [vmem:[%s3297_s24 + $0x18] sm:$0xff] %vm1068_vm5, %v1710_v30  ;;  %v1702_v46 = vadd.f32 %v2189_v26, %v1701_v61  ;;  %v1958_v33 = vsel %vm1068_vm5, %v1926_v41, 0.0  ;;  %v1929_v45 = vmul.f32 %v1710_v30, %v1710_v30  ;;  %v1862_v50 = vsel %vm1068_vm5, %v1710_v30, 0.0 }
 0x1cd   : > { %v2308_v1 = vpop.f32.mrf.mxu1  ;;  %v2219_v35 = vadd.f32 %v2218_v62, %v2217_v59 }
 0x1ce   : > { %v3305_v8 = vadd.f32 %v2308_v1, %v2204_v58  ;;  %1826 = vst.msk [vmem:[%s3297_s24 + $0x8] sm:$0xff] %vm1068_vm5, %v1702_v46  ;;  %v1858_v20 = vsel %vm1068_vm5, %v1702_v46, 0.0  ;;  %v1927_v4 = vmul.f32 %v1702_v46, %v1702_v46  ;;  %v1963_v63 = vsel %vm1068_vm5, %v1929_v45, 0.0 }
 0x1cf   : > { %v1714_v60 = vpop.f32.mrf.mxu1  ;;  %v1859_v7 = vadd.f32 %v1858_v20, %v1857_v17 }
 0x1d0   : > { %1831 = vst.msk [vmem:[%s3297_s24 + $0x30] sm:$0xff] %vm1068_vm5, %v3305_v8  ;;  %v1715_v29 = vadd.f32 %v2198_v24, %v1714_v60  ;;  %v1959_v5 = vsel %vm1068_vm5, %v1927_v4, 0.0 }
 0x1d1   : > { %v2220_v47 = vpop.f32.mrf.mxu0  ;;  %v2309_v23 = vpop.f32.mrf.mxu1  ;;  %v1960_v28 = vadd.f32 %v1959_v5, %v1958_v33  ;;  %v1861_v55 = vadd.f32 %v1860_v2, %v1859_v7  ;;  %v1932_v7 = vmul.f32 %v3305_v8, %v3305_v8  ;;  %v1868_v33 = vsel %vm1068_vm5, %v3305_v8, 0.0 }
 0x1d2   : > { %1829 = vst.msk [vmem:[%s3297_s24 + $0x20] sm:$0xff] %vm1068_vm5, %v1715_v29  ;;  %v3318_v19 = vadd.f32 %v2309_v23, %v2207_v43  ;;  %v1930_v57 = vmul.f32 %v1715_v29, %v1715_v29  ;;  %v1864_v30 = vsel %vm1068_vm5, %v1715_v29, 0.0 }
 0x1d3   : > { %v2221_v53 = vpop.f32.mrf.mxu0  ;;  %v1717_v10 = vpop.f32.mrf.mxu1  ;;  %v1962_v32 = vadd.f32 %v1961_v27, %v1960_v28  ;;  %v1863_v12 = vadd.f32 %v1862_v50, %v1861_v55 }
 0x1d4   : > { %v1718_v0 = vadd.f32 %v2201_v25, %v1717_v10  ;;  %1832 = vst.msk [vmem:[%s3297_s24 + $0x38] sm:$0xff] %vm1068_vm5, %v3318_v19  ;;  %v1965_v1 = vsel %vm1068_vm5, %v1930_v57, 0.0  ;;  %v2222_v22 = vadd.f32 %v2221_v53, %v2220_v47  ;;  %v1870_v27 = vsel %vm1068_vm5, %v3318_v19, 0.0 }
 0x1d5   : > { %v2312_v48 = vpop.f32.mrf.mxu1  ;;  %v2223_v42 = vpop.f32.mrf.mxu0  ;;  %v1964_v36 = vadd.f32 %v1963_v63, %v1962_v32  ;;  %v1865_v59 = vadd.f32 %v1864_v30, %v1863_v12 }
 0x1d6   : > { %1830 = vst.msk [vmem:[%s3297_s24 + $0x28] sm:$0xff] %vm1068_vm5, %v1718_v0  ;;  %v3327_v9 = vadd.f32 %v2312_v48, %v2216_v51  ;;  %v1931_v26 = vmul.f32 %v1718_v0, %v1718_v0  ;;  %v1866_v39 = vsel %vm1068_vm5, %v1718_v0, 0.0  ;;  %v1969_v0 = vsel %vm1068_vm5, %v1932_v7, 0.0 }
 0x1d7   : > { %v1730_v11 = vpop.f32.mrf.mxu1  ;;  %v2224_v37 = vpop.f32.mrf.mxu0  ;;  %v1966_v24 = vadd.f32 %v1965_v1, %v1964_v36  ;;  %v1867_v17 = vadd.f32 %v1866_v39, %v1865_v59  ;;  %v1933_v51 = vmul.f32 %v3318_v19, %v3318_v19 }
 0x1d8   : > { %1835 = vst.msk [vmem:[%s3297_s24 + $0x50] sm:$0xff] %vm1068_vm5, %v3327_v9  ;;  %v1731_v16 = vadd.f32 %v2210_v6, %v1730_v11  ;;  %v1967_v20 = vsel %vm1068_vm5, %v1931_v26, 0.0  ;;  %v2225_v23 = vadd.f32 %v2224_v37, %v2223_v42  ;;  %v1936_v39 = vmul.f32 %v3327_v9, %v3327_v9 }
 0x1d9   : > { %v2313_v56 = vpop.f32.mrf.mxu1  ;;  %v1968_v47 = vadd.f32 %v1967_v20, %v1966_v24  ;;  %v1869_v28 = vadd.f32 %v1868_v33, %v1867_v17  ;;  %v1971_v42 = vsel %vm1068_vm5, %v1933_v51, 0.0 }
 0x1da   : > { %v3334_v52 = vadd.f32 %v2313_v56, %v2219_v35  ;;  %1833 = vst.msk [vmem:[%s3297_s24 + $0x40] sm:$0xff] %vm1068_vm5, %v1731_v16  ;;  %v1934_v11 = vmul.f32 %v1731_v16, %v1731_v16  ;;  %v1872_v56 = vsel %vm1068_vm5, %v1731_v16, 0.0 }
 0x1db   : > { %v1733_v14 = vpop.f32.mrf.mxu1  ;;  %v1970_v55 = vadd.f32 %v1969_v0, %v1968_v47  ;;  %v1871_v45 = vadd.f32 %v1870_v27, %v1869_v28 }
 0x1dc   : > { %1836 = vst.msk [vmem:[%s3297_s24 + $0x58] sm:$0xff] %vm1068_vm5, %v3334_v52  ;;  %v1734_v61 = vadd.f32 %v2213_v13, %v1733_v14  ;;  %v1973_v37 = vsel %vm1068_vm5, %v1934_v11, 0.0 }
 0x1dd   : > { %v2226_v58 = vpop.f32.mrf.mxu0  ;;  %v2316_v46 = vpop.f32.mrf.mxu1  ;;  %v1972_v50 = vadd.f32 %v1971_v42, %v1970_v55  ;;  %v1873_v13 = vadd.f32 %v1872_v56, %v1871_v45  ;;  %v2276_v45 = vadd.f32 %v3284_v31, %v3280_v49 }
 0x1de   : > { %1834 = vst.msk [vmem:[%s3297_s24 + $0x48] sm:$0xff] %vm1068_vm5, %v1734_v61  ;;  %v1935_v63 = vmul.f32 %v1734_v61, %v1734_v61  ;;  %v1874_v14 = vsel %vm1068_vm5, %v1734_v61, 0.0 }
 0x1df   : > { %v2227_v41 = vpop.f32.mrf.mxu0  ;;  %v1746_v62 = vpop.f32.mrf.mxu1  ;;  %v1974_v26 = vadd.f32 %v1973_v37, %v1972_v50  ;;  %v1875_v1 = vadd.f32 %v1874_v14, %v1873_v13 }
 0x1e0   : > { %v2228_v4 = vadd.f32 %v2227_v41, %v2226_v58  ;;  %v3349_v60 = vadd.f32 %v2222_v22, %v1746_v62  ;;  %v1876_v62 = vsel %vm1068_vm5, %v3327_v9, 0.0  ;;  %v1878_v9 = vsel %vm1068_vm5, %v3334_v52, 0.0 }
 0x1e1   : > { %v2229_v29 = vpop.f32.mrf.mxu0  ;;  %v2317_v43 = vpop.f32.mrf.mxu1  ;;  %v1877_v20 = vadd.f32 %v1876_v62, %v1875_v1 }
 0x1e2   : > { %v3353_v5 = vadd.f32 %v2316_v46, %v2228_v4  ;;  %1837 = vst.msk [vmem:[%s3297_s24 + $0x60] sm:$0xff] %vm1068_vm5, %v3349_v60  ;;  %v1975_v46 = vsel %vm1068_vm5, %v1935_v63, 0.0  ;;  %v1938_v51 = vmul.f32 %v3349_v60, %v3349_v60 }
 0x1e3   : > { %v2230_v25 = vpop.f32.mrf.mxu0  ;;  %v1749_v44 = vpop.f32.mrf.mxu1  ;;  %v1976_v24 = vadd.f32 %v1975_v46, %v1974_v26  ;;  %v1879_v28 = vadd.f32 %v1878_v9, %v1877_v20 }
 0x1e4   : > { %1839 = vst.msk [vmem:[%s3297_s24 + $0x70] sm:$0xff] %vm1068_vm5, %v3353_v5  ;;  %v2231_v53 = vadd.f32 %v2230_v25, %v2229_v29  ;;  %v3363_v10 = vadd.f32 %v2225_v23, %v1749_v44  ;;  %v1977_v29 = vsel %vm1068_vm5, %v1936_v39, 0.0  ;;  %v1981_v31 = vsel %vm1068_vm5, %v1938_v51, 0.0 }
 0x1e5   : > { %v2320_v2 = vpop.f32.mrf.mxu1  ;;  %v1978_v47 = vadd.f32 %v1977_v29, %v1976_v24  ;;  %v1884_v26 = vsel %vm1068_vm5, %v3353_v5, 0.0 }
 0x1e6   : > { %v3368_v48 = vadd.f32 %v2317_v43, %v2231_v53  ;;  %1838 = vst.msk [vmem:[%s3297_s24 + $0x68] sm:$0xff] %vm1068_vm5, %v3363_v10  ;;  %v1937_v43 = vmul.f32 %v3334_v52, %v3334_v52 }
 0x1e7   : > { %v1762_v8 = vpop.f32.mrf.mxu1 }
 0x1e8   : > { %1840 = vst.msk [vmem:[%s3297_s24 + $0x78] sm:$0xff] %vm1068_vm5, %v3368_v48  ;;  %v1941_v46 = vmul.f32 %v3368_v48, %v3368_v48 }
 0x1e9   : > { %v2232_v6 = vpop.f32.mrf.mxu0  ;;  %v3378_v32 = vpop.f32.mrf.mxu1 }
 0x1eb   : > { %v2233_v35 = vpop.f32.mrf.mxu0  ;;  %v1765_v12 = vpop.f32.mrf.mxu1 }
 0x1ec   : > { %v2234_v57 = vadd.f32 %v2233_v35, %v2232_v6  ;;  %v1880_v6 = vsel %vm1068_vm5, %v3349_v60, 0.0  ;;  %v1882_v60 = vsel %vm1068_vm5, %v3363_v10, 0.0 }
 0x1ed   : > { %v2235_v19 = vpop.f32.mrf.mxu0  ;;  %v3382_v36 = vpop.f32.mrf.mxu1 }
 0x1ee   : > { %v3386_v30 = vadd.f32 %v2234_v57, %v1762_v8 }
 0x1ef   : > { %v2236_v59 = vpop.f32.mrf.mxu0  ;;  %v3388_v58 = vpop.f32.mrf.mxu1 }
 0x1f0   : > { %1841 = vst.msk [vmem:[%s3297_s24 + $0x80] sm:$0xff] %vm1068_vm5, %v3386_v30  ;;  %v2237_v16 = vadd.f32 %v2236_v59, %v2235_v19  ;;  %v1940_v19 = vmul.f32 %v3353_v5, %v3353_v5  ;;  %v1942_v24 = vmul.f32 %v3386_v30, %v3386_v30 }
 0x1f1   : > { %v3394_v22 = vpop.f32.mrf.mxu1 }
 0x1f2   : > { %v3398_v61 = vadd.f32 %v2237_v16, %v1765_v12  ;;  %v1985_v39 = vsel %vm1068_vm5, %v1940_v19, 0.0 }
 0x1f3   : > { %v3400_v41 = vpop.f32.mrf.mxu1 }
 0x1f4   : > { %1842 = vst.msk [vmem:[%s3297_s24 + $0x88] sm:$0xff] %vm1068_vm5, %v3398_v61 }
 0x1f5   : > { %v2238_v4 = vpop.f32.mrf.mxu0  ;;  %v2328_v17 = vpop.f32.mrf.mxu1 }
 0x1f6   : > { %v3411_v7 = vadd.f32 %v2328_v17, %v3272_v34  ;;  %v1979_v34 = vsel %vm1068_vm5, %v1937_v43, 0.0  ;;  %v1943_v17 = vmul.f32 %v3398_v61, %v3398_v61 }
 0x1f7   : > { %v2239_v23 = vpop.f32.mrf.mxu0  ;;  %v1794_v25 = vpop.f32.mrf.mxu1  ;;  %v1980_v52 = vadd.f32 %v1979_v34, %v1978_v47  ;;  %v1989_v47 = vsel %vm1068_vm5, %v1942_v24, 0.0 }
 0x1f8   : > { %1851 = vst.msk [vmem:[%s3297_s24 + $0xd0] sm:$0xff] %vm1068_vm5, %v3411_v7  ;;  %v2240_v44 = vadd.f32 %v2239_v23, %v2238_v4  ;;  %v3419_v33 = vadd.f32 %v3268_v40, %v1794_v25  ;;  %v1888_v4 = vsel %vm1068_vm5, %v3386_v30, 0.0  ;;  %v1890_v23 = vsel %vm1068_vm5, %v3398_v61, 0.0 }
 0x1f9   : > { %v2241_v53 = vpop.f32.mrf.mxu0  ;;  %v2329_v0 = vpop.f32.mrf.mxu1  ;;  %v1982_v12 = vadd.f32 %v1981_v31, %v1980_v52 }
 0x1fa   : > { %v3424_v55 = vadd.f32 %v2320_v2, %v2240_v44  ;;  %1849 = vst.msk [vmem:[%s3297_s24 + $0xc0] sm:$0xff] %vm1068_vm5, %v3419_v33  ;;  %v3430_v8 = vadd.f32 %v2329_v0, %v3274_v15  ;;  %v1939_v2 = vmul.f32 %v3363_v10, %v3363_v10  ;;  %v1881_v15 = vadd.f32 %v1880_v6, %v1879_v28 }
 0x1fb   : > { %v2242_v40 = vpop.f32.mrf.mxu0  ;;  %v1797_v27 = vpop.f32.mrf.mxu1  ;;  %v1991_v44 = vsel %vm1068_vm5, %v1943_v17, 0.0 }
 0x1fc   : > { %1843 = vst.msk [vmem:[%s3297_s24 + $0x90] sm:$0xff] %vm1068_vm5, %v3424_v55  ;;  %v2243_v42 = vadd.f32 %v2242_v40, %v2241_v53  ;;  %1852 = vst.msk [vmem:[%s3297_s24 + $0xd8] sm:$0xff] %vm1068_vm5, %v3430_v8  ;;  %v3445_v11 = vadd.f32 %v3270_v38, %v1797_v27  ;;  %v2279_v38 = vadd.f32 %v3290_v3, %v3286_v18  ;;  %v1983_v63 = vsel %vm1068_vm5, %v1939_v2, 0.0 }
 0x1fd   : > { %v2332_v49 = vpop.f32.mrf.mxu1  ;;  %v1883_v10 = vadd.f32 %v1882_v60, %v1881_v15  ;;  %v1984_v18 = vadd.f32 %v1983_v63, %v1982_v12  ;;  %v1892_v28 = vsel %vm1068_vm5, %v3424_v55, 0.0 }
 0x1fe   : > { %v1774_v50 = vadd.f32 %v3378_v32, %v2243_v42  ;;  %v3451_v35 = vadd.f32 %v2332_v49, %v2276_v45  ;;  %1850 = vst.msk [vmem:[%s3297_s24 + $0xc8] sm:$0xff] %vm1068_vm5, %v3445_v11 }
 0x1ff   : > { %v1810_v56 = vpop.f32.mrf.mxu1  ;;  %v1885_v16 = vadd.f32 %v1884_v26, %v1883_v10  ;;  %v1986_v62 = vadd.f32 %v1985_v39, %v1984_v18 }
 0x200   : > { %1844 = vst.msk [vmem:[%s3297_s24 + $0x98] sm:$0xff] %vm1068_vm5, %v1774_v50  ;;  %1855 = vst.msk [vmem:[%s3297_s24 + $0xf0] sm:$0xff] %vm1068_vm5, %v3451_v35  ;;  %v3465_v32 = vadd.f32 %v3276_v54, %v1810_v56  ;;  %v1945_v53 = vmul.f32 %v1774_v50, %v1774_v50  ;;  %v1894_v52 = vsel %vm1068_vm5, %v1774_v50, 0.0 }
 0x201   : > { %v2244_v57 = vpop.f32.mrf.mxu0  ;;  %v2333_v13 = vpop.f32.mrf.mxu1 }
 0x202   : > { %v3469_v37 = vadd.f32 %v2333_v13, %v2279_v38  ;;  %1853 = vst.msk [vmem:[%s3297_s24 + $0xe0] sm:$0xff] %vm1068_vm5, %v3465_v32  ;;  %v1995_v6 = vsel %vm1068_vm5, %v1945_v53, 0.0 }
 0x203   : > { %v2245_v3 = vpop.f32.mrf.mxu0  ;;  %v1813_v14 = vpop.f32.mrf.mxu1 }
 0x204   : > { %1856 = vst.msk [vmem:[%s3297_s24 + $0xf8] sm:$0xff] %vm1068_vm5, %v3469_v37  ;;  %v2246_v54 = vadd.f32 %v2245_v3, %v2244_v57  ;;  %v3480_v59 = vadd.f32 %v3278_v21, %v1813_v14  ;;  %v1886_v21 = vsel %vm1068_vm5, %v3368_v48, 0.0  ;;  %v1944_v48 = vmul.f32 %v3424_v55, %v3424_v55 }
 0x205   : > { %v2247_v1 = vpop.f32.mrf.mxu0  ;;  %v1887_v43 = vadd.f32 %v1886_v21, %v1885_v16 }
 0x206   : > { %v1779_v5 = vadd.f32 %v2246_v54, %v3388_v58  ;;  %1854 = vst.msk [vmem:[%s3297_s24 + $0xe8] sm:$0xff] %vm1068_vm5, %v3480_v59  ;;  %v1987_v58 = vsel %vm1068_vm5, %v1941_v46, 0.0  ;;  %v1993_v61 = vsel %vm1068_vm5, %v1944_v48, 0.0  ;;  %v1950_v46 = vmul.f32 %v3419_v33, %v3419_v33 }
 0x207   : > { %v2248_v20 = vpop.f32.mrf.mxu0  ;;  %v1889_v30 = vadd.f32 %v1888_v4, %v1887_v43  ;;  %v1988_v9 = vadd.f32 %v1987_v58, %v1986_v62  ;;  %v1951_v62 = vmul.f32 %v3445_v11, %v3445_v11  ;;  %v1952_v4 = vmul.f32 %v3411_v7, %v3411_v7 }
 0x208   : > { %1845 = vst.msk [vmem:[%s3297_s24 + $0xa0] sm:$0xff] %vm1068_vm5, %v1779_v5  ;;  %v2249_v29 = vadd.f32 %v2248_v20, %v2247_v1  ;;  %v1946_v40 = vmul.f32 %v1779_v5, %v1779_v5  ;;  %v1896_v2 = vsel %vm1068_vm5, %v1779_v5, 0.0  ;;  %v1904_v5 = vsel %vm1068_vm5, %v3419_v33, 0.0 }
 0x209   : > { %v1990_v0 = vadd.f32 %v1989_v47, %v1988_v9  ;;  %v1891_v34 = vadd.f32 %v1890_v23, %v1889_v30  ;;  %v2005_v17 = vsel %vm1068_vm5, %v1950_v46, 0.0  ;;  %v1908_v33 = vsel %vm1068_vm5, %v3411_v7, 0.0 }
 0x20a   : > { %v1782_v25 = vadd.f32 %v2249_v29, %v3400_v41  ;;  %v1997_v60 = vsel %vm1068_vm5, %v1946_v40, 0.0  ;;  %v1906_v29 = vsel %vm1068_vm5, %v3445_v11, 0.0  ;;  %v1953_v47 = vmul.f32 %v3430_v8, %v3430_v8 }
 0x20b   : > { %v1992_v27 = vadd.f32 %v1991_v44, %v1990_v0  ;;  %v1893_v41 = vadd.f32 %v1892_v28, %v1891_v34  ;;  %v2007_v23 = vsel %vm1068_vm5, %v1951_v62, 0.0  ;;  %v2009_v30 = vsel %vm1068_vm5, %v1952_v4, 0.0 }
 0x20c   : > { %1846 = vst.msk [vmem:[%s3297_s24 + $0xa8] sm:$0xff] %vm1068_vm5, %v1782_v25  ;;  %v1947_v55 = vmul.f32 %v1782_v25, %v1782_v25  ;;  %v1898_v12 = vsel %vm1068_vm5, %v1782_v25, 0.0  ;;  %v1910_v9 = vsel %vm1068_vm5, %v3430_v8, 0.0  ;;  %v1954_v11 = vmul.f32 %v3465_v32, %v3465_v32 }
 0x20d   : > { %v2250_v51 = vpop.f32.mrf.mxu0  ;;  %v1994_v15 = vadd.f32 %v1993_v61, %v1992_v27  ;;  %v1895_v49 = vadd.f32 %v1894_v52, %v1893_v41  ;;  %v2011_v53 = vsel %vm1068_vm5, %v1953_v47, 0.0  ;;  %v1912_v7 = vsel %vm1068_vm5, %v3465_v32, 0.0 }
 0x20e   : > { %v1999_v10 = vsel %vm1068_vm5, %v1947_v55, 0.0  ;;  %v1955_v0 = vmul.f32 %v3480_v59, %v3480_v59  ;;  %v1956_v61 = vmul.f32 %v3451_v35, %v3451_v35  ;;  %v2013_v8 = vsel %vm1068_vm5, %v1954_v11, 0.0 }
 0x20f   : > { %v2251_v45 = vpop.f32.mrf.mxu0  ;;  %v1996_v56 = vadd.f32 %v1995_v6, %v1994_v15  ;;  %v1897_v38 = vadd.f32 %v1896_v2, %v1895_v49  ;;  %v1914_v52 = vsel %vm1068_vm5, %v3480_v59, 0.0  ;;  %v1916_v41 = vsel %vm1068_vm5, %v3451_v35, 0.0 }
 0x210   : > { %v2252_v42 = vadd.f32 %v2251_v45, %v2250_v51  ;;  %v1957_v32 = vmul.f32 %v3469_v37, %v3469_v37  ;;  %v2015_v45 = vsel %vm1068_vm5, %v1955_v0, 0.0  ;;  %v2017_v55 = vsel %vm1068_vm5, %v1956_v61, 0.0 }
 0x211   : > { %v2253_v31 = vpop.f32.mrf.mxu0  ;;  %v1998_v18 = vadd.f32 %v1997_v60, %v1996_v56  ;;  %v1899_v3 = vadd.f32 %v1898_v12, %v1897_v38 }
 0x212   : > { %v1787_v50 = vadd.f32 %v3382_v36, %v2252_v42  ;;  %v1918_v42 = vsel %vm1068_vm5, %v3469_v37, 0.0  ;;  %v2019_v49 = vsel %vm1068_vm5, %v1957_v32, 0.0 }
 0x213   : > { %v2254_v63 = vpop.f32.mrf.mxu0  ;;  %v2000_v54 = vadd.f32 %v1999_v10, %v1998_v18 }
 0x214   : > { %1847 = vst.msk [vmem:[%s3297_s24 + $0xb0] sm:$0xff] %vm1068_vm5, %v1787_v50  ;;  %v1900_v57 = vsel %vm1068_vm5, %v1787_v50, 0.0  ;;  %v1948_v13 = vmul.f32 %v1787_v50, %v1787_v50  ;;  %v2255_v19 = vadd.f32 %v2254_v63, %v2253_v31 }
 0x215   : > { %v1901_v36 = vadd.f32 %v1900_v57, %v1899_v3 }
 0x216   : > { %v2001_v14 = vsel %vm1068_vm5, %v1948_v13, 0.0  ;;  %v1790_v26 = vadd.f32 %v3394_v22, %v2255_v19 }
 0x217   : > { %v2002_v39 = vadd.f32 %v2001_v14, %v2000_v54 }
 0x218   : > { %1848 = vst.msk [vmem:[%s3297_s24 + $0xb8] sm:$0xff] %vm1068_vm5, %v1790_v26  ;;  %v1902_v16 = vsel %vm1068_vm5, %v1790_v26, 0.0  ;;  %v1949_v1 = vmul.f32 %v1790_v26, %v1790_v26 }
 0x219   : > { %v1903_v24 = vadd.f32 %v1902_v16, %v1901_v36 }
 0x21a   : > { %v2003_v22 = vsel %vm1068_vm5, %v1949_v1, 0.0 }
 0x21b   : > { %v1905_v20 = vadd.f32 %v1904_v5, %v1903_v24  ;;  %v2004_v21 = vadd.f32 %v2003_v22, %v2002_v39 }
 0x21d   : > { %v1907_v58 = vadd.f32 %v1906_v29, %v1905_v20  ;;  %v2006_v43 = vadd.f32 %v2005_v17, %v2004_v21 }
 0x21f   : > { %v1909_v48 = vadd.f32 %v1908_v33, %v1907_v58  ;;  %v2008_v25 = vadd.f32 %v2007_v23, %v2006_v43 }
 0x221   : > { %v1911_v44 = vadd.f32 %v1910_v9, %v1909_v48  ;;  %v2010_v28 = vadd.f32 %v2009_v30, %v2008_v25 }
 0x223   : > { %v1913_v34 = vadd.f32 %v1912_v7, %v1911_v44  ;;  %v2012_v51 = vadd.f32 %v2011_v53, %v2010_v28 }
 0x225   : > { %v1915_v40 = vadd.f32 %v1914_v52, %v1913_v34  ;;  %v2014_v27 = vadd.f32 %v2013_v8, %v2012_v51 }
 0x227   : > { %v1917_v6 = vadd.f32 %v1916_v41, %v1915_v40  ;;  %v2016_v2 = vadd.f32 %v2015_v45, %v2014_v27 }
 0x229   : > { %v1919_v15 = vadd.f32 %v1918_v42, %v1917_v6  ;;  %v2018_v59 = vadd.f32 %v2017_v55, %v2016_v2 }
 0x22b   : > { %v1920_v31 = vrot.slane %v1919_v15, 4  ;;  %v2020_v60 = vadd.f32 %v2019_v49, %v2018_v59 }
 0x22d   : > { %v1921_v35 = vadd.f32 %v1920_v31, %v1919_v15  ;;  %v2021_v12 = vrot.slane %v2020_v60, 4 }
 0x22f   : > { %v1922_v50 = vrot.slane %v1921_v35, 2  ;;  %v2022_v56 = vadd.f32 %v2021_v12, %v2020_v60 }
 0x231   : > { %v1923_v38 = vadd.f32 %v1922_v50, %v1921_v35  ;;  %v2023_v63 = vrot.slane %v2022_v56, 2 }
 0x233   : > { %v1924_v10 = vrot.slane %v1923_v38, 1  ;;  %v2024_v57 = vadd.f32 %v2023_v63, %v2022_v56 }
 0x235   : > { %v2025_v13 = vrot.slane %v2024_v57, 1  ;;  %v1925_v19 = vadd.f32 %v1924_v10, %v1923_v38 }
 0x237   : > { %v2026_v18 = vadd.f32 %v2025_v13, %v2024_v57 }
 0x239   : > { %v2028_v37 = vsel %vm548_vm0, %v1925_v19, %v2026_v18 }
 0x23a   : > { %v2030_v3 = vsel %vm2029_vm8, %v2028_v37, 0.0 }
 0x23b   : > { %2031 = vst.msk [vmem:[%s235_s27] sm:$0xff] %vm1068_vm5, %v2030_v3 }
 0x23c PF: > { %s16_s18 = sadd.s32 1, %s2391_s18  }
 0x23d   : > { %p13_p4 = scmp.ge.s32.totalorder %s16_s18, 4  }
 0x23f   :  { %15 = sbr.rel (!%p13_p4) target bundleno = 1 (0x1), region = 78 }

</bundles_post_ra>
